<compile_context>
chip_gen: v7x
topology: tpu7x:2x2x1
jax: 0.10.0
libtpu: 0.0.40
codegen_flags: <defaults>
</compile_context>

<pallas_src>
import functools
import math

import jax
import jax.numpy as jnp
from jax.experimental import pallas as pl
from jax.experimental.pallas import tpu as pltpu


def _round_up(x, m):
    return ((x + m - 1) // m) * m


def _layernorm(x, g, b, eps=1e-5):
    mu = jnp.mean(x, axis=-1, keepdims=True)
    xc = x - mu
    var = jnp.mean(xc * xc, axis=-1, keepdims=True)
    return xc * jax.lax.rsqrt(var + eps) * g + b


# ---------------------------------------------------------------------------
# Fused ViT kernel.  Grid = (batch_blocks ["parallel"], layers ["arbitrary"]);
# activations live in a per-batch-block VMEM scratch across the layer axis.
# ---------------------------------------------------------------------------

def _vit_kernel(xp_ref, wp_ref, bp_ref, cls_ref, pos_ref, vec_ref,
                wqkv_ref, wo_ref, w1_ref, w2_ref, wcls_ref, bcls_ref,
                out_ref, acc_ref, *, num_heads, bb, seq, seq_pad):
    l = pl.program_id(1)
    S, Sp, H = seq, seq_pad, num_heads
    D = wqkv_ref.shape[1]
    dh = D // H
    mlp = w1_ref.shape[2]
    Rb = bb * Sp                      # rows per batch block (batch folded)
    scale = 1.0 / math.sqrt(dh)

    # ---- prologue (layer 0): patch-embed matmul + class token + pos enc ----
    @pl.when(l == 0)
    def _():
        # Conv2d(kernel=stride=patch) == one bf16 matmul over flattened patches.
        tokens = (jnp.dot(xp_ref[...].astype(jnp.bfloat16), wp_ref[...],
                          preferred_element_type=jnp.float32)
                  + bp_ref[...])                                   # (bb*P, D) f32
        tok3 = tokens.reshape(bb, S - 1, D)
        pad = jnp.zeros((bb, Sp - S, D), jnp.float32)
        # Single aligned full-slab store; pos_embed is pre-padded to Sp rows.
        x0 = jnp.concatenate([cls_ref[...], tok3, pad], axis=1)    # (bb, Sp, D)
        acc_ref[...] = x0 + pos_ref[...]

    # ---- per-layer small vectors (packed into one lane-dense block) ----
    vec = vec_ref[0]                                               # (8, Wpad) f32
    ln1_g, ln1_b = vec[0:1, :D], vec[1:2, :D]
    b_qkv = vec[2:3, :3 * D]
    b_o = vec[3:4, :D]
    ln2_g, ln2_b = vec[4:5, :D], vec[5:6, :D]
    b1 = vec[6:7, :mlp]
    b2 = vec[7:8, :D]

    x = acc_ref[...].reshape(Rb, D)                                # f32 residual

    # ---- multi-head self-attention (pre-norm) ----
    h = _layernorm(x, ln1_g, ln1_b)
    qkv = (jnp.dot(h.astype(jnp.bfloat16), wqkv_ref[0],
                   preferred_element_type=jnp.float32) + b_qkv).astype(jnp.bfloat16)
    q, k, v = qkv[:, :D], qkv[:, D:2 * D], qkv[:, 2 * D:]

    def split_heads(t):
        # (Rb, D) -> (H*bb, Sp, dh); Sp is a multiple of 16 so the reshapes stay
        # tile-aligned.  At production dims (dh=64, S a multiple of 128) this
        # per-head slice/concat should become a single head-major relayout
        # (pltpu.einshape); at dh=8 attention is MXU-underfilled regardless.
        return jnp.concatenate(
            [t[:, hd * dh:(hd + 1) * dh].reshape(bb, Sp, dh) for hd in range(H)],
            axis=0)

    qh, kh, vh = split_heads(q), split_heads(k), split_heads(v)

    # Heads-batched score / output contractions (bf16 in, f32 accumulate).
    s = jnp.einsum("nqd,nkd->nqk", qh, kh,
                   preferred_element_type=jnp.float32) * scale
    key_valid = jax.lax.broadcasted_iota(jnp.int32, (1, 1, Sp), 2) < S
    s = jnp.where(key_valid, s, -1e30)                 # mask padded key positions
    s = s - jnp.max(s, axis=-1, keepdims=True)
    p = jnp.exp(s)
    p = p * pl.reciprocal(jnp.sum(p, axis=-1, keepdims=True), approx=True)
    o = jnp.einsum("nqk,nkd->nqd", p.astype(jnp.bfloat16), vh,
                   preferred_element_type=jnp.float32)

    attn = jnp.concatenate(
        [o[hd * bb:(hd + 1) * bb].reshape(Rb, dh) for hd in range(H)], axis=-1)
    attn = (jnp.dot(attn.astype(jnp.bfloat16), wo_ref[0],
                    preferred_element_type=jnp.float32) + b_o)
    x = x + attn

    # ---- MLP block ----
    h2 = _layernorm(x, ln2_g, ln2_b)
    m = jnp.dot(h2.astype(jnp.bfloat16), w1_ref[0],
                preferred_element_type=jnp.float32) + b1
    # TODO(synk): PyTorch nn.GELU default is exact erf-GELU; tanh approximation used here.
    m = jax.nn.gelu(m, approximate=True)
    m = jnp.dot(m.astype(jnp.bfloat16), w2_ref[0],
                preferred_element_type=jnp.float32) + b2
    x = x + m

    acc_ref[...] = x.reshape(bb, Sp, D)

    # ---- epilogue (last layer): classifier on the class token ----
    @pl.when(l == pl.num_programs(1) - 1)
    def _():
        cls_tok = acc_ref[:, 0:1, :].reshape(bb, D)
        # Lane-dense (bb, 128) padded logits; extra columns are exact zeros.
        out_ref[...] = (jnp.dot(cls_tok.astype(jnp.bfloat16), wcls_ref[...],
                                preferred_element_type=jnp.float32)
                        + bcls_ref[...])


# ---------------------------------------------------------------------------
# Parameter init (deterministic, synthetic) + forward glue
# ---------------------------------------------------------------------------

def init_vit_params(key, *, in_channels, patch_size, embedding_dim, num_patches,
                    num_heads, mlp_hidden, num_layers, num_classes, batch_size):
    D = embedding_dim
    pdim = in_channels * patch_size * patch_size
    L = num_layers
    S = num_patches + 1
    Sp = _round_up(S, 16)                      # bf16 sublane packing (covers f32's 8)
    lane_pad = _round_up(num_classes, 128)
    vec_w = _round_up(max(3 * D, mlp_hidden, D), 128)

    keys = jax.random.split(key, 8)

    def winit(k, shape, scale=0.02, dtype=jnp.bfloat16):
        return (scale * jax.random.normal(k, shape)).astype(dtype)

    # Classifier padded to a lane-dense 128-wide output (zeros past num_classes).
    w_cls = 0.02 * jax.random.normal(keys[3], (D, num_classes))
    w_cls_pad = (jnp.zeros((D, lane_pad), jnp.float32)
                 .at[:, :num_classes].set(w_cls).astype(jnp.bfloat16))
    b_cls_pad = jnp.zeros((1, lane_pad), jnp.float32)

    # Positional encoding pre-padded to Sp rows (zeros in pad rows).
    pos = 0.02 * jax.random.normal(keys[2], (1, S, D))
    pos_pad = jnp.zeros((1, Sp, D), jnp.float32).at[:, :S, :].set(pos)

    # Packed per-layer vectors, rows: [ln1_g, ln1_b, b_qkv, b_o, ln2_g, ln2_b, b1, b2].
    vecs = jnp.zeros((L, 8, vec_w), jnp.float32)
    vecs = vecs.at[:, 0, :D].set(1.0)          # ln1 gamma
    vecs = vecs.at[:, 4, :D].set(1.0)          # ln2 gamma
    # (biases and LN betas initialised to zero)

    return {
        "w_patch": winit(keys[0], (pdim, D)),                       # Conv2d as matmul (bf16)
        "b_patch": jnp.zeros((1, D), jnp.float32),
        "cls_token": winit(keys[1], (batch_size, 1, D), 1.0, jnp.float32),
        "pos_embed": pos_pad,                                       # (1, Sp, D) f32
        "w_cls": w_cls_pad,                                         # (D, lane_pad) bf16
        "b_cls": b_cls_pad,
        "layer_vecs": vecs,                                         # (L, 8, vec_w) f32
        # Per-layer matmul weights stacked along a leading layer axis, bf16.
        "w_qkv": winit(keys[4], (L, D, 3 * D)),
        "w_o": winit(keys[5], (L, D, D)),
        "w1": winit(keys[6], (L, D, mlp_hidden)),
        "w2": winit(keys[7], (L, mlp_hidden, D)),
    }


def vit_forward(x, params, *, patch_size, num_heads, num_classes):
    B, C, Himg, Wimg = x.shape                 # NCHW, matching PyTorch
    gh, gw = Himg // patch_size, Wimg // patch_size
    P = gh * gw
    D = params["w_patch"].shape[1]
    S = P + 1
    Sp = params["pos_embed"].shape[1]
    L = params["w_qkv"].shape[0]
    lane_pad = params["w_cls"].shape[1]
    pdim = params["w_patch"].shape[0]

    # PatchEmbedding input: flatten non-overlapping patches (exact Conv2d equiv).
    xp = x.reshape(B, C, gh, patch_size, gw, patch_size)
    xp = xp.transpose(0, 2, 4, 1, 3, 5).reshape(B * P, pdim)

    # Batch row-blocks: leading "parallel" grid axis (v7x megacore).  Block rows
    # must be a multiple of 8 (or the full batch) for the output tile rule, so
    # the axis only splits once batch is a multiple of 16; at larger batch nb
    # can be raised further to amortise per-layer weight DMA per core.
    nb = 2 if (B % 16 == 0) else 1
    bb = B // nb

    blocks = []                                 # (block_shape, dtype) for VMEM budget

    def spec(a, block_shape, index_map):
        blocks.append((block_shape, a.dtype))
        return pl.BlockSpec(block_shape, index_map)

    def whole(a):
        # TODO(synk): at production sizes, demote prologue/epilogue-only inputs
        # (xp, w_patch, cls, pos, w_cls) to memory_space=pl.ANY + manual DMA so
        # they do not stay VMEM-resident for all layers; trivial at this size.
        nd = a.ndim
        return spec(a, a.shape, lambda b, l, nd=nd: (0,) * nd)

    def per_layer(a):
        # NOTE: at production dims (D=768, H=3072) w1/w2 should additionally be
        # tiled along the mlp dim to fit v7x's 64 MiB VMEM; bf16 + this config
        # fits comfortably as-is.
        nd = a.ndim
        return spec(a, (1,) + a.shape[1:], lambda b, l: (l,) + (0,) * (nd - 1))

    xp_spec = spec(xp, (bb * P, pdim), lambda b, l: (b, 0))
    cls_spec = spec(params["cls_token"], (bb, 1, D), lambda b, l: (b, 0, 0))

    in_specs = [xp_spec, whole(params["w_patch"]), whole(params["b_patch"]),
                cls_spec, whole(params["pos_embed"]),
                per_layer(params["layer_vecs"]),
                per_layer(params["w_qkv"]), per_layer(params["w_o"]),
                per_layer(params["w1"]), per_layer(params["w2"]),
                whole(params["w_cls"]), whole(params["b_cls"])]

    out_block = (bb, lane_pad)
    blocks.append((out_block, jnp.dtype(jnp.float32)))

    # Explicit VMEM budget: double-buffered blocks + accumulator + headroom,
    # capped at 64 MiB so the same budget also holds on v7x.
    def nbytes(shape, dtype):
        n = 1
        for d in shape:
            n *= int(d)
        return n * jnp.dtype(dtype).itemsize

    block_bytes = sum(nbytes(s, d) for s, d in blocks)
    acc_bytes = nbytes((bb, Sp, D), jnp.float32)
    vmem_limit = int(min(64 << 20, 2 * block_bytes + acc_bytes + (16 << 20)))

    kern = functools.partial(_vit_kernel, num_heads=num_heads, bb=bb,
                             seq=S, seq_pad=Sp)

    logits_pad = pl.pallas_call(
        kern,
        out_shape=jax.ShapeDtypeStruct((B, lane_pad), jnp.float32),
        grid=(nb, L),
        in_specs=in_specs,
        out_specs=pl.BlockSpec(out_block, lambda b, l: (b, 0)),
        scratch_shapes=[pltpu.VMEM((bb, Sp, D), jnp.float32)],
        compiler_params=pltpu.CompilerParams(
            dimension_semantics=("parallel", "arbitrary"),
            vmem_limit_bytes=vmem_limit),
    )(xp, params["w_patch"], params["b_patch"], params["cls_token"],
      params["pos_embed"], params["layer_vecs"], params["w_qkv"], params["w_o"],
      params["w1"], params["w2"], params["w_cls"], params["b_cls"])

    return logits_pad[:, :num_classes]


if __name__ == "__main__":
    batch_size, in_channels, img, patch_size = 2, 4, 16, 4
    embedding_dim, num_heads, mlp_hidden = 32, 4, 64
    num_layers, num_classes = 2, 10
    num_patches = (img // patch_size) ** 2      # 16 -> seq len 17 with cls token

    key = jax.random.PRNGKey(0)
    kx, kp = jax.random.split(key)
    x = jax.random.normal(kx, (batch_size, in_channels, img, img), dtype=jnp.float32)

    params = init_vit_params(
        kp, in_channels=in_channels, patch_size=patch_size,
        embedding_dim=embedding_dim, num_patches=num_patches,
        num_heads=num_heads, mlp_hidden=mlp_hidden, num_layers=num_layers,
        num_classes=num_classes, batch_size=batch_size)

    logits = vit_forward(x, params, patch_size=patch_size, num_heads=num_heads,
                         num_classes=num_classes)
    jax.block_until_ready(logits)
    assert logits.shape == (batch_size, num_classes) and logits.dtype == jnp.float32
    print("KERNEL_OK")
</pallas_src>

<mosaic_0001>
module attributes {stable_mosaic.version = 11 : i64} {
  func.func @_vit_kernel(%arg0: i32, %arg1: i32, %arg2: memref<32x64xf32, #tpu.memory_space<vmem>>, %arg3: memref<64x32xbf16, #tpu.memory_space<vmem>>, %arg4: memref<1x32xf32, #tpu.memory_space<vmem>>, %arg5: memref<2x1x32xf32, #tpu.memory_space<vmem>>, %arg6: memref<1x32x32xf32, #tpu.memory_space<vmem>>, %arg7: memref<1x8x128xf32, #tpu.memory_space<vmem>>, %arg8: memref<1x32x96xbf16, #tpu.memory_space<vmem>>, %arg9: memref<1x32x32xbf16, #tpu.memory_space<vmem>>, %arg10: memref<1x32x64xbf16, #tpu.memory_space<vmem>>, %arg11: memref<1x64x32xbf16, #tpu.memory_space<vmem>>, %arg12: memref<32x128xbf16, #tpu.memory_space<vmem>>, %arg13: memref<1x128xf32, #tpu.memory_space<vmem>>, %arg14: memref<2x128xf32, #tpu.memory_space<vmem>>, %arg15: memref<2x32x32xf32, #tpu.memory_space<vmem>>) attributes {dimension_semantics = [#tpu.dimension_semantics<parallel>, #tpu.dimension_semantics<arbitrary>], iteration_bounds = array<i64: 1, 2>, scalar_prefetch = 0 : i64, scratch_operands = 1 : i64, tpu.core_type = #tpu.core_type<tc>, window_params = [{transform_indices = @transform_0, window_bounds = array<i64: 32, 64>}, {pipeline_mode = #tpu.pipeline_mode<synchronous>, transform_indices = @transform_1, window_bounds = array<i64: 64, 32>}, {pipeline_mode = #tpu.pipeline_mode<synchronous>, transform_indices = @transform_2, window_bounds = array<i64: 1, 32>}, {transform_indices = @transform_3, window_bounds = array<i64: 2, 1, 32>}, {pipeline_mode = #tpu.pipeline_mode<synchronous>, transform_indices = @transform_4, window_bounds = array<i64: 1, 32, 32>}, {transform_indices = @transform_5, window_bounds = array<i64: 1, 8, 128>}, {transform_indices = @transform_6, window_bounds = array<i64: 1, 32, 96>}, {transform_indices = @transform_7, window_bounds = array<i64: 1, 32, 32>}, {transform_indices = @transform_8, window_bounds = array<i64: 1, 32, 64>}, {transform_indices = @transform_9, window_bounds = array<i64: 1, 64, 32>}, {pipeline_mode = #tpu.pipeline_mode<synchronous>, transform_indices = @transform_10, window_bounds = array<i64: 32, 128>}, {pipeline_mode = #tpu.pipeline_mode<synchronous>, transform_indices = @transform_11, window_bounds = array<i64: 1, 128>}, {transform_indices = @transform_12, window_bounds = array<i64: 2, 128>}]} {
    %c0_i32 = arith.constant 0 : i32
    %0 = arith.cmpi eq, %arg1, %c0_i32 : i32
    %1 = arith.extui %0 : i1 to i32
    %c0_i32_0 = arith.constant 0 : i32
    %2 = arith.cmpi ne, %1, %c0_i32_0 : i32
    scf.if %2 {
      %c0_45 = arith.constant 0 : index
      %c0_46 = arith.constant 0 : index
      %161 = vector.load %arg2[%c0_45, %c0_46] : memref<32x64xf32, #tpu.memory_space<vmem>>, vector<32x64xf32>
      %162 = arith.truncf %161 : vector<32x64xf32> to vector<32x64xbf16>
      %c0_47 = arith.constant 0 : index
      %c0_48 = arith.constant 0 : index
      %163 = vector.load %arg3[%c0_47, %c0_48] : memref<64x32xbf16, #tpu.memory_space<vmem>>, vector<64x32xbf16>
      %cst_49 = arith.constant dense<0.000000e+00> : vector<32x32xf32>
      %164 = tpu.matmul %162, %163, %cst_49 {dimension_numbers = #tpu.dot_dimension_numbers<[1], [0], [0], [1], [0, 0, 1, 1], [], []>} : vector<32x64xbf16>, vector<64x32xbf16>, vector<32x32xf32> -> vector<32x32xf32>
      %c0_50 = arith.constant 0 : index
      %c0_51 = arith.constant 0 : index
      %165 = vector.load %arg4[%c0_50, %c0_51] : memref<1x32xf32, #tpu.memory_space<vmem>>, vector<1x32xf32>
      %166 = vector.broadcast %165 : vector<1x32xf32> to vector<32x32xf32>
      %167 = arith.addf %164, %166 : vector<32x32xf32>
      %168 = vector.shape_cast %167 : vector<32x32xf32> to vector<2x16x32xf32>
      %cst_52 = arith.constant 0.000000e+00 : f32
      %169 = vector.broadcast %cst_52 : f32 to vector<2x15x32xf32>
      %c0_53 = arith.constant 0 : index
      %c0_54 = arith.constant 0 : index
      %c0_55 = arith.constant 0 : index
      %170 = vector.load %arg5[%c0_53, %c0_54, %c0_55] : memref<2x1x32xf32, #tpu.memory_space<vmem>>, vector<2x1x32xf32>
      %171 = tpu.concatenate %170, %168, %169 in 1 : vector<2x1x32xf32>, vector<2x16x32xf32>, vector<2x15x32xf32> -> vector<2x32x32xf32>
      %c0_56 = arith.constant 0 : index
      %c0_57 = arith.constant 0 : index
      %c0_58 = arith.constant 0 : index
      %172 = vector.load %arg6[%c0_56, %c0_57, %c0_58] : memref<1x32x32xf32, #tpu.memory_space<vmem>>, vector<1x32x32xf32>
      %173 = vector.broadcast %172 : vector<1x32x32xf32> to vector<2x32x32xf32>
      %174 = arith.addf %171, %173 : vector<2x32x32xf32>
      %c0_59 = arith.constant 0 : index
      %c0_60 = arith.constant 0 : index
      %c0_61 = arith.constant 0 : index
      %175 = vector.load %arg15[%c0_59, %c0_60, %c0_61] : memref<2x32x32xf32, #tpu.memory_space<vmem>>, vector<2x32x32xf32>
      tpu.vector_store %arg15[%c0_59, %c0_60, %c0_61], %174 {strides = array<i32>} : memref<2x32x32xf32, #tpu.memory_space<vmem>>, vector<2x32x32xf32>,
    } else {
    }
    %c0 = arith.constant 0 : index
    %c0_1 = arith.constant 0 : index
    %c0_2 = arith.constant 0 : index
    %3 = vector.load %arg7[%c0, %c0_1, %c0_2] : memref<1x8x128xf32, #tpu.memory_space<vmem>>, vector<1x8x128xf32>
    %4 = vector.shape_cast %3 : vector<1x8x128xf32> to vector<8x128xf32>
    %5 = vector.extract_strided_slice %4 {offsets = [0, 0], sizes = [1, 32], strides = [1, 1]} : vector<8x128xf32> to vector<1x32xf32>
    %6 = vector.extract_strided_slice %4 {offsets = [1, 0], sizes = [1, 32], strides = [1, 1]} : vector<8x128xf32> to vector<1x32xf32>
    %7 = vector.extract_strided_slice %4 {offsets = [2, 0], sizes = [1, 96], strides = [1, 1]} : vector<8x128xf32> to vector<1x96xf32>
    %8 = vector.extract_strided_slice %4 {offsets = [3, 0], sizes = [1, 32], strides = [1, 1]} : vector<8x128xf32> to vector<1x32xf32>
    %9 = vector.extract_strided_slice %4 {offsets = [4, 0], sizes = [1, 32], strides = [1, 1]} : vector<8x128xf32> to vector<1x32xf32>
    %10 = vector.extract_strided_slice %4 {offsets = [5, 0], sizes = [1, 32], strides = [1, 1]} : vector<8x128xf32> to vector<1x32xf32>
    %11 = vector.extract_strided_slice %4 {offsets = [6, 0], sizes = [1, 64], strides = [1, 1]} : vector<8x128xf32> to vector<1x64xf32>
    %12 = vector.extract_strided_slice %4 {offsets = [7, 0], sizes = [1, 32], strides = [1, 1]} : vector<8x128xf32> to vector<1x32xf32>
    %c0_3 = arith.constant 0 : index
    %c0_4 = arith.constant 0 : index
    %c0_5 = arith.constant 0 : index
    %13 = vector.load %arg15[%c0_3, %c0_4, %c0_5] : memref<2x32x32xf32, #tpu.memory_space<vmem>>, vector<2x32x32xf32>
    %14 = vector.shape_cast %13 : vector<2x32x32xf32> to vector<64x32xf32>
    %cst = arith.constant dense<0.000000e+00> : vector<64xf32>
    %15 = vector.multi_reduction <add>, %14, %cst [1] : vector<64x32xf32> to vector<64xf32>
    %16 = vector.shape_cast %15 : vector<64xf32> to vector<64x1xf32>
    %cst_6 = arith.constant 3.200000e+01 : f32
    %17 = vector.broadcast %cst_6 : f32 to vector<64x1xf32>
    %18 = arith.divf %16, %17 : vector<64x1xf32>
    %19 = vector.broadcast %18 : vector<64x1xf32> to vector<64x32xf32>
    %20 = arith.subf %14, %19 : vector<64x32xf32>
    %21 = arith.mulf %20, %20 : vector<64x32xf32>
    %cst_7 = arith.constant dense<0.000000e+00> : vector<64xf32>
    %22 = vector.multi_reduction <add>, %21, %cst_7 [1] : vector<64x32xf32> to vector<64xf32>
    %23 = vector.shape_cast %22 : vector<64xf32> to vector<64x1xf32>
    %cst_8 = arith.constant 3.200000e+01 : f32
    %24 = vector.broadcast %cst_8 : f32 to vector<64x1xf32>
    %25 = arith.divf %23, %24 : vector<64x1xf32>
    %cst_9 = arith.constant 9.99999974E-6 : f32
    %26 = vector.broadcast %cst_9 : f32 to vector<64x1xf32>
    %27 = arith.addf %25, %26 : vector<64x1xf32>
    %28 = math.rsqrt %27 : vector<64x1xf32>
    %29 = vector.broadcast %28 : vector<64x1xf32> to vector<64x32xf32>
    %30 = arith.mulf %20, %29 : vector<64x32xf32>
    %31 = vector.broadcast %5 : vector<1x32xf32> to vector<64x32xf32>
    %32 = arith.mulf %30, %31 : vector<64x32xf32>
    %33 = vector.broadcast %6 : vector<1x32xf32> to vector<64x32xf32>
    %34 = arith.addf %32, %33 : vector<64x32xf32>
    %35 = arith.truncf %34 : vector<64x32xf32> to vector<64x32xbf16>
    %c0_10 = arith.constant 0 : index
    %c0_11 = arith.constant 0 : index
    %c0_12 = arith.constant 0 : index
    %36 = vector.load %arg8[%c0_10, %c0_11, %c0_12] : memref<1x32x96xbf16, #tpu.memory_space<vmem>>, vector<1x32x96xbf16>
    %37 = vector.shape_cast %36 : vector<1x32x96xbf16> to vector<32x96xbf16>
    %cst_13 = arith.constant dense<0.000000e+00> : vector<64x96xf32>
    %38 = tpu.matmul %35, %37, %cst_13 {dimension_numbers = #tpu.dot_dimension_numbers<[1], [0], [0], [1], [0, 0, 1, 1], [], []>} : vector<64x32xbf16>, vector<32x96xbf16>, vector<64x96xf32> -> vector<64x96xf32>
    %39 = vector.broadcast %7 : vector<1x96xf32> to vector<64x96xf32>
    %40 = arith.addf %38, %39 : vector<64x96xf32>
    %41 = arith.truncf %40 : vector<64x96xf32> to vector<64x96xbf16>
    %42 = vector.extract_strided_slice %41 {offsets = [0, 0], sizes = [64, 32], strides = [1, 1]} : vector<64x96xbf16> to vector<64x32xbf16>
    %43 = vector.extract_strided_slice %41 {offsets = [0, 32], sizes = [64, 32], strides = [1, 1]} : vector<64x96xbf16> to vector<64x32xbf16>
    %44 = vector.extract_strided_slice %41 {offsets = [0, 64], sizes = [64, 32], strides = [1, 1]} : vector<64x96xbf16> to vector<64x32xbf16>
    %45 = vector.extract_strided_slice %42 {offsets = [0, 0], sizes = [64, 8], strides = [1, 1]} : vector<64x32xbf16> to vector<64x8xbf16>
    %46 = vector.shape_cast %45 : vector<64x8xbf16> to vector<2x32x8xbf16>
    %47 = vector.extract_strided_slice %42 {offsets = [0, 8], sizes = [64, 8], strides = [1, 1]} : vector<64x32xbf16> to vector<64x8xbf16>
    %48 = vector.shape_cast %47 : vector<64x8xbf16> to vector<2x32x8xbf16>
    %49 = vector.extract_strided_slice %42 {offsets = [0, 16], sizes = [64, 8], strides = [1, 1]} : vector<64x32xbf16> to vector<64x8xbf16>
    %50 = vector.shape_cast %49 : vector<64x8xbf16> to vector<2x32x8xbf16>
    %51 = vector.extract_strided_slice %42 {offsets = [0, 24], sizes = [64, 8], strides = [1, 1]} : vector<64x32xbf16> to vector<64x8xbf16>
    %52 = vector.shape_cast %51 : vector<64x8xbf16> to vector<2x32x8xbf16>
    %53 = tpu.concatenate %46, %48, %50, %52 in 0 : vector<2x32x8xbf16>, vector<2x32x8xbf16>, vector<2x32x8xbf16>, vector<2x32x8xbf16> -> vector<8x32x8xbf16>
    %54 = vector.extract_strided_slice %43 {offsets = [0, 0], sizes = [64, 8], strides = [1, 1]} : vector<64x32xbf16> to vector<64x8xbf16>
    %55 = vector.shape_cast %54 : vector<64x8xbf16> to vector<2x32x8xbf16>
    %56 = vector.extract_strided_slice %43 {offsets = [0, 8], sizes = [64, 8], strides = [1, 1]} : vector<64x32xbf16> to vector<64x8xbf16>
    %57 = vector.shape_cast %56 : vector<64x8xbf16> to vector<2x32x8xbf16>
    %58 = vector.extract_strided_slice %43 {offsets = [0, 16], sizes = [64, 8], strides = [1, 1]} : vector<64x32xbf16> to vector<64x8xbf16>
    %59 = vector.shape_cast %58 : vector<64x8xbf16> to vector<2x32x8xbf16>
    %60 = vector.extract_strided_slice %43 {offsets = [0, 24], sizes = [64, 8], strides = [1, 1]} : vector<64x32xbf16> to vector<64x8xbf16>
    %61 = vector.shape_cast %60 : vector<64x8xbf16> to vector<2x32x8xbf16>
    %62 = tpu.concatenate %55, %57, %59, %61 in 0 : vector<2x32x8xbf16>, vector<2x32x8xbf16>, vector<2x32x8xbf16>, vector<2x32x8xbf16> -> vector<8x32x8xbf16>
    %63 = vector.extract_strided_slice %44 {offsets = [0, 0], sizes = [64, 8], strides = [1, 1]} : vector<64x32xbf16> to vector<64x8xbf16>
    %64 = vector.shape_cast %63 : vector<64x8xbf16> to vector<2x32x8xbf16>
    %65 = vector.extract_strided_slice %44 {offsets = [0, 8], sizes = [64, 8], strides = [1, 1]} : vector<64x32xbf16> to vector<64x8xbf16>
    %66 = vector.shape_cast %65 : vector<64x8xbf16> to vector<2x32x8xbf16>
    %67 = vector.extract_strided_slice %44 {offsets = [0, 16], sizes = [64, 8], strides = [1, 1]} : vector<64x32xbf16> to vector<64x8xbf16>
    %68 = vector.shape_cast %67 : vector<64x8xbf16> to vector<2x32x8xbf16>
    %69 = vector.extract_strided_slice %44 {offsets = [0, 24], sizes = [64, 8], strides = [1, 1]} : vector<64x32xbf16> to vector<64x8xbf16>
    %70 = vector.shape_cast %69 : vector<64x8xbf16> to vector<2x32x8xbf16>
    %71 = tpu.concatenate %64, %66, %68, %70 in 0 : vector<2x32x8xbf16>, vector<2x32x8xbf16>, vector<2x32x8xbf16>, vector<2x32x8xbf16> -> vector<8x32x8xbf16>
    "tpu.trace_start"() <{level = 10 : i32, message = "nqd,nkd->nqk"}> : () -> ()
    %cst_14 = arith.constant dense<0.000000e+00> : vector<8x32x32xf32>
    %72 = tpu.matmul %53, %62, %cst_14 {dimension_numbers = #tpu.dot_dimension_numbers<[2], [2], [1], [1], [0, 0, 0, 1, 1, 1], [0], [0]>} : vector<8x32x8xbf16>, vector<8x32x8xbf16>, vector<8x32x32xf32> -> vector<8x32x32xf32>
    "tpu.trace_stop"() : () -> ()
    %cst_15 = arith.constant 0.353553385 : f32
    %73 = vector.broadcast %cst_15 : f32 to vector<8x32x32xf32>
    %74 = arith.mulf %72, %73 : vector<8x32x32xf32>
    %75 = tpu.iota {dimensions = array<i32: 2>} : vector<1x1x32xi32>
    %c17_i32 = arith.constant 17 : i32
    %76 = vector.broadcast %c17_i32 : i32 to vector<1x1x32xi32>
    %77 = arith.cmpi slt, %75, %76 : vector<1x1x32xi32>
    %cst_16 = arith.constant -1.000000e+30 : f32
    %78 = vector.shape_cast %77 : vector<1x1x32xi1> to vector<1x1x32xi1>
    %79 = vector.broadcast %78 : vector<1x1x32xi1> to vector<8x32x32xi1>
    %80 = vector.broadcast %cst_16 : f32 to vector<8x32x32xf32>
    %81 = arith.select %79, %74, %80 : vector<8x32x32xi1>, vector<8x32x32xf32>
    %cst_17 = arith.constant dense<0xFF800000> : vector<8x32xf32>
    %82 = vector.multi_reduction <maximumf>, %81, %cst_17 [2] : vector<8x32x32xf32> to vector<8x32xf32>
    %83 = vector.shape_cast %82 : vector<8x32xf32> to vector<8x32x1xf32>
    %84 = vector.broadcast %83 : vector<8x32x1xf32> to vector<8x32x32xf32>
    %85 = arith.subf %81, %84 : vector<8x32x32xf32>
    %86 = math.exp %85 : vector<8x32x32xf32>
    %cst_18 = arith.constant dense<0.000000e+00> : vector<8x32xf32>
    %87 = vector.multi_reduction <add>, %86, %cst_18 [2] : vector<8x32x32xf32> to vector<8x32xf32>
    %88 = vector.shape_cast %87 : vector<8x32xf32> to vector<8x32x1xf32>
    %89 = tpu.reciprocal %88 {approx = true} : vector<8x32x1xf32> -> vector<8x32x1xf32>
    %90 = vector.broadcast %89 : vector<8x32x1xf32> to vector<8x32x32xf32>
    %91 = arith.mulf %86, %90 : vector<8x32x32xf32>
    %92 = arith.truncf %91 : vector<8x32x32xf32> to vector<8x32x32xbf16>
    "tpu.trace_start"() <{level = 10 : i32, message = "nqk,nkd->nqd"}> : () -> ()
    %cst_19 = arith.constant dense<0.000000e+00> : vector<8x32x8xf32>
    %93 = tpu.matmul %92, %71, %cst_19 {dimension_numbers = #tpu.dot_dimension_numbers<[2], [1], [1], [2], [0, 0, 0, 1, 1, 2], [0], [0]>} : vector<8x32x32xbf16>, vector<8x32x8xbf16>, vector<8x32x8xf32> -> vector<8x32x8xf32>
    "tpu.trace_stop"() : () -> ()
    %94 = vector.extract_strided_slice %93 {offsets = [0, 0, 0], sizes = [2, 32, 8], strides = [1, 1, 1]} : vector<8x32x8xf32> to vector<2x32x8xf32>
    %95 = vector.shape_cast %94 : vector<2x32x8xf32> to vector<64x8xf32>
    %96 = vector.extract_strided_slice %93 {offsets = [2, 0, 0], sizes = [2, 32, 8], strides = [1, 1, 1]} : vector<8x32x8xf32> to vector<2x32x8xf32>
    %97 = vector.shape_cast %96 : vector<2x32x8xf32> to vector<64x8xf32>
    %98 = vector.extract_strided_slice %93 {offsets = [4, 0, 0], sizes = [2, 32, 8], strides = [1, 1, 1]} : vector<8x32x8xf32> to vector<2x32x8xf32>
    %99 = vector.shape_cast %98 : vector<2x32x8xf32> to vector<64x8xf32>
    %100 = vector.extract_strided_slice %93 {offsets = [6, 0, 0], sizes = [2, 32, 8], strides = [1, 1, 1]} : vector<8x32x8xf32> to vector<2x32x8xf32>
    %101 = vector.shape_cast %100 : vector<2x32x8xf32> to vector<64x8xf32>
    %102 = tpu.concatenate %95, %97, %99, %101 in 1 : vector<64x8xf32>, vector<64x8xf32>, vector<64x8xf32>, vector<64x8xf32> -> vector<64x32xf32>
    %103 = arith.truncf %102 : vector<64x32xf32> to vector<64x32xbf16>
    %c0_20 = arith.constant 0 : index
    %c0_21 = arith.constant 0 : index
    %c0_22 = arith.constant 0 : index
    %104 = vector.load %arg9[%c0_20, %c0_21, %c0_22] : memref<1x32x32xbf16, #tpu.memory_space<vmem>>, vector<1x32x32xbf16>
    %105 = vector.shape_cast %104 : vector<1x32x32xbf16> to vector<32x32xbf16>
    %cst_23 = arith.constant dense<0.000000e+00> : vector<64x32xf32>
    %106 = tpu.matmul %103, %105, %cst_23 {dimension_numbers = #tpu.dot_dimension_numbers<[1], [0], [0], [1], [0, 0, 1, 1], [], []>} : vector<64x32xbf16>, vector<32x32xbf16>, vector<64x32xf32> -> vector<64x32xf32>
    %107 = vector.broadcast %8 : vector<1x32xf32> to vector<64x32xf32>
    %108 = arith.addf %106, %107 : vector<64x32xf32>
    %109 = arith.addf %14, %108 : vector<64x32xf32>
    %cst_24 = arith.constant dense<0.000000e+00> : vector<64xf32>
    %110 = vector.multi_reduction <add>, %109, %cst_24 [1] : vector<64x32xf32> to vector<64xf32>
    %111 = vector.shape_cast %110 : vector<64xf32> to vector<64x1xf32>
    %cst_25 = arith.constant 3.200000e+01 : f32
    %112 = vector.broadcast %cst_25 : f32 to vector<64x1xf32>
    %113 = arith.divf %111, %112 : vector<64x1xf32>
    %114 = vector.broadcast %113 : vector<64x1xf32> to vector<64x32xf32>
    %115 = arith.subf %109, %114 : vector<64x32xf32>
    %116 = arith.mulf %115, %115 : vector<64x32xf32>
    %cst_26 = arith.constant dense<0.000000e+00> : vector<64xf32>
    %117 = vector.multi_reduction <add>, %116, %cst_26 [1] : vector<64x32xf32> to vector<64xf32>
    %118 = vector.shape_cast %117 : vector<64xf32> to vector<64x1xf32>
    %cst_27 = arith.constant 3.200000e+01 : f32
    %119 = vector.broadcast %cst_27 : f32 to vector<64x1xf32>
    %120 = arith.divf %118, %119 : vector<64x1xf32>
    %cst_28 = arith.constant 9.99999974E-6 : f32
    %121 = vector.broadcast %cst_28 : f32 to vector<64x1xf32>
    %122 = arith.addf %120, %121 : vector<64x1xf32>
    %123 = math.rsqrt %122 : vector<64x1xf32>
    %124 = vector.broadcast %123 : vector<64x1xf32> to vector<64x32xf32>
    %125 = arith.mulf %115, %124 : vector<64x32xf32>
    %126 = vector.broadcast %9 : vector<1x32xf32> to vector<64x32xf32>
    %127 = arith.mulf %125, %126 : vector<64x32xf32>
    %128 = vector.broadcast %10 : vector<1x32xf32> to vector<64x32xf32>
    %129 = arith.addf %127, %128 : vector<64x32xf32>
    %130 = arith.truncf %129 : vector<64x32xf32> to vector<64x32xbf16>
    %c0_29 = arith.constant 0 : index
    %c0_30 = arith.constant 0 : index
    %c0_31 = arith.constant 0 : index
    %131 = vector.load %arg10[%c0_29, %c0_30, %c0_31] : memref<1x32x64xbf16, #tpu.memory_space<vmem>>, vector<1x32x64xbf16>
    %132 = vector.shape_cast %131 : vector<1x32x64xbf16> to vector<32x64xbf16>
    %cst_32 = arith.constant dense<0.000000e+00> : vector<64x64xf32>
    %133 = tpu.matmul %130, %132, %cst_32 {dimension_numbers = #tpu.dot_dimension_numbers<[1], [0], [0], [1], [0, 0, 1, 1], [], []>} : vector<64x32xbf16>, vector<32x64xbf16>, vector<64x64xf32> -> vector<64x64xf32>
    %134 = vector.broadcast %11 : vector<1x64xf32> to vector<64x64xf32>
    %135 = arith.addf %133, %134 : vector<64x64xf32>
    %136 = arith.mulf %135, %135 : vector<64x64xf32>
    %137 = arith.mulf %135, %136 : vector<64x64xf32>
    %cst_33 = arith.constant 4.471500e-02 : f32
    %138 = vector.broadcast %cst_33 : f32 to vector<64x64xf32>
    %139 = arith.mulf %138, %137 : vector<64x64xf32>
    %140 = arith.addf %135, %139 : vector<64x64xf32>
    %cst_34 = arith.constant 0.797884583 : f32
    %141 = vector.broadcast %cst_34 : f32 to vector<64x64xf32>
    %142 = arith.mulf %141, %140 : vector<64x64xf32>
    %143 = math.tanh %142 : vector<64x64xf32>
    %cst_35 = arith.constant 1.000000e+00 : f32
    %144 = vector.broadcast %cst_35 : f32 to vector<64x64xf32>
    %145 = arith.addf %144, %143 : vector<64x64xf32>
    %cst_36 = arith.constant 5.000000e-01 : f32
    %146 = vector.broadcast %cst_36 : f32 to vector<64x64xf32>
    %147 = arith.mulf %146, %145 : vector<64x64xf32>
    %148 = arith.mulf %135, %147 : vector<64x64xf32>
    %149 = arith.truncf %148 : vector<64x64xf32> to vector<64x64xbf16>
    %c0_37 = arith.constant 0 : index
    %c0_38 = arith.constant 0 : index
    %c0_39 = arith.constant 0 : index
    %150 = vector.load %arg11[%c0_37, %c0_38, %c0_39] : memref<1x64x32xbf16, #tpu.memory_space<vmem>>, vector<1x64x32xbf16>
    %151 = vector.shape_cast %150 : vector<1x64x32xbf16> to vector<64x32xbf16>
    %cst_40 = arith.constant dense<0.000000e+00> : vector<64x32xf32>
    %152 = tpu.matmul %149, %151, %cst_40 {dimension_numbers = #tpu.dot_dimension_numbers<[1], [0], [0], [1], [0, 0, 1, 1], [], []>} : vector<64x64xbf16>, vector<64x32xbf16>, vector<64x32xf32> -> vector<64x32xf32>
    %153 = vector.broadcast %12 : vector<1x32xf32> to vector<64x32xf32>
    %154 = arith.addf %152, %153 : vector<64x32xf32>
    %155 = arith.addf %109, %154 : vector<64x32xf32>
    %156 = vector.shape_cast %155 : vector<64x32xf32> to vector<2x32x32xf32>
    %c0_41 = arith.constant 0 : index
    %c0_42 = arith.constant 0 : index
    %c0_43 = arith.constant 0 : index
    %157 = vector.load %arg15[%c0_41, %c0_42, %c0_43] : memref<2x32x32xf32, #tpu.memory_space<vmem>>, vector<2x32x32xf32>
    tpu.vector_store %arg15[%c0_41, %c0_42, %c0_43], %156 {strides = array<i32>} : memref<2x32x32xf32, #tpu.memory_space<vmem>>, vector<2x32x32xf32>,
    %c1_i32 = arith.constant 1 : i32
    %158 = arith.cmpi eq, %arg1, %c1_i32 : i32
    %159 = arith.extui %158 : i1 to i32
    %c0_i32_44 = arith.constant 0 : i32
    %160 = arith.cmpi ne, %159, %c0_i32_44 : i32
    scf.if %160 {
      %c0_45 = arith.constant 0 : index
      %c0_46 = arith.constant 0 : index
      %c0_47 = arith.constant 0 : index
      %161 = vector.load %arg15[%c0_45, %c0_46, %c0_47] : memref<2x32x32xf32, #tpu.memory_space<vmem>>, vector<2x1x32xf32>
      %162 = vector.shape_cast %161 : vector<2x1x32xf32> to vector<2x32xf32>
      %163 = arith.truncf %162 : vector<2x32xf32> to vector<2x32xbf16>
      %c0_48 = arith.constant 0 : index
      %c0_49 = arith.constant 0 : index
      %164 = vector.load %arg12[%c0_48, %c0_49] : memref<32x128xbf16, #tpu.memory_space<vmem>>, vector<32x128xbf16>
      %cst_50 = arith.constant dense<0.000000e+00> : vector<2x128xf32>
      %165 = tpu.matmul %163, %164, %cst_50 {dimension_numbers = #tpu.dot_dimension_numbers<[1], [0], [0], [1], [0, 0, 1, 1], [], []>} : vector<2x32xbf16>, vector<32x128xbf16>, vector<2x128xf32> -> vector<2x128xf32>
      %c0_51 = arith.constant 0 : index
      %c0_52 = arith.constant 0 : index
      %166 = vector.load %arg13[%c0_51, %c0_52] : memref<1x128xf32, #tpu.memory_space<vmem>>, vector<1x128xf32>
      %167 = vector.broadcast %166 : vector<1x128xf32> to vector<2x128xf32>
      %168 = arith.addf %165, %167 : vector<2x128xf32>
      %c0_53 = arith.constant 0 : index
      %c0_54 = arith.constant 0 : index
      %169 = vector.load %arg14[%c0_53, %c0_54] : memref<2x128xf32, #tpu.memory_space<vmem>>, vector<2x128xf32>
      tpu.vector_store %arg14[%c0_53, %c0_54], %168 {strides = array<i32>} : memref<2x128xf32, #tpu.memory_space<vmem>>, vector<2x128xf32>,
    } else {
    }
    return
  }
  func.func @transform_0(%arg0: i32, %arg1: i32) -> (i32, i32) {
    %c0_i32 = arith.constant 0 : i32
    %c0_i32_0 = arith.constant 0 : i32
    return %arg0, %c0_i32 : i32, i32
  }
  func.func @transform_1(%arg0: i32, %arg1: i32) -> (i32, i32) {
    %c0_i32 = arith.constant 0 : i32
    %c0_i32_0 = arith.constant 0 : i32
    %c0_i32_1 = arith.constant 0 : i32
    return %c0_i32, %c0_i32_0 : i32, i32
  }
  func.func @transform_2(%arg0: i32, %arg1: i32) -> (i32, i32) {
    %c0_i32 = arith.constant 0 : i32
    %c0_i32_0 = arith.constant 0 : i32
    %c0_i32_1 = arith.constant 0 : i32
    return %c0_i32, %c0_i32_0 : i32, i32
  }
  func.func @transform_3(%arg0: i32, %arg1: i32) -> (i32, i32, i32) {
    %c0_i32 = arith.constant 0 : i32
    %c0_i32_0 = arith.constant 0 : i32
    %c0_i32_1 = arith.constant 0 : i32
    return %arg0, %c0_i32, %c0_i32_0 : i32, i32, i32
  }
  func.func @transform_4(%arg0: i32, %arg1: i32) -> (i32, i32, i32) {
    %c0_i32 = arith.constant 0 : i32
    %c0_i32_0 = arith.constant 0 : i32
    %c0_i32_1 = arith.constant 0 : i32
    %c0_i32_2 = arith.constant 0 : i32
    return %c0_i32, %c0_i32_0, %c0_i32_1 : i32, i32, i32
  }
  func.func @transform_5(%arg0: i32, %arg1: i32) -> (i32, i32, i32) {
    %c0_i32 = arith.constant 0 : i32
    %c0_i32_0 = arith.constant 0 : i32
    %c0_i32_1 = arith.constant 0 : i32
    return %arg1, %c0_i32, %c0_i32_0 : i32, i32, i32
  }
  func.func @transform_6(%arg0: i32, %arg1: i32) -> (i32, i32, i32) {
    %c0_i32 = arith.constant 0 : i32
    %c0_i32_0 = arith.constant 0 : i32
    %c0_i32_1 = arith.constant 0 : i32
    return %arg1, %c0_i32, %c0_i32_0 : i32, i32, i32
  }
  func.func @transform_7(%arg0: i32, %arg1: i32) -> (i32, i32, i32) {
    %c0_i32 = arith.constant 0 : i32
    %c0_i32_0 = arith.constant 0 : i32
    %c0_i32_1 = arith.constant 0 : i32
    return %arg1, %c0_i32, %c0_i32_0 : i32, i32, i32
  }
  func.func @transform_8(%arg0: i32, %arg1: i32) -> (i32, i32, i32) {
    %c0_i32 = arith.constant 0 : i32
    %c0_i32_0 = arith.constant 0 : i32
    %c0_i32_1 = arith.constant 0 : i32
    return %arg1, %c0_i32, %c0_i32_0 : i32, i32, i32
  }
  func.func @transform_9(%arg0: i32, %arg1: i32) -> (i32, i32, i32) {
    %c0_i32 = arith.constant 0 : i32
    %c0_i32_0 = arith.constant 0 : i32
    %c0_i32_1 = arith.constant 0 : i32
    return %arg1, %c0_i32, %c0_i32_0 : i32, i32, i32
  }
  func.func @transform_10(%arg0: i32, %arg1: i32) -> (i32, i32) {
    %c0_i32 = arith.constant 0 : i32
    %c0_i32_0 = arith.constant 0 : i32
    %c0_i32_1 = arith.constant 0 : i32
    return %c0_i32, %c0_i32_0 : i32, i32
  }
  func.func @transform_11(%arg0: i32, %arg1: i32) -> (i32, i32) {
    %c0_i32 = arith.constant 0 : i32
    %c0_i32_0 = arith.constant 0 : i32
    %c0_i32_1 = arith.constant 0 : i32
    return %c0_i32, %c0_i32_0 : i32, i32
  }
  func.func @transform_12(%arg0: i32, %arg1: i32) -> (i32, i32) {
    %c0_i32 = arith.constant 0 : i32
    %c0_i32_0 = arith.constant 0 : i32
    return %arg0, %c0_i32 : i32, i32
  }
}

</mosaic_0001>

<bundles_post_ra>
// kernel: tpu_custom_call.1
= control target key start
LH: loop header
LB: loop body
LE: loop exit
PB: predicated region body
PF: predicated region fallthrough
CT: control target
= control target key end

     0   :  { %s5605_s0 = inlined_call_operand.vmem [shape: f32[32,64], index: 0, kind: input, shape index: {}]   ;;  %s5606_s1 = inlined_call_operand.vmem [shape: bf16[64,32], index: 1, kind: input, shape index: {}]   ;;  %s5607_s2 = inlined_call_operand.hbm [shape: f32[1,32], index: 2, kind: input, shape index: {}]   ;;  %s5608_s3 = inlined_call_operand.vmem [shape: f32[2,1,32], index: 3, kind: input, shape index: {}]   ;;  %s5609_s4 = inlined_call_operand.vmem [shape: f32[1,32,32], index: 4, kind: input, shape index: {}]   ;;  %s5610_s5 = inlined_call_operand.hbm [shape: f32[2,8,128], index: 5, kind: input, shape index: {}]   ;;  %s5611_s6 = inlined_call_operand.vmem [shape: bf16[2,32,96], index: 6, kind: input, shape index: {}]   ;;  %s5612_s7 = inlined_call_operand.vmem [shape: bf16[2,32,32], index: 7, kind: input, shape index: {}]   ;;  %s5613_s8 = inlined_call_operand.hbm [shape: bf16[2,32,64], index: 8, kind: input, shape index: {}]   ;;  %s5614_s9 = inlined_call_operand.vmem [shape: bf16[2,64,32], index: 9, kind: input, shape index: {}]   ;;  %s5615_s10 = inlined_call_operand.vmem [shape: bf16[32,128], index: 10, kind: input, shape index: {}]   ;;  %s5616_s11 = inlined_call_operand.vmem [shape: f32[1,128], index: 11, kind: input, shape index: {}]   ;;  %s5617_s12 = inlined_call_operand.hbm [shape: f32[2,128], index: 12, kind: output, shape index: {}]  }
   0x1   :  { %5626 = sst [smem:[#allocation18_spill]] %s5610_s5 }
   0x2   :  { %5627 = sst [smem:[#allocation19_spill]] %s5613_s8 }
   0x3   :  { %5628 = sst [smem:[#allocation20_spill]] %s5617_s12 }
   0x4   :  { %17 = vsyncpa [#allocation4], 0 }
   0x5   :  { %18 = vsyncpa [#allocation7], 0 }
   0x6   :  { %20 = vsyncpa [#allocation7 + $0x1], 0 }
   0x7   :  { %21 = vsyncpa [#allocation5], 0  ;;  %s4387_s21 = smov 0   ;;  %s4389_s22 = smov 0  }
   0x8   :  { %s4391_s23 = smov 0   ;;  %s4393_s24 = smov 0  }
   0x9   :  { %s4395_s25 = smov 0   ;;  %s4397_s26 = smov 0  }
   0xa LB: > { %5629 = sst [smem:[#allocation13_spill]] %s4292_s23  ;;  %s36_s27 = sadd.s32 1, %s4300_s25  ;;  %s4304_s26 = sphi %s4397_s26, %s27_s26   ;;  %s4300_s25 = sphi %s4395_s25, %s5650_s25   ;;  %s4296_s24 = sphi %s4393_s24, %s5649_s24   ;;  %s4292_s23 = sphi %s4391_s23, %s5648_s23   ;;  %s4288_s22 = sphi %s4389_s22, %s5652_s22   ;;  %s4284_s21 = sphi %s4387_s21, %s5651_s21  }
   0xb   : > { %5630 = sst [smem:[#allocation14_spill]] %s4300_s25  ;;  %s161_s28 = sadd.s32 1, %s4292_s23 }
   0xc   : > { %5631 = sst [smem:[#allocation15_spill]] %s4304_s26  ;;  %p37_p0 = scmp.ge.s32.totalorder %s36_s27, 2 }
   0xd   : > { %p168_p1 = scmp.ne.s32.totalorder %s4292_s23, %s4288_s22  ;;  %p169_p2 = scmp.eq.s32.totalorder %s4304_s26, 0 }
   0xe   : > { %s5654_s27 = smov (%p37_p0, %s36_s27), 0  ;;  %p3805_p4 = scmp.lt.s32.totalorder %s4304_s26, 2 }
   0xf   : > { %5632 = sst [smem:[#allocation16_spill]] %s5654_s27  ;;  %p170_p3 = por %p169_p2, %p168_p1 }
  0x10   : > { %s158_s29 = ssub.s32 %s4300_s25, %s5654_s27  ;;  %s410_s30 = sand.u32 1, %s4304_s26  }
  0x11   : > { %p159_p5 = scmp.eq.s32.totalorder %s158_s29, 0  ;;  %s412_s13 = sand.u32 1, %s4292_s23  }
  0x12   : > { %s3373_s14 = sshll.u32 %s4300_s25, 7  ;;  %s3372_s16 = sshll.u32 %s412_s13, 3 }
  0x13   : > { %s4431_s15 = scalar_select %p159_p5, %s4292_s23, %s161_s28  }
  0x14   : > { %s5634_s5 = sld [smem:[#allocation18_spill]]  ;;  %p4438_p6 = pnand %p3805_p4, %p170_p3 }
  0x15   : > { %5633 = sst [smem:[#allocation17_spill]] %s4431_s15  ;;  %s414_s29 = scalar_lea.vmem [#allocation6], %s3372_s16 }
  0x16   : > { %s421_s27 = sshll.u32 %s414_s29, 4  ;;  %s4442_s28 = sshll.u32 %s412_s13, 4  ;;  %s4444_s27 = int_to_ptr.vmem [resolvable:$true] %s421_s27 }
  0x17   : > { %s4446_s15 = scalar_lea.sflag [#allocation7], %s410_s30  ;;  %p4134_p8 = pneg %p4438_p6 }
  0x1a   : > { %s4436_s19 = scalar_lea.hbm %s5634_s5, %s3373_s14  ;;  %s4137_s23 = scalar_lea.hbm %s5634_s5, 256 }
  0x1b   : > { %s4132_s14 = scalar_lea.hbm %s4436_s19, 128  ;;  %p4138_p11 = scmp.lt.u32.totalorder %s4436_s19, %s5634_s5 }
  0x1c   : > { %p4133_p7 = scmp.ne.s32.totalorder %s4436_s19, %s4132_s14  ;;  %p4139_p12 = scmp.lt.u32.totalorder %s4137_s23, %s4132_s14 }
  0x1d   : > { %p4141_p0 = scmp.lt.u32.totalorder %s4132_s14, %s4436_s19 }
  0x1e   : > { %p4135_p9 = pnand %p4134_p8, %p4133_p7  ;;  %p4140_p13 = por %p4139_p12, %p4138_p11 }
  0x20   : > { %p4136_p10 = pneg %p4135_p9  ;;  %p4142_p1 = por %p4141_p0, %p4140_p13 }
  0x22   : > { %p4143_p2 = pnand %p4142_p1, %p4136_p10 }
  0x24   : > { %4146 = shalt.err (!%p4143_p2)
}
  0x25   : > { %s4147_s30 = scalar_lea.vmem %s4444_s27, 128  ;;  %s4306_s13 = smov [#allocation6]  }
  0x26   : > { %p4148_p3 = scmp.ne.s32.totalorder %s4444_s27, %s4147_s30  ;;  %s4152_s17 = sshll.u32 %s4306_s13, 4  ;;  %s4153_s17 = int_to_ptr.vmem [resolvable:$false] %s4152_s17 }
  0x27   : > { %s4154_s18 = scalar_lea.vmem %s4153_s17, 256  ;;  %p4155_p7 = scmp.lt.s32.totalorder %s4444_s27, %s4153_s17 }
  0x28   : > { %p4150_p4 = pnand %p4148_p3, %p4134_p8  ;;  %p4156_p9 = scmp.lt.s32.totalorder %s4154_s18, %s4147_s30 }
  0x2a   : > { %p4151_p5 = pneg %p4150_p4  ;;  %p4157_p11 = por %p4156_p9, %p4155_p7 }
  0x2c   : > { %p4158_p12 = pnand %p4157_p11, %p4151_p5 }
  0x2e   : > { %4161 = shalt.err (!%p4158_p12)
}
  0x2f   : > { %3800 = dma.hbm_to_vmem [thread:$0]  (!%p4438_p6), %s4436_s19, 128, %s4444_s27, %s4446_s15  }
  0x30   : > { %s3462_s23 = sshll.u32 %s4300_s25, 8  ;;  %s448_s14 = scalar_lea.vmem [#allocation8], %s4442_s28 }
  0x31   : > { %s455_s16 = sshll.u32 %s448_s14, 4  ;;  %s4477_s29 = sadd.s32 4294967295, %s4304_s26   ;;  %s4490_s16 = int_to_ptr.vmem [resolvable:$true] %s455_s16 }
  0x32   : > { %p174_p10 = scmp.ne.s32.totalorder %s4288_s22, %s4284_s21  ;;  %p5620_p13 = scmp.eq.s32.totalorder %s4477_s29, 0 }
  0x33   : > { %p3367_p0 = scmp.ge.s32.totalorder %s4304_s26, 1  ;;  %p357_p1 = scmp.lt.s32.totalorder %s4304_s26, 3 }
  0x34   : > { %p4486_p2 = por %p5620_p13, %p174_p10  ;;  %s4307_s19 = smov [#allocation3]  }
  0x35   : > { %p4492_p3 = pnand %p3367_p0, %p357_p1  ;;  %s382_s28 = sshll.u32 %s4307_s19, 4  ;;  %s4503_s28 = int_to_ptr.vmem [resolvable:$true] %s382_s28 }
  0x36   : > { %s5636_s30 = scalar_select %p4486_p2, 1, 0 }
  0x37   : > { %s5637_s27 = scalar_select %p4492_p3, 1, 0 }
  0x38   : > { %s5638_s8 = sld [smem:[#allocation19_spill]]  ;;  %p3793_p4 = pneg %p4492_p3 }
  0x3a   : > { %p4507_p5 = pnand %p3793_p4, %p5620_p13 }
  0x3e   : > { %s4499_s21 = scalar_lea.hbm %s5638_s8, %s3462_s23  ;;  %s4167_s13 = scalar_lea.hbm %s5638_s8, 512 }
  0x3f   : > { %s4162_s14 = scalar_lea.hbm %s4499_s21, 256  ;;  %p4168_p12 = scmp.lt.u32.totalorder %s4499_s21, %s5638_s8 }
  0x40   : > { %p4163_p7 = scmp.ne.s32.totalorder %s4499_s21, %s4162_s14  ;;  %p4169_p10 = scmp.lt.u32.totalorder %s4167_s13, %s4162_s14 }
  0x41   : > { %p4171_p1 = scmp.lt.u32.totalorder %s4162_s14, %s4499_s21 }
  0x42   : > { %p4165_p9 = pnand %p4163_p7, %p4134_p8  ;;  %p4170_p0 = por %p4169_p10, %p4168_p12 }
  0x44   : > { %p4166_p11 = pneg %p4165_p9  ;;  %p4172_p4 = por %p4171_p1, %p4170_p0 }
  0x46   : > { %p4173_p13 = pnand %p4172_p4, %p4166_p11 }
  0x48   : > { %4176 = shalt.err (!%p4173_p13)
}
  0x49   : > { %s4177_s25 = scalar_lea.vmem %s4490_s16, 256  ;;  %s4308_s23 = smov [#allocation8]  }
  0x4a   : > { %p4178_p7 = scmp.ne.s32.totalorder %s4490_s16, %s4177_s25  ;;  %s4182_s19 = sshll.u32 %s4308_s23, 4  ;;  %s4183_s19 = int_to_ptr.vmem [resolvable:$false] %s4182_s19 }
  0x4b   : > { %s4184_s5 = scalar_lea.vmem %s4183_s19, 512  ;;  %p4185_p3 = scmp.lt.s32.totalorder %s4490_s16, %s4183_s19 }
  0x4c   : > { %p4180_p9 = pnand %p4178_p7, %p4134_p8  ;;  %p4186_p12 = scmp.lt.s32.totalorder %s4184_s5, %s4177_s25 }
  0x4e   : > { %p4181_p2 = pneg %p4180_p9  ;;  %p4187_p10 = por %p4186_p12, %p4185_p3 }
  0x50   : > { %p4188_p0 = pnand %p4187_p10, %p4181_p2 }
  0x52   : > { %4191 = shalt.err (!%p4188_p0)
}
  0x53   : > { %s4309_s14 = smov 64   ;;  %s4310_s13 = smov 4  }
  0x54   : > { %3803 = dma.hbm_to_vmem [thread:$0]  (!%p4438_p6), %s4499_s21, 256, %s4490_s16, %s4446_s15, %s4309_s14, %s4309_s14, %s4310_s13  }
  0x55   : > { %s4192_s23 = scalar_lea.hbm %s5607_s2, 16  ;;  %p4194_p13 = pneg %p4507_p5 }
  0x56   : > { %p4193_p8 = scmp.ne.s32.totalorder %s5607_s2, %s4192_s23  ;;  %p4199_p11 = scmp.lt.u32.totalorder %s4192_s23, %s5607_s2 }
  0x58   : > { %p4195_p2 = pnand %p4194_p13, %p4193_p8 }
  0x5a   : > { %p4196_p3 = pneg %p4195_p2 }
  0x5c   : > { %p4201_p1 = pnand %p4199_p11, %p4196_p3 }
  0x5e   : > { %4204 = shalt.err (!%p4201_p1)
}
  0x5f   : > { %s4205_s8 = scalar_lea.vmem %s4503_s28, 16  ;;  %s4212_s12 = scalar_lea.vmem %s4503_s28, 32 }
  0x60   : > { %p4206_p6 = scmp.ne.s32.totalorder %s4503_s28, %s4205_s8  ;;  %p4213_p9 = scmp.lt.s32.totalorder %s4503_s28, %s4503_s28 }
  0x61   : > { %p4214_p12 = scmp.lt.s32.totalorder %s4212_s12, %s4205_s8 }
  0x62   : > { %p4208_p4 = pnand %p4206_p6, %p4194_p13 }
  0x63   : > { %p4215_p10 = por %p4214_p12, %p4213_p9 }
  0x64   : > { %p4209_p7 = pneg %p4208_p4 }
  0x66   : > { %p4216_p0 = pnand %p4215_p10, %p4209_p7 }
  0x68   : > { %4219 = shalt.err (!%p4216_p0)
}
  0x69   : > { %3796 = dma.hbm_to_vmem [thread:$0]  (!%p4507_p5), %s5607_s2, 16, %s4503_s28, [#allocation4]  }
  0x6a   : > { %p5640_p8 = scmp.ne.s32.totalorder %s5637_s27, 0 }
  0x6b   : > { %p5641_p13 = scmp.eq.s32.totalorder (!%p5640_p8), %s4477_s29, 0 }
  0x6c   : > { %475 = sbr.rel (%p5640_p8) target bundleno = 3353 (0xd19), region = 68 }
  0x73   : > { %4271 = dma.done.wait (%p5641_p13), [#allocation4], 16   ;;  %p5642_p2 = pmov %p5641_p13 }
  0x74   : > { %s481_s20 = sand.u32 1, %s4477_s29   ;;  %s483_s16 = sand.u32 1, %s4288_s22  }
  0x75   : > { %4273 = vsyncadd (%p5642_p2), [#allocation4], 4294967280  ;;  %s4565_s21 = sshll.u32 %s483_s16, 3  ;;  %s482_s18 = scalar_lea.sflag [#allocation7], %s481_s20 }
  0x76   : > { %s485_s5 = scalar_lea.vmem [#allocation6], %s4565_s21  ;;  %p5643_p5 = scmp.ne.s32.totalorder %s5636_s30, 0 }
  0x78   : > { %4275 = dma.done.wait (%p5643_p5), %s482_s18, 384  }
  0x79   : > { %4277 = vsyncadd (%p5643_p5), %s482_s18, 4294966912  ;;  %s4572_s27 = sshll.u32 %s483_s16, 4  ;;  %p570_p3 = scmp.lt.s32.totalorder %s4296_s24, 1 }
  0x7a   : > { %s494_s20 = scalar_lea.vmem [#allocation8], %s4572_s27  ;;  %p3387_p11 = scmp.ne.s32.totalorder %s4296_s24, 0 }
  0x7b   : > { %s571_s28 = scalar_select %p570_p3, %s4296_s24, 1 }
  0x7c   : > { %589 = sbr.rel (%p3387_p11) target bundleno = 364 (0x16c), region = 84  ;;  %v3871_v0 = vld [vmem:[%s5606_s1] sm:$0xff] (!%p3387_p11)   ;;  %v3872_v1 = vld [vmem:[%s5606_s1 + $0x8] sm:$0xff] (!%p3387_p11)   ;;  %v3873_v2 = vld [vmem:[%s5606_s1 + $0x10] sm:$0xff] (!%p3387_p11)   ;;  %vm635_vm0 = vcmask (!%p3387_p11), 523264   ;;  %vm725_vm1 = vcmask (!%p3387_p11), 261120  }
  0x7d   : > { %s3463_s14 = sshll.u32 %s571_s28, 4  ;;  %s3465_s13 = sshll.u32 %s571_s28, 5  ;;  %3565 = vmatprep.subr.bf16.mxu0 (!%p3387_p11), %v3871_v0  ;;  %v590_v3 = vld [vmem:[%s5605_s0] sm:$0xff] (!%p3387_p11)  ;;  %v591_v4 = vld [vmem:[%s5605_s0 + $0x8] sm:$0xff] (!%p3387_p11)  ;;  %v3874_v6 = vld [vmem:[%s5606_s1 + $0x18] sm:$0xff] (!%p3387_p11)   ;;  %vm697_vm2 = vcmask (!%p3387_p11), 1040384  }
  0x7e   : > { %s4579_s25 = scalar_lea.vmem %s5611_s6, %s3463_s14  ;;  %s4584_s12 = scalar_lea.vmem %s5612_s7, %s3463_s14  ;;  %3566 = vmatpush3.bf16.msra.mxu0 (!%p3387_p11), %v3871_v0  ;;  %v594_v5 = vpack.c.bf16 (!%p3387_p11), %v591_v4, %v590_v3  ;;  %v592_v7 = vld [vmem:[%s5605_s0 + $0x10] sm:$0xff] (!%p3387_p11)  ;;  %v593_v8 = vld [vmem:[%s5605_s0 + $0x18] sm:$0xff] (!%p3387_p11)  ;;  %v3388_v11 = vld [vmem:[#allocation3] ss:$0 sm:$0xff] (!%p3387_p11) }
  0x7f   : > { %s4589_s15 = scalar_lea.vmem %s5614_s9, %s3465_s13  ;;  %3567 = vmatprep.subr.bf16.mxu0 (!%p3387_p11), %v3872_v1  ;;  %v595_v9 = vpack.c.bf16 (!%p3387_p11), %v593_v8, %v592_v7  ;;  %v717_v10 = vld [vmem:[%s5609_s4 + $0x18] sm:$0xff] (!%p3387_p11)  ;;  %v692_v15 = vld [vmem:[%s5608_s3 + $0x1] sm:$0x1] (!%p3387_p11)  ;;  %v691_v20 = vld [vmem:[%s5608_s3] sm:$0x1] (!%p3387_p11) }
  0x80   : > { %3573 = vmatprep.mubr.msk.bf16.mxu0 (!%p3387_p11), %vm635_vm0, %v594_v5  ;;  %729 = vst.msk [vmem:[#allocation2 + $0x18] sm:$0xff] (!%p3387_p11), %vm725_vm1, %v717_v10  ;;  %733 = vst.msk [vmem:[#allocation2 + $0x38] sm:$0xff] (!%p3387_p11), %vm725_vm1, %v717_v10  ;;  %v714_v19 = vld [vmem:[%s5609_s4] sm:$0xff] (!%p3387_p11)  ;;  %v715_v27 = vld [vmem:[%s5609_s4 + $0x8] sm:$0xff] (!%p3387_p11) }
  0x81   : > { %v716_v28 = vld [vmem:[%s5609_s4 + $0x10] sm:$0xff] (!%p3387_p11) }
  0x82   : > { %3568 = vmatpush3.bf16.msra.mxu0 (!%p3387_p11), %v3872_v1 }
  0x83   : > { %3569 = vmatprep.subr.bf16.mxu0 %v3873_v2 }
  0x86   : > { %3570 = vmatpush3.bf16.msra.mxu0 %v3873_v2 }
  0x87   : > { %3571 = vmatprep.subr.bf16.mxu0 %v3874_v6 }
  0x8a   : > { %3572 = vmatpush3.bf16.msra.mxu0 %v3874_v6 }
  0x8d   : > { %3574 = vmatmul.mubr.msk.bf16.vlgmr.msra.gmra.mrb[0].mxu0 %vm635_vm0, %v595_v9 }
 0x160   : > { %v3575_v12 = vpop.f32.mrb[0].mxu0 }
 0x161   : > { %v685_v13 = vadd.f32 %v3575_v12, %v3388_v11  ;;  %v676_v14 = vpop.f32.mrb[1].mxu0 }
 0x162   : > { %v677_v16 = vadd.f32 %v3388_v11, %v676_v14  ;;  %v3576_v17 = vpop.f32.mrb[2].mxu0 }
 0x163   : > { %v701_v18 = vrot.slane %v685_v13, 7  ;;  %v688_v21 = vadd.f32 %v3576_v17, %v3388_v11  ;;  %v679_v22 = vpop.f32.mrb[3].mxu0 }
 0x164   : > { %v698_v23 = vrot.slane %v677_v16, 7  ;;  %v680_v24 = vadd.f32 %v3388_v11, %v679_v22 }
 0x165   : > { %v711_v25 = vsel %vm697_vm2, %v692_v15, %v701_v18  ;;  %v702_v26 = vrot.slane %v688_v21, 7 }
 0x166   : > { %v722_v29 = vadd.f32 %v714_v19, %v711_v25  ;;  %v710_v30 = vsel %vm697_vm2, %v691_v20, %v698_v23  ;;  %v699_v31 = vrot.slane %v680_v24, 7 }
 0x167   : > { %v718_v32 = vadd.f32 %v714_v19, %v710_v30  ;;  %v703_v33 = vsel %vm697_vm2, %v701_v18, %v702_v26  ;;  %v713_v34 = vsel %vm697_vm2, %v702_v26, 0.0 }
 0x168   : > { %730 = vst.msk [vmem:[#allocation2 + $0x20] sm:$0xff] %vm725_vm1, %v722_v29  ;;  %v723_v35 = vadd.f32 %v715_v27, %v703_v33  ;;  %v724_v36 = vadd.f32 %v716_v28, %v713_v34  ;;  %v700_v37 = vsel %vm697_vm2, %v698_v23, %v699_v31  ;;  %v712_v38 = vsel %vm697_vm2, %v699_v31, 0.0 }
 0x169   : > { %726 = vst.msk [vmem:[#allocation2] sm:$0xff] %vm725_vm1, %v718_v32  ;;  %v719_v39 = vadd.f32 %v715_v27, %v700_v37  ;;  %v720_v40 = vadd.f32 %v716_v28, %v712_v38 }
 0x16a   : > { %731 = vst.msk [vmem:[#allocation2 + $0x28] sm:$0xff] %vm725_vm1, %v723_v35  ;;  %732 = vst.msk [vmem:[#allocation2 + $0x30] sm:$0xff] %vm725_vm1, %v724_v36 }
 0x16b   : > { %727 = vst.msk [vmem:[#allocation2 + $0x8] sm:$0xff] %vm725_vm1, %v719_v39  ;;  %728 = vst.msk [vmem:[#allocation2 + $0x10] sm:$0xff] %vm725_vm1, %v720_v40 }
 0x16c PF: > { %vm743_vm3 = vcmask 261120   ;;  %v3935_v33 = vld [vmem:[%s4579_s25] sm:$0xff]   ;;  %v3936_v34 = vld [vmem:[%s4579_s25 + $0x8] sm:$0xff]   ;;  %v849_v40 = vlaneseq  ;;  %vm1010_vm4 = vcmask 64512   ;;  %s4311_s25 = smov 120   ;;  %s4312_s13 = smov 112  }
 0x16d   : > { %3577 = vmatprep.subr.bf16.mxu0 %v3935_v33  ;;  %s4313_s19 = smov 104   ;;  %s4314_s8 = smov 96   ;;  %vm2556_vm6 = vcmask 130048   ;;  %vm2565_vm7 = vcmask 195584   ;;  %vm3024_vm8 = vcmask 523264  }
 0x16e   : > { %3578 = vmatpush3.bf16.msra.mxu0 %v3935_v33  ;;  %s4315_s30 = smov 64   ;;  %s4316_s26 = smov 8  }
 0x16f   : > { %v739_v47 = vld [vmem:[#allocation2 + $0x20] sm:$0xff]  ;;  %3579 = vmatprep.subr.bf16.mxu0 %v3936_v34  ;;  %s4317_s16 = smov 16   ;;  %s4318_s18 = smov 24  }
 0x170   : > { %v735_v41 = vld [vmem:[#allocation2] sm:$0xff]  ;;  %v738_v46 = vld [vmem:[#allocation2 + $0x18] sm:$0xff]  ;;  %v756_v51 = vsel %vm743_vm3, %v739_v47, 0.0  ;;  %p3453_p1 = scmp.ne.s32.totalorder %s4296_s24, 1 }
 0x171   : > { %v744_v44 = vsel %vm743_vm3, %v735_v41, 0.0  ;;  %v740_v48 = vld [vmem:[#allocation2 + $0x28] sm:$0xff]  ;;  %v753_v50 = vsel %vm743_vm3, %v738_v46, 0.0  ;;  %v741_v53 = vld [vmem:[#allocation2 + $0x30] sm:$0xff]  ;;  %v742_v54 = vld [vmem:[#allocation2 + $0x38] sm:$0xff]  ;;  %vm4320_vm9 = vmmov (!%p3453_p1), 0  }
 0x172   : > { %v737_v42 = vld [vmem:[#allocation2 + $0x10] sm:$0xff]  ;;  %v736_v43 = vld [vmem:[#allocation2 + $0x8] sm:$0xff]  ;;  %745 = vadd.xlane.f32.xlu0 %v744_v44  ;;  %v759_v52 = vsel %vm743_vm3, %v740_v48, 0.0  ;;  %v762_v55 = vsel %vm743_vm3, %v741_v53, 0.0  ;;  %v765_v56 = vsel %vm743_vm3, %v742_v54, 0.0  ;;  %3580 = vmatpush3.bf16.msra.mxu0 %v3936_v34  ;;  %vm3142_vm10 = vcmask (!%p3453_p1), 1041409  }
 0x173   : > { %v750_v45 = vsel %vm743_vm3, %v737_v42, 0.0  ;;  %v747_v49 = vsel %vm743_vm3, %v736_v43, 0.0 }
 0x174   : > { %751 = vadd.xlane.f32.xlu1 %v750_v45 }
 0x176   : > { %748 = vadd.xlane.f32.xlu0 %v747_v49 }
 0x178   : > { %754 = vadd.xlane.f32.xlu1 %v753_v50 }
 0x17a   : > { %757 = vadd.xlane.f32.xlu0 %v756_v51 }
 0x17c   : > { %760 = vadd.xlane.f32.xlu1 %v759_v52 }
 0x17e   : > { %763 = vadd.xlane.f32.xlu0 %v762_v55 }
 0x180   : > { %766 = vadd.xlane.f32.xlu1 %v765_v56 }
 0x1ff   : > { %v746_v57 = vpop.xlane.xlu0 %745 }
 0x200   : > { %v769_v59 = vmul.f32 0.03125, %v746_v57  ;;  %v734_v57 = vld [vmem:[%s485_s5] sm:$0xff] }
 0x201   : > { %v752_v58 = vpop.xlane.xlu1 %751 }
 0x202   : > { %v771_v60 = vmul.f32 0.03125, %v752_v58  ;;  %v4657_v61 = vsub.f32 %v735_v41, %v769_v59 }
 0x203   : > { %v749_v63 = vpop.xlane.xlu0 %748 }
 0x204   : > { %v4659_v62 = vsub.f32 %v737_v42, %v771_v60  ;;  %v770_v1 = vmul.f32 0.03125, %v749_v63  ;;  %v785_v3 = vmul.f32 %v4657_v61, %v4657_v61 }
 0x205   : > { %v755_v0 = vpop.xlane.xlu1 %754 }
 0x206   : > { %v772_v2 = vmul.f32 0.03125, %v755_v0  ;;  %v787_v4 = vmul.f32 %v4659_v62, %v4659_v62  ;;  %v4665_v5 = vsub.f32 %v736_v43, %v770_v1  ;;  %v793_v7 = vsel %vm743_vm3, %v785_v3, 0.0 }
 0x207   : > { %794 = vadd.xlane.f32.xlu0 %v793_v7  ;;  %v758_v8 = vpop.xlane.xlu0 %757 }
 0x208   : > { %v4667_v6 = vsub.f32 %v738_v46, %v772_v2  ;;  %v799_v10 = vsel %vm743_vm3, %v787_v4, 0.0  ;;  %v773_v11 = vmul.f32 0.03125, %v758_v8  ;;  %v786_v13 = vmul.f32 %v4665_v5, %v4665_v5 }
 0x209   : > { %v761_v9 = vpop.xlane.xlu1 %760 }
 0x20a   : > { %v774_v12 = vmul.f32 0.03125, %v761_v9  ;;  %v788_v14 = vmul.f32 %v4667_v6, %v4667_v6  ;;  %v4675_v15 = vsub.f32 %v739_v47, %v773_v11  ;;  %v796_v17 = vsel %vm743_vm3, %v786_v13, 0.0 }
 0x20b   : > { %800 = vadd.xlane.f32.xlu0 %v799_v10  ;;  %797 = vadd.xlane.f32.xlu1 %v796_v17  ;;  %v764_v18 = vpop.xlane.xlu0 %763  ;;  %v4700_v47 = vshrl.u32 %v849_v40, 7 }
 0x20c   : > { %v4677_v16 = vsub.f32 %v740_v48, %v774_v12  ;;  %v802_v20 = vsel %vm743_vm3, %v788_v14, 0.0  ;;  %v775_v21 = vmul.f32 0.03125, %v764_v18  ;;  %v789_v23 = vmul.f32 %v4675_v15, %v4675_v15 }
 0x20d   : > { %v767_v19 = vpop.xlane.xlu1 %766  ;;  %v863_v2 = vsub.s32 1, %v4700_v47 }
 0x20e   : > { %v776_v22 = vmul.f32 0.03125, %v767_v19  ;;  %v790_v24 = vmul.f32 %v4677_v16, %v4677_v16  ;;  %v4685_v25 = vsub.f32 %v741_v53, %v775_v21  ;;  %v805_v27 = vsel %vm743_vm3, %v789_v23, 0.0 }
 0x20f   : > { %803 = vadd.xlane.f32.xlu1 %v802_v20  ;;  %806 = vadd.xlane.f32.xlu0 %v805_v27  ;;  %v864_v11 = vrot.slane %v734_v57, %v863_v2 }
 0x210   : > { %v4687_v26 = vsub.f32 %v742_v54, %v776_v22  ;;  %v808_v28 = vsel %vm743_vm3, %v790_v24, 0.0  ;;  %v791_v29 = vmul.f32 %v4685_v25, %v4685_v25  ;;  %v851_v54 = vsub.s32 0, %v4700_v47 }
 0x212   : > { %v792_v30 = vmul.f32 %v4687_v26, %v4687_v26  ;;  %v811_v31 = vsel %vm743_vm3, %v791_v29, 0.0  ;;  %v852_v1 = vrot.slane %v734_v57, %v851_v54 }
 0x213   : > { %809 = vadd.xlane.f32.xlu1 %v808_v28  ;;  %812 = vadd.xlane.f32.xlu0 %v811_v31 }
 0x214   : > { %v814_v32 = vsel %vm743_vm3, %v792_v30, 0.0 }
 0x217   : > { %815 = vadd.xlane.f32.xlu1 %v814_v32 }
 0x294   : > { %v795_v35 = vpop.xlane.xlu0 %794 }
 0x295   : > { %v817_v36 = vmul.f32 0.03125, %v795_v35 }
 0x297   : > { %v825_v37 = vadd.f32 1e-05, %v817_v36 }
 0x298   : > { %v798_v38 = vpop.xlane.xlu1 %797  ;;  %v801_v39 = vpop.xlane.xlu0 %800 }
 0x299   : > { %3945 = vrsqrt.f32 %v825_v37  ;;  %v818_v41 = vmul.f32 0.03125, %v798_v38  ;;  %v819_v42 = vmul.f32 0.03125, %v801_v39 }
 0x29b   : > { %v826_v43 = vadd.f32 1e-05, %v818_v41  ;;  %v827_v44 = vadd.f32 1e-05, %v819_v42 }
 0x29c   : > { %v804_v45 = vpop.xlane.xlu1 %803  ;;  %v807_v46 = vpop.xlane.xlu0 %806 }
 0x29d   : > { %3947 = vrsqrt.f32 %v826_v43  ;;  %v820_v48 = vmul.f32 0.03125, %v804_v45  ;;  %v821_v49 = vmul.f32 0.03125, %v807_v46 }
 0x29e   : > { %3949 = vrsqrt.f32 %v827_v44 }
 0x29f   : > { %v828_v50 = vadd.f32 1e-05, %v820_v48  ;;  %v829_v51 = vadd.f32 1e-05, %v821_v49 }
 0x2a0   : > { %v810_v52 = vpop.xlane.xlu1 %809  ;;  %v813_v53 = vpop.xlane.xlu0 %812 }
 0x2a1   : > { %3951 = vrsqrt.f32 %v828_v50  ;;  %v822_v55 = vmul.f32 0.03125, %v810_v52  ;;  %v823_v56 = vmul.f32 0.03125, %v813_v53 }
 0x2a2   : > { %3953 = vrsqrt.f32 %v829_v51 }
 0x2a3   : > { %v3946_v58 = vpop.eup %3945  ;;  %v830_v59 = vadd.f32 1e-05, %v822_v55  ;;  %v831_v60 = vadd.f32 1e-05, %v823_v56 }
 0x2a4   : > { %v816_v63 = vpop.xlane.xlu1 %815  ;;  %v841_v0 = vmul.f32 %v3946_v58, %v4657_v61 }
 0x2a5   : > { %3955 = vrsqrt.f32 %v830_v59  ;;  %v824_v3 = vmul.f32 0.03125, %v816_v63 }
 0x2a6   : > { %3957 = vrsqrt.f32 %v831_v60  ;;  %v853_v10 = vmul.f32 %v852_v1, %v841_v0 }
 0x2a7   : > { %v3948_v4 = vpop.eup %3947  ;;  %v832_v7 = vadd.f32 1e-05, %v824_v3 }
 0x2a8   : > { %v3950_v8 = vpop.eup %3949  ;;  %v842_v9 = vmul.f32 %v3948_v4, %v4665_v5  ;;  %v865_v61 = vadd.f32 %v864_v11, %v853_v10 }
 0x2a9   : > { %3959 = vrsqrt.f32 %v832_v7  ;;  %v843_v12 = vmul.f32 %v3950_v8, %v4659_v62 }
 0x2aa   : > { %v854_v13 = vmul.f32 %v852_v1, %v842_v9 }
 0x2ab   : > { %v3952_v14 = vpop.eup %3951  ;;  %v855_v20 = vmul.f32 %v852_v1, %v843_v12 }
 0x2ac   : > { %v3954_v17 = vpop.eup %3953  ;;  %v866_v18 = vadd.f32 %v864_v11, %v854_v13  ;;  %v844_v19 = vmul.f32 %v3952_v14, %v4667_v6 }
 0x2ad   : > { %v845_v21 = vmul.f32 %v3954_v17, %v4675_v15  ;;  %v867_v5 = vadd.f32 %v864_v11, %v855_v20 }
 0x2ae   : > { %v873_v22 = vpack.c.bf16 %v866_v18, %v865_v61  ;;  %v856_v23 = vmul.f32 %v852_v1, %v844_v19 }
 0x2af   : > { %v3956_v24 = vpop.eup %3955  ;;  %v857_v29 = vmul.f32 %v852_v1, %v845_v21 }
 0x2b0   : > { %v3958_v27 = vpop.eup %3957  ;;  %3581 = vmatprep.mubr.msk.bf16.mxu0 %vm743_vm3, %v873_v22  ;;  %v868_v28 = vadd.f32 %v864_v11, %v856_v23  ;;  %v846_v62 = vmul.f32 %v3956_v24, %v4677_v16 }
 0x2b1   : > { %v847_v30 = vmul.f32 %v3958_v27, %v4685_v25  ;;  %v869_v6 = vadd.f32 %v864_v11, %v857_v29  ;;  %v883_v25 = vsub.s32 2, %v4700_v47 }
 0x2b2   : > { %v874_v31 = vpack.c.bf16 %v868_v28, %v867_v5  ;;  %v858_v32 = vmul.f32 %v852_v1, %v846_v62 }
 0x2b3   : > { %v3960_v33 = vpop.eup %3959  ;;  %v859_v35 = vmul.f32 %v852_v1, %v847_v30  ;;  %v884_v41 = vrot.slane %v734_v57, %v883_v25 }
 0x2b4   : > { %3582 = vmatmul.mubr.msk.bf16.vlgmr.msra.gmra.mrb[0].mxu0 %vm743_vm3, %v874_v31  ;;  %v870_v15 = vadd.f32 %v864_v11, %v858_v32  ;;  %v848_v34 = vmul.f32 %v3960_v33, %v4687_v26 }
 0x2b5   : > { %v871_v38 = vadd.f32 %v864_v11, %v859_v35 }
 0x2b6   : > { %v875_v36 = vpack.c.bf16 %v870_v15, %v869_v6  ;;  %v860_v37 = vmul.f32 %v852_v1, %v848_v34 }
 0x2b8   : > { %3585 = vmatprep.mubr.msk.bf16.mxu0 %vm743_vm3, %v875_v36  ;;  %v872_v39 = vadd.f32 %v864_v11, %v860_v37 }
 0x2ba   : > { %v876_v16 = vpack.c.bf16 %v872_v39, %v871_v38 }
 0x2bc   : > { %3586 = vmatmul.mubr.msk.bf16.gmra.mrb[4].mxu0 %vm743_vm3, %v876_v16 }
 0x387   : > { %v3583_v42 = vpop.f32.mrb[0].mxu0 }
 0x388   : > { %v943_v43 = vpop.f32.mrb[1].mxu0  ;;  %v952_v45 = vadd.f32 %v3583_v42, %v884_v41 }
 0x389   : > { %v3584_v44 = vpop.f32.mrb[2].mxu0  ;;  %v944_v26 = vadd.f32 %v943_v43, %v884_v41 }
 0x38a   : > { %v955_v46 = vadd.f32 %v3584_v44, %v884_v41  ;;  %v946_v48 = vpop.f32.mrb[3].mxu0 }
 0x38b   : > { %v947_v49 = vadd.f32 %v946_v48, %v884_v41 }
 0x38c   : > { %v4719_v50 = vpack.c.bf16 %v955_v46, %v952_v45 }
 0x38d   : > { %v974_v51 = vpack.c.bf16 %v947_v49, %v944_v26 }
 0x38e   : > { %984 = vrot.lane.b32.xlu1 %v4719_v50, %s4311_s25 }
 0x38f   : > { %v3587_v52 = vpop.f32.mrb[4].mxu0  ;;  %982 = vrot.lane.b32.xlu0 %v974_v51, %s4311_s25  ;;  %3593 = vmatprep.mubr.msk.bf16.mxu1 %vm1010_vm4, %v974_v51 }
 0x390   : > { %v959_v53 = vpop.f32.mrb[5].mxu0  ;;  %v968_v55 = vadd.f32 %v3587_v52, %v884_v41 }
 0x391   : > { %v3588_v54 = vpop.f32.mrb[6].mxu0  ;;  %v960_v58 = vadd.f32 %v959_v53, %v884_v41 }
 0x392   : > { %v971_v56 = vadd.f32 %v3588_v54, %v884_v41  ;;  %v962_v57 = vpop.f32.mrb[7].mxu0 }
 0x393   : > { %v963_v59 = vadd.f32 %v962_v57, %v884_v41  ;;  %990 = vrot.lane.b32.xlu0 %v974_v51, %s4312_s13 }
 0x394   : > { %v4723_v60 = vpack.c.bf16 %v971_v56, %v968_v55 }
 0x395   : > { %v976_v63 = vpack.c.bf16 %v963_v59, %v960_v58 }
 0x397   : > { %986 = vrot.lane.b32.xlu1 %v976_v63, %s4311_s25  ;;  %3601 = vmatprep.mubr.msk.bf16.mxu0 %vm1010_vm4, %v976_v63 }
 0x398   : > { %994 = vrot.lane.b32.xlu0 %v976_v63, %s4312_s13 }
 0x39b   : > { %988 = vrot.lane.b32.xlu1 %v4723_v60, %s4311_s25 }
 0x39c   : > { %998 = vrot.lane.b32.xlu0 %v974_v51, %s4313_s19 }
 0x39f   : > { %992 = vrot.lane.b32.xlu1 %v4719_v50, %s4312_s13 }
 0x3a0   : > { %1002 = vrot.lane.b32.xlu0 %v976_v63, %s4313_s19 }
 0x3a3   : > { %996 = vrot.lane.b32.xlu1 %v4723_v60, %s4312_s13 }
 0x3a4   : > { %1004 = vrot.lane.b32.xlu0 %v4723_v60, %s4313_s19 }
 0x3a7   : > { %1000 = vrot.lane.b32.xlu1 %v4719_v50, %s4313_s19 }
 0x3a8   : > { %1072 = vrot.lane.b32.xlu0 %v976_v63, %s4314_s8 }
 0x3ab   : > { %1006 = vrot.lane.b32.xlu1 %v974_v51, %s4314_s8 }
 0x3af   : > { %1008 = vrot.lane.b32.xlu1 %v4719_v50, %s4314_s8 }
 0x3b3   : > { %1074 = vrot.lane.b32.xlu1 %v4723_v60, %s4314_s8 }
 0x400   : > { %v4737_v0 = vpop.permute.xlu1 %984 }
 0x401   : > { %1139 = vrot.lane.b32.xlu1 %v4737_v0, %s4314_s8  ;;  %v983_v1 = vpop.permute.xlu0 %982 }
 0x402   : > { %1137 = vrot.lane.b32.xlu0 %v983_v1, %s4314_s8 }
 0x405   : > { %v4742_v2 = vpop.permute.xlu0 %990 }
 0x409   : > { %v987_v3 = vpop.permute.xlu1 %986 }
 0x40a   : > { %v4744_v4 = vpop.permute.xlu0 %994  ;;  %1202 = vrot.lane.b32.xlu0 %v987_v3, %s4314_s8 }
 0x40d   : > { %v4747_v7 = vpop.permute.xlu1 %988 }
 0x40e   : > { %v4749_v8 = vpop.permute.xlu0 %998  ;;  %1204 = vrot.lane.b32.xlu1 %v4747_v7, %s4314_s8  ;;  %1267 = vrot.lane.b32.xlu0 %v4742_v2, %s4314_s8 }
 0x411   : > { %v4755_v9 = vpop.permute.xlu1 %992 }
 0x412   : > { %v4757_v10 = vpop.permute.xlu0 %1002  ;;  %1269 = vrot.lane.b32.xlu1 %v4755_v9, %s4314_s8  ;;  %1332 = vrot.lane.b32.xlu0 %v4744_v4, %s4314_s8 }
 0x415   : > { %v4763_v11 = vpop.permute.xlu1 %996 }
 0x416   : > { %v4765_v12 = vpop.permute.xlu0 %1004  ;;  %1334 = vrot.lane.b32.xlu1 %v4763_v11, %s4314_s8  ;;  %1397 = vrot.lane.b32.xlu0 %v4749_v8, %s4314_s8 }
 0x419   : > { %v4771_v13 = vpop.permute.xlu1 %1000 }
 0x41a   : > { %v1073_v14 = vpop.permute.xlu0 %1072  ;;  %1399 = vrot.lane.b32.xlu1 %v4771_v13, %s4314_s8  ;;  %1462 = vrot.lane.b32.xlu0 %v4757_v10, %s4314_s8 }
 0x41b   : > { %3767 = vmatprep.subr.msk.bf16.mxu0 %vm1010_vm4, %v1073_v14  ;;  %v1083_v17 = vsel %vm1010_vm4, %v1073_v14, 0 }
 0x41c   : > { %3598 = vmatpush3.bf16.xpose.msra.mxu0 %v1083_v17 }
 0x41d   : > { %v1007_v61 = vpop.permute.xlu1 %1006 }
 0x41e   : > { %3765 = vmatprep.subr.msk.bf16.mxu1 %vm1010_vm4, %v1007_v61  ;;  %1964 = vrot.lane.b32.xlu0 %v974_v51, %s4315_s30  ;;  %v1018_v18 = vsel %vm1010_vm4, %v1007_v61, 0  ;;  %v4866_v51 = vand.u32 127, %v849_v40 }
 0x41f   : > { %1464 = vrot.lane.b32.xlu1 %v4765_v12, %s4314_s8  ;;  %3590 = vmatpush3.bf16.xpose.msra.mxu1 %v1018_v18 }
 0x420   : > { %vm1561_vm5 = vcmp.lt.s32.totalorder %v4866_v51, 17 }
 0x421   : > { %v1009_v19 = vpop.permute.xlu1 %1008 }
 0x422   : > { %3766 = vmatprep.subr.msk.bf16.mxu1 %vm1010_vm4, %v1009_v19  ;;  %2027 = vrot.lane.b32.xlu0 %v4723_v60, %s4315_s30  ;;  %v1021_v21 = vsel %vm1010_vm4, %v1009_v19, 0 }
 0x423   : > { %1966 = vrot.lane.b32.xlu1 %v4719_v50, %s4315_s30 }
 0x425   : > { %v1075_v20 = vpop.permute.xlu1 %1074 }
 0x426   : > { %2088 = vrot.lane.b32.xlu0 %v4737_v0, %s4315_s30  ;;  %3768 = vmatprep.subr.msk.bf16.mxu0 %vm1010_vm4, %v1075_v20  ;;  %v1086_v22 = vsel %vm1010_vm4, %v1075_v20, 0 }
 0x427   : > { %2025 = vrot.lane.b32.xlu1 %v976_v63, %s4315_s30  ;;  %3592 = vmatpush3.bf16.xpose.msra.mxu1 %v1021_v21 }
 0x428   : > { %3600 = vmatpush3.bf16.xpose.msra.mxu0 %v1086_v22 }
 0x42a   : > { %2208 = vrot.lane.b32.xlu0 %v4742_v2, %s4315_s30 }
 0x42b   : > { %2086 = vrot.lane.b32.xlu1 %v983_v1, %s4315_s30 }
 0x42e   : > { %2149 = vrot.lane.b32.xlu0 %v4747_v7, %s4315_s30  ;;  %3594 = vmatmul.mubr.msk.bf16.vlgmr.msra.gmra.mrb[0].mxu1 %vm1010_vm4, %v4719_v50 }
 0x42f   : > { %2330 = vrot.lane.b32.xlu1 %v4749_v8, %s4315_s30  ;;  %3602 = vmatmul.mubr.msk.bf16.vlgmr.msra.gmra.mrb[8].mxu0 %vm1010_vm4, %v4723_v60 }
 0x430   : > { %3609 = vmatprep.mubr.msk.bf16.mxu1 %vm1010_vm4, %v983_v1  ;;  %3617 = vmatprep.mubr.msk.bf16.mxu0 %vm1010_vm4, %v987_v3 }
 0x432   : > { %2210 = vrot.lane.b32.xlu0 %v4755_v9, %s4315_s30 }
 0x433   : > { %2147 = vrot.lane.b32.xlu1 %v987_v3, %s4315_s30 }
 0x436   : > { %2269 = vrot.lane.b32.xlu0 %v4744_v4, %s4315_s30 }
 0x473   : > { %v1140_v27 = vpop.permute.xlu1 %1139 }
 0x474   : > { %v1138_v23 = vpop.permute.xlu0 %1137  ;;  %v1151_v28 = vsel %vm1010_vm4, %v1140_v27, 0 }
 0x475   : > { %3769 = vmatprep.subr.msk.bf16.mxu1 %vm1010_vm4, %v1138_v23  ;;  %v1148_v24 = vsel %vm1010_vm4, %v1138_v23, 0 }
 0x476   : > { %3606 = vmatpush3.bf16.xpose.msra.mxu1 %v1148_v24 }
 0x477   : > { %3770 = vmatprep.subr.msk.bf16.mxu1 %vm1010_vm4, %v1140_v27 }
 0x47c   : > { %v1203_v5 = vpop.permute.xlu0 %1202 }
 0x47d   : > { %3771 = vmatprep.subr.msk.bf16.mxu0 %vm1010_vm4, %v1203_v5  ;;  %v1213_v62 = vsel %vm1010_vm4, %v1203_v5, 0 }
 0x47e   : > { %3608 = vmatpush3.bf16.xpose.msra.mxu1 %v1151_v28  ;;  %3614 = vmatpush3.bf16.xpose.msra.mxu0 %v1213_v62 }
 0x480   : > { %v1205_v29 = vpop.permute.xlu1 %1204  ;;  %v1268_v30 = vpop.permute.xlu0 %1267 }
 0x481   : > { %3772 = vmatprep.subr.msk.bf16.mxu0 %vm1010_vm4, %v1205_v29  ;;  %3773 = vmatprep.subr.msk.bf16.mxu1 %vm1010_vm4, %v1268_v30  ;;  %v1216_v32 = vsel %vm1010_vm4, %v1205_v29, 0  ;;  %v1278_v33 = vsel %vm1010_vm4, %v1268_v30, 0 }
 0x484   : > { %v1270_v31 = vpop.permute.xlu1 %1269  ;;  %v1333_v6 = vpop.permute.xlu0 %1332 }
 0x485   : > { %3610 = vmatmul.mubr.msk.bf16.vlgmr.msra.gmra.mrb[4].mxu1 %vm1010_vm4, %v4737_v0  ;;  %v1281_v34 = vsel %vm1010_vm4, %v1270_v31, 0  ;;  %v1343_v35 = vsel %vm1010_vm4, %v1333_v6, 0 }
 0x486   : > { %3616 = vmatpush3.bf16.xpose.msra.mxu0 %v1216_v32  ;;  %3622 = vmatpush3.bf16.xpose.msra.mxu1 %v1278_v33 }
 0x487   : > { %3625 = vmatprep.mubr.msk.bf16.mxu1 %vm1010_vm4, %v4742_v2  ;;  %3774 = vmatprep.subr.msk.bf16.mxu1 %vm1010_vm4, %v1270_v31 }
 0x488   : > { %3775 = vmatprep.subr.msk.bf16.mxu0 %vm1010_vm4, %v1333_v6  ;;  %v1335_v15 = vpop.permute.xlu1 %1334  ;;  %v1398_v37 = vpop.permute.xlu0 %1397 }
 0x489   : > { %v1346_v39 = vsel %vm1010_vm4, %v1335_v15, 0  ;;  %v1408_v16 = vsel %vm1010_vm4, %v1398_v37, 0 }
 0x48c   : > { %v1400_v36 = vpop.permute.xlu1 %1399  ;;  %v1463_v25 = vpop.permute.xlu0 %1462 }
 0x48d   : > { %3618 = vmatmul.mubr.msk.bf16.vlgmr.msra.gmra.mrb[12].mxu0 %vm1010_vm4, %v4747_v7  ;;  %v1411_v42 = vsel %vm1010_vm4, %v1400_v36, 0  ;;  %v1473_v43 = vsel %vm1010_vm4, %v1463_v25, 0 }
 0x48e   : > { %3624 = vmatpush3.bf16.xpose.msra.mxu1 %v1281_v34  ;;  %3630 = vmatpush3.bf16.xpose.msra.mxu0 %v1343_v35 }
 0x48f   : > { %3633 = vmatprep.mubr.msk.bf16.mxu0 %vm1010_vm4, %v4744_v4  ;;  %3776 = vmatprep.subr.msk.bf16.mxu0 %vm1010_vm4, %v1335_v15 }
 0x490   : > { %3777 = vmatprep.subr.msk.bf16.mxu1 %vm1010_vm4, %v1398_v37  ;;  %v1965_v44 = vpop.permute.xlu0 %1964 }
 0x491   : > { %v1465_v38 = vpop.permute.xlu1 %1464 }
 0x492   : > { %v1476_v46 = vsel %vm1010_vm4, %v1465_v38, 0 }
 0x494   : > { %v2028_v49 = vpop.permute.xlu0 %2027 }
 0x495   : > { %3626 = vmatmul.mubr.msk.bf16.vlgmr.msra.gmra.mrb[8].mxu1 %vm1010_vm4, %v4755_v9  ;;  %v1967_v41 = vpop.permute.xlu1 %1966 }
 0x496   : > { %3632 = vmatpush3.bf16.xpose.msra.mxu0 %v1346_v39  ;;  %3638 = vmatpush3.bf16.xpose.msra.mxu1 %v1408_v16 }
 0x497   : > { %3641 = vmatprep.mubr.msk.bf16.mxu1 %vm1010_vm4, %v4749_v8  ;;  %3778 = vmatprep.subr.msk.bf16.mxu1 %vm1010_vm4, %v1400_v36 }
 0x498   : > { %3779 = vmatprep.subr.msk.bf16.mxu0 %vm1010_vm4, %v1463_v25 }
 0x499   : > { %v2026_v45 = vpop.permute.xlu1 %2025 }
 0x49d   : > { %3634 = vmatmul.mubr.msk.bf16.vlgmr.msra.gmra.mrb[16].mxu0 %vm1010_vm4, %v4763_v11  ;;  %v4855_v48 = vpop.permute.xlu1 %2086 }
 0x49e   : > { %3640 = vmatpush3.bf16.xpose.msra.mxu1 %v1411_v42  ;;  %3646 = vmatpush3.bf16.xpose.msra.mxu0 %v1473_v43 }
 0x49f   : > { %3649 = vmatprep.mubr.msk.bf16.mxu0 %vm1010_vm4, %v4757_v10  ;;  %3780 = vmatprep.subr.msk.bf16.mxu0 %vm1010_vm4, %v1465_v38 }
 0x4a0   : > { %3653 = vmatprep.subr.bf16.mxu1 %v1965_v44 }
 0x4a1   : > { %v4858_v26 = vpop.permute.xlu1 %2330 }
 0x4a5   : > { %3642 = vmatmul.mubr.msk.bf16.vlgmr.msra.gmra.mrb[12].mxu1 %vm1010_vm4, %v4771_v13  ;;  %v4862_v50 = vpop.permute.xlu1 %2147 }
 0x4a6   : > { %3648 = vmatpush3.bf16.xpose.msra.mxu0 %v1476_v46  ;;  %3654 = vmatpush3.bf16.msra.mxu1 %v1965_v44 }
 0x4a7   : > { %3655 = vmatprep.subr.bf16.mxu1 %v1967_v41  ;;  %3661 = vmatprep.subr.bf16.mxu0 %v2026_v45 }
 0x4aa   : > { %3656 = vmatpush3.bf16.msra.mxu1 %v1967_v41 }
 0x4ab   : > { %3669 = vmatprep.subr.bf16.mxu1 %v4855_v48 }
 0x4ad   : > { %3650 = vmatmul.mubr.msk.bf16.vlgmr.msra.gmra.mrb[20].mxu0 %vm1010_vm4, %v4765_v12 }
 0x4ae   : > { %3662 = vmatpush3.bf16.msra.mxu0 %v2026_v45 }
 0x4af   : > { %3663 = vmatprep.subr.bf16.mxu0 %v2028_v49 }
 0x4b2   : > { %3664 = vmatpush3.bf16.msra.mxu0 %v2028_v49 }
 0x4b3   : > { %3677 = vmatprep.subr.bf16.mxu0 %v4862_v50 }
 0x501   : > { %v3595_v52 = vpop.f32.mrb[0].mxu1 }
 0x502   : > { %v1529_v53 = vmul.f32 0.35355338, %v3595_v52  ;;  %v3603_v54 = vpop.f32.mrb[8].mxu0  ;;  %v1057_v55 = vpop.f32.mrb[1].mxu1 }
 0x503   : > { %v1122_v56 = vpop.f32.mrb[9].mxu0  ;;  %v3596_v57 = vpop.f32.mrb[2].mxu1  ;;  %v1527_v58 = vmul.f32 0.35355338, %v1057_v55  ;;  %v1533_v61 = vmul.f32 0.35355338, %v3603_v54 }
 0x504   : > { %v3604_v59 = vpop.f32.mrb[10].mxu0  ;;  %v1060_v60 = vpop.f32.mrb[3].mxu1  ;;  %v4871_v2 = vsel %vm1561_vm5, %v1529_v53, -1e+30  ;;  %v1530_v4 = vmul.f32 0.35355338, %v3596_v57 }
 0x505   : > { %v1534_v63 = vmul.f32 0.35355338, %v3604_v59  ;;  %v1528_v0 = vmul.f32 0.35355338, %v1060_v60  ;;  %v1125_v1 = vpop.f32.mrb[11].mxu0  ;;  %v1602_v40 = vsel %vm743_vm3, %v4871_v2, -inf }
 0x506   : > { %1603 = vmax.xlane.f32.xlu0 %v1602_v40  ;;  %v4883_v8 = vsel %vm1561_vm5, %v1527_v58, -1e+30  ;;  %v1532_v9 = vmul.f32 0.35355338, %v1125_v1  ;;  %v4895_v19 = vsel %vm1561_vm5, %v1530_v4, -1e+30 }
 0x507   : > { %v4877_v3 = vsel %vm1561_vm5, %v1528_v0, -1e+30  ;;  %v4887_v14 = vsel %vm1561_vm5, %v1534_v63, -1e+30  ;;  %v1596_v17 = vsel %vm743_vm3, %v4883_v8, -inf  ;;  %v1605_v21 = vsel %vm743_vm3, %v4895_v19, -inf }
 0x508   : > { %v1599_v7 = vsel %vm743_vm3, %v4877_v3, -inf  ;;  %v1617_v18 = vsel %vm743_vm3, %v4887_v14, -inf  ;;  %v4899_v20 = vsel %vm1561_vm5, %v1532_v9, -1e+30  ;;  %v1531_v22 = vmul.f32 0.35355338, %v1122_v56 }
 0x509   : > { %1600 = vmax.xlane.f32.xlu1 %v1599_v7  ;;  %v1611_v23 = vsel %vm743_vm3, %v4899_v20, -inf  ;;  %v4907_v24 = vsel %vm1561_vm5, %v1533_v61, -1e+30 }
 0x50a   : > { %1597 = vmax.xlane.f32.xlu0 %v1596_v17  ;;  %v1614_v27 = vsel %vm743_vm3, %v4907_v24, -inf  ;;  %v4913_v5 = vsel %vm1561_vm5, %v1531_v22, -1e+30 }
 0x50b   : > { %v1608_v28 = vsel %vm743_vm3, %v4913_v5, -inf }
 0x50d   : > { %1618 = vmax.xlane.f32.xlu1 %v1617_v18 }
 0x50e   : > { %1606 = vmax.xlane.f32.xlu0 %v1605_v21 }
 0x511   : > { %1612 = vmax.xlane.f32.xlu1 %v1611_v23 }
 0x512   : > { %1615 = vmax.xlane.f32.xlu0 %v1614_v27 }
 0x516   : > { %1609 = vmax.xlane.f32.xlu0 %v1608_v28 }
 0x558   : > { %v3611_v62 = vpop.f32.mrb[4].mxu1 }
 0x559   : > { %v1537_v29 = vmul.f32 0.35355338, %v3611_v62  ;;  %v1187_v30 = vpop.f32.mrb[5].mxu1 }
 0x55a   : > { %v1535_v31 = vmul.f32 0.35355338, %v1187_v30  ;;  %v3612_v32 = vpop.f32.mrb[6].mxu1 }
 0x55b   : > { %v1538_v33 = vmul.f32 0.35355338, %v3612_v32  ;;  %v1190_v6 = vpop.f32.mrb[7].mxu1  ;;  %v4919_v15 = vsel %vm1561_vm5, %v1537_v29, -1e+30 }
 0x55c   : > { %v1536_v34 = vmul.f32 0.35355338, %v1190_v6  ;;  %v1626_v35 = vsel %vm743_vm3, %v4919_v15, -inf  ;;  %v4929_v37 = vsel %vm1561_vm5, %v1535_v31, -1e+30 }
 0x55d   : > { %1627 = vmax.xlane.f32.xlu0 %v1626_v35  ;;  %v4925_v36 = vsel %vm1561_vm5, %v1538_v33, -1e+30  ;;  %v1620_v25 = vsel %vm743_vm3, %v4929_v37, -inf }
 0x55e   : > { %v1629_v38 = vsel %vm743_vm3, %v4925_v36, -inf  ;;  %v4935_v39 = vsel %vm1561_vm5, %v1536_v34, -1e+30 }
 0x55f   : > { %1630 = vmax.xlane.f32.xlu1 %v1629_v38  ;;  %v1623_v45 = vsel %vm743_vm3, %v4935_v39, -inf }
 0x560   : > { %v3619_v16 = vpop.f32.mrb[12].mxu0 }
 0x561   : > { %v1541_v41 = vmul.f32 0.35355338, %v3619_v16  ;;  %v1252_v42 = vpop.f32.mrb[13].mxu0  ;;  %1621 = vmax.xlane.f32.xlu0 %v1620_v25 }
 0x562   : > { %v1539_v43 = vmul.f32 0.35355338, %v1252_v42  ;;  %v3620_v44 = vpop.f32.mrb[14].mxu0 }
 0x563   : > { %v1542_v46 = vmul.f32 0.35355338, %v3620_v44  ;;  %v1255_v49 = vpop.f32.mrb[15].mxu0  ;;  %1624 = vmax.xlane.f32.xlu1 %v1623_v45  ;;  %v4943_v52 = vsel %vm1561_vm5, %v1541_v41, -1e+30 }
 0x564   : > { %v1540_v53 = vmul.f32 0.35355338, %v1255_v49  ;;  %v1638_v54 = vsel %vm743_vm3, %v4943_v52, -inf  ;;  %v4953_v56 = vsel %vm1561_vm5, %v1539_v43, -1e+30 }
 0x565   : > { %1639 = vmax.xlane.f32.xlu0 %v1638_v54  ;;  %v4949_v55 = vsel %vm1561_vm5, %v1542_v46, -1e+30  ;;  %v1632_v60 = vsel %vm743_vm3, %v4953_v56, -inf }
 0x566   : > { %v1641_v57 = vsel %vm743_vm3, %v4949_v55, -inf  ;;  %v4959_v58 = vsel %vm1561_vm5, %v1540_v53, -1e+30 }
 0x567   : > { %1642 = vmax.xlane.f32.xlu1 %v1641_v57  ;;  %v1635_v4 = vsel %vm743_vm3, %v4959_v58, -inf }
 0x568   : > { %v3627_v59 = vpop.f32.mrb[8].mxu1 }
 0x569   : > { %v1545_v63 = vmul.f32 0.35355338, %v3627_v59  ;;  %1633 = vmax.xlane.f32.xlu0 %v1632_v60  ;;  %v1317_v0 = vpop.f32.mrb[9].mxu1 }
 0x56a   : > { %v1543_v1 = vmul.f32 0.35355338, %v1317_v0  ;;  %v3628_v40 = vpop.f32.mrb[10].mxu1 }
 0x56b   : > { %v1546_v7 = vmul.f32 0.35355338, %v3628_v40  ;;  %1636 = vmax.xlane.f32.xlu1 %v1635_v4  ;;  %v1320_v9 = vpop.f32.mrb[11].mxu1  ;;  %v4967_v17 = vsel %vm1561_vm5, %v1545_v63, -1e+30  ;;  %v5019_v40 = vpop.permute.xlu0 %2088 }
 0x56c   : > { %v1544_v61 = vmul.f32 0.35355338, %v1320_v9  ;;  %v1650_v18 = vsel %vm743_vm3, %v4967_v17, -inf  ;;  %v4977_v22 = vsel %vm1561_vm5, %v1543_v1, -1e+30 }
 0x56d   : > { %1651 = vmax.xlane.f32.xlu0 %v1650_v18  ;;  %v4973_v21 = vsel %vm1561_vm5, %v1546_v7, -1e+30  ;;  %v1644_v62 = vsel %vm743_vm3, %v4977_v22, -inf }
 0x56e   : > { %v1653_v23 = vsel %vm743_vm3, %v4973_v21, -inf  ;;  %v4983_v27 = vsel %vm1561_vm5, %v1544_v61, -1e+30 }
 0x56f   : > { %1654 = vmax.xlane.f32.xlu1 %v1653_v23  ;;  %v1647_v33 = vsel %vm743_vm3, %v4983_v27, -inf }
 0x570   : > { %v3635_v28 = vpop.f32.mrb[16].mxu0 }
 0x571   : > { %v1549_v29 = vmul.f32 0.35355338, %v3635_v28  ;;  %v1382_v30 = vpop.f32.mrb[17].mxu0  ;;  %1645 = vmax.xlane.f32.xlu0 %v1644_v62 }
 0x572   : > { %v1547_v31 = vmul.f32 0.35355338, %v1382_v30  ;;  %v3636_v32 = vpop.f32.mrb[18].mxu0 }
 0x573   : > { %v1550_v6 = vmul.f32 0.35355338, %v3636_v32  ;;  %v1385_v34 = vpop.f32.mrb[19].mxu0  ;;  %1648 = vmax.xlane.f32.xlu1 %v1647_v33  ;;  %v4991_v35 = vsel %vm1561_vm5, %v1549_v29, -1e+30  ;;  %v5039_v32 = vpop.permute.xlu0 %2208 }
 0x574   : > { %v1548_v38 = vmul.f32 0.35355338, %v1385_v34  ;;  %v1662_v16 = vsel %vm743_vm3, %v4991_v35, -inf  ;;  %v5001_v41 = vsel %vm1561_vm5, %v1547_v31, -1e+30 }
 0x575   : > { %1663 = vmax.xlane.f32.xlu0 %v1662_v16  ;;  %v4997_v25 = vsel %vm1561_vm5, %v1550_v6, -1e+30  ;;  %v1656_v45 = vsel %vm743_vm3, %v5001_v41, -inf }
 0x576   : > { %v1665_v42 = vsel %vm743_vm3, %v4997_v25, -inf  ;;  %v5007_v43 = vsel %vm1561_vm5, %v1548_v38, -1e+30 }
 0x577   : > { %1666 = vmax.xlane.f32.xlu1 %v1665_v42  ;;  %v1659_v57 = vsel %vm743_vm3, %v5007_v43, -inf }
 0x578   : > { %v3643_v44 = vpop.f32.mrb[12].mxu1 }
 0x579   : > { %v1553_v46 = vmul.f32 0.35355338, %v3643_v44  ;;  %1657 = vmax.xlane.f32.xlu0 %v1656_v45  ;;  %v1447_v49 = vpop.f32.mrb[13].mxu1 }
 0x57a   : > { %v1551_v53 = vmul.f32 0.35355338, %v1447_v49  ;;  %v3644_v54 = vpop.f32.mrb[14].mxu1 }
 0x57b   : > { %v1554_v59 = vmul.f32 0.35355338, %v3644_v54  ;;  %1660 = vmax.xlane.f32.xlu1 %v1659_v57  ;;  %v1450_v60 = vpop.f32.mrb[15].mxu1  ;;  %v5015_v63 = vsel %vm1561_vm5, %v1553_v46, -1e+30 }
 0x57c   : > { %v1552_v0 = vmul.f32 0.35355338, %v1450_v60  ;;  %v1674_v1 = vsel %vm743_vm3, %v5015_v63, -inf  ;;  %v5027_v7 = vsel %vm1561_vm5, %v1551_v53, -1e+30  ;;  %v5063_v53 = vpop.permute.xlu0 %2149 }
 0x57d   : > { %1675 = vmax.xlane.f32.xlu0 %v1674_v1  ;;  %v5023_v4 = vsel %vm1561_vm5, %v1554_v59, -1e+30  ;;  %v1668_v23 = vsel %vm743_vm3, %v5027_v7, -inf }
 0x57e   : > { %v1677_v9 = vsel %vm743_vm3, %v5023_v4, -inf  ;;  %v5033_v61 = vsel %vm1561_vm5, %v1552_v0, -1e+30 }
 0x57f   : > { %1678 = vmax.xlane.f32.xlu1 %v1677_v9  ;;  %v1671_v31 = vsel %vm743_vm3, %v5033_v61, -inf }
 0x580   : > { %v3651_v18 = vpop.f32.mrb[20].mxu0  ;;  %v5067_v57 = vpop.permute.xlu0 %2210 }
 0x581   : > { %v1557_v28 = vmul.f32 0.35355338, %v3651_v18  ;;  %v1512_v62 = vpop.f32.mrb[21].mxu0  ;;  %1669 = vmax.xlane.f32.xlu0 %v1668_v23 }
 0x582   : > { %v1555_v29 = vmul.f32 0.35355338, %v1512_v62  ;;  %v3652_v30 = vpop.f32.mrb[22].mxu0 }
 0x583   : > { %v1558_v33 = vmul.f32 0.35355338, %v3652_v30  ;;  %v1515_v6 = vpop.f32.mrb[23].mxu0  ;;  %1672 = vmax.xlane.f32.xlu1 %v1671_v31  ;;  %v5043_v34 = vsel %vm1561_vm5, %v1557_v28, -1e+30 }
 0x584   : > { %v1556_v38 = vmul.f32 0.35355338, %v1515_v6  ;;  %v1686_v16 = vsel %vm743_vm3, %v5043_v34, -inf  ;;  %v5053_v44 = vsel %vm1561_vm5, %v1555_v29, -1e+30  ;;  %v5069_v59 = vpop.permute.xlu0 %2269 }
 0x585   : > { %1687 = vmax.xlane.f32.xlu0 %v1686_v16  ;;  %v5049_v42 = vsel %vm1561_vm5, %v1558_v33, -1e+30  ;;  %v1680_v49 = vsel %vm743_vm3, %v5053_v44, -inf }
 0x586   : > { %v1689_v45 = vsel %vm743_vm3, %v5049_v42, -inf  ;;  %v5059_v46 = vsel %vm1561_vm5, %v1556_v38, -1e+30 }
 0x587   : > { %1690 = vmax.xlane.f32.xlu1 %v1689_v45  ;;  %v1683_v54 = vsel %vm743_vm3, %v5059_v46, -inf }
 0x589   : > { %1681 = vmax.xlane.f32.xlu0 %v1680_v49 }
 0x58b   : > { %1684 = vmax.xlane.f32.xlu1 %v1683_v54 }
 0x593   : > { %v1604_v60 = vpop.xlane.xlu0 %1603 }
 0x594   : > { %v1694_v9 = vsub.f32 %v4871_v2, %v1604_v60 }
 0x596   : > { %v1601_v1 = vpop.xlane.xlu1 %1600  ;;  %v1728_v28 = vmul.f32 1.442695, %v1694_v9 }
 0x597   : > { %v1598_v51 = vpop.xlane.xlu0 %1597  ;;  %v1693_v30 = vsub.f32 %v4877_v3, %v1601_v1 }
 0x598   : > { %v1692_v62 = vsub.f32 %v4883_v8, %v1598_v51  ;;  %3961 = vpow2.f32 %v1728_v28 }
 0x59a   : > { %v1619_v29 = vpop.xlane.xlu1 %1618 }
 0x59b   : > { %v1607_v0 = vpop.xlane.xlu0 %1606  ;;  %v1699_v38 = vsub.f32 %v4887_v14, %v1619_v29 }
 0x59c   : > { %2332 = vrot.lane.b32.xlu1 %v4771_v13, %s4315_s30  ;;  %v1695_v18 = vsub.f32 %v4895_v19, %v1607_v0  ;;  %v1724_v13 = vmul.f32 1.442695, %v1692_v62 }
 0x59d   : > { %v1738_v8 = vmul.f32 1.442695, %v1699_v38 }
 0x59e   : > { %v1730_v31 = vmul.f32 1.442695, %v1695_v18  ;;  %v1613_v2 = vpop.xlane.xlu1 %1612 }
 0x59f   : > { %2271 = vrot.lane.b32.xlu0 %v4763_v11, %s4315_s30  ;;  %v1616_v23 = vpop.xlane.xlu0 %1615  ;;  %v1726_v11 = vmul.f32 1.442695, %v1693_v30  ;;  %v1697_v45 = vsub.f32 %v4899_v20, %v1613_v2 }
 0x5a0   : > { %v1698_v33 = vsub.f32 %v4907_v24, %v1616_v23  ;;  %3963 = vpow2.f32 %v1730_v31 }
 0x5a1   : > { %3965 = vpow2.f32 %v1724_v13  ;;  %v1734_v24 = vmul.f32 1.442695, %v1697_v45 }
 0x5a2   : > { %v1736_v19 = vmul.f32 1.442695, %v1698_v33  ;;  %3967 = vpow2.f32 %v1726_v11  ;;  %v5083_v49 = vpop.eup %3961 }
 0x5a3   : > { %v1610_v6 = vpop.xlane.xlu0 %1609  ;;  %v1794_v14 = vsel %vm743_vm3, %v5083_v49, 0.0 }
 0x5a4   : > { %v1696_v16 = vsub.f32 %v4913_v5, %v1610_v6  ;;  %3969 = vpow2.f32 %v1736_v19 }
 0x5a5   : > { %3971 = vpow2.f32 %v1738_v8 }
 0x5a6   : > { %v1732_v3 = vmul.f32 1.442695, %v1696_v16 }
 0x5a8   : > { %3973 = vpow2.f32 %v1732_v3 }
 0x5a9   : > { %3975 = vpow2.f32 %v1734_v24 }
 0x5aa   : > { %v5085_v54 = vpop.eup %3963 }
 0x5ab   : > { %v5089_v60 = vpop.eup %3965  ;;  %v1797_v5 = vsel %vm743_vm3, %v5085_v54, 0.0 }
 0x5ac   : > { %v5093_v20 = vpop.eup %3967  ;;  %v1788_v51 = vsel %vm743_vm3, %v5089_v60, 0.0 }
 0x5ad   : > { %v1791_v1 = vsel %vm743_vm3, %v5093_v20, 0.0 }
 0x5ae   : > { %v5097_v0 = vpop.eup %3969 }
 0x5af   : > { %v5101_v9 = vpop.eup %3971  ;;  %v1806_v18 = vsel %vm743_vm3, %v5097_v0, 0.0 }
 0x5b0   : > { %v1809_v28 = vsel %vm743_vm3, %v5101_v9, 0.0 }
 0x5b2   : > { %v5105_v23 = vpop.eup %3973 }
 0x5b3   : > { %v5109_v62 = vpop.eup %3975  ;;  %v1800_v29 = vsel %vm743_vm3, %v5105_v23, 0.0 }
 0x5b4   : > { %v1803_v30 = vsel %vm743_vm3, %v5109_v62, 0.0 }
 0x5be   : > { %1795 = vadd.xlane.f32.xlu0 %v1794_v14 }
 0x5c0   : > { %1798 = vadd.xlane.f32.xlu1 %v1797_v5 }
 0x5c2   : > { %1789 = vadd.xlane.f32.xlu0 %v1788_v51 }
 0x5c4   : > { %1792 = vadd.xlane.f32.xlu1 %v1791_v1 }
 0x5c6   : > { %1807 = vadd.xlane.f32.xlu0 %v1806_v18 }
 0x5c8   : > { %1810 = vadd.xlane.f32.xlu1 %v1809_v28 }
 0x5ca   : > { %1801 = vadd.xlane.f32.xlu0 %v1800_v29 }
 0x5cc   : > { %1804 = vadd.xlane.f32.xlu1 %v1803_v30 }
 0x5ea   : > { %v1628_v31 = vpop.xlane.xlu0 %1627 }
 0x5eb   : > { %v1702_v13 = vsub.f32 %v4919_v15, %v1628_v31 }
 0x5ec   : > { %v1631_v33 = vpop.xlane.xlu1 %1630 }
 0x5ed   : > { %v1744_v6 = vmul.f32 1.442695, %v1702_v13  ;;  %v1703_v11 = vsub.f32 %v4925_v36, %v1631_v33 }
 0x5ee   : > { %v1622_v38 = vpop.xlane.xlu0 %1621 }
 0x5ef   : > { %3977 = vpow2.f32 %v1744_v6  ;;  %v1746_v2 = vmul.f32 1.442695, %v1703_v11  ;;  %v1700_v19 = vsub.f32 %v4929_v37, %v1622_v38 }
 0x5f0   : > { %v1625_v16 = vpop.xlane.xlu1 %1624 }
 0x5f1   : > { %3979 = vpow2.f32 %v1746_v2  ;;  %v1740_v8 = vmul.f32 1.442695, %v1700_v19  ;;  %v1701_v45 = vsub.f32 %v4935_v39, %v1625_v16 }
 0x5f2   : > { %v1640_v3 = vpop.xlane.xlu0 %1639 }
 0x5f3   : > { %3981 = vpow2.f32 %v1740_v8  ;;  %v1742_v24 = vmul.f32 1.442695, %v1701_v45  ;;  %v1706_v14 = vsub.f32 %v4943_v52, %v1640_v3 }
 0x5f4   : > { %v1643_v15 = vpop.xlane.xlu1 %1642 }
 0x5f5   : > { %3983 = vpow2.f32 %v1742_v24  ;;  %v1752_v5 = vmul.f32 1.442695, %v1706_v14  ;;  %v1707_v36 = vsub.f32 %v4949_v55, %v1643_v15 }
 0x5f6   : > { %v1634_v51 = vpop.xlane.xlu0 %1633 }
 0x5f7   : > { %3985 = vpow2.f32 %v1752_v5  ;;  %v1754_v1 = vmul.f32 1.442695, %v1707_v36  ;;  %v1704_v37 = vsub.f32 %v4953_v56, %v1634_v51 }
 0x5f8   : > { %v1637_v18 = vpop.xlane.xlu1 %1636 }
 0x5f9   : > { %v5122_v28 = vpop.eup %3977  ;;  %3987 = vpow2.f32 %v1754_v1  ;;  %v1748_v39 = vmul.f32 1.442695, %v1704_v37  ;;  %v1705_v29 = vsub.f32 %v4959_v58, %v1637_v18 }
 0x5fa   : > { %v1652_v30 = vpop.xlane.xlu0 %1651  ;;  %v1818_v52 = vsel %vm743_vm3, %v5122_v28, 0.0 }
 0x5fb   : > { %v5127_v31 = vpop.eup %3979  ;;  %3989 = vpow2.f32 %v1748_v39  ;;  %v1750_v55 = vmul.f32 1.442695, %v1705_v29  ;;  %v1710_v13 = vsub.f32 %v4967_v17, %v1652_v30  ;;  %1819 = vadd.xlane.f32.xlu0 %v1818_v52 }
 0x5fc   : > { %v1655_v33 = vpop.xlane.xlu1 %1654  ;;  %v1821_v56 = vsel %vm743_vm3, %v5127_v31, 0.0 }
 0x5fd   : > { %v5132_v6 = vpop.eup %3981  ;;  %3991 = vpow2.f32 %v1750_v55  ;;  %v1760_v11 = vmul.f32 1.442695, %v1710_v13  ;;  %v1711_v58 = vsub.f32 %v4973_v21, %v1655_v33  ;;  %1822 = vadd.xlane.f32.xlu1 %v1821_v56 }
 0x5fe   : > { %v1646_v38 = vpop.xlane.xlu0 %1645  ;;  %v1812_v2 = vsel %vm743_vm3, %v5132_v6, 0.0 }
 0x5ff   : > { %v5137_v19 = vpop.eup %3983  ;;  %3993 = vpow2.f32 %v1760_v11  ;;  %v1762_v17 = vmul.f32 1.442695, %v1711_v58  ;;  %v1708_v16 = vsub.f32 %v4977_v22, %v1646_v38  ;;  %1813 = vadd.xlane.f32.xlu0 %v1812_v2 }
 0x600   : > { %v1649_v8 = vpop.xlane.xlu1 %1648  ;;  %v1815_v45 = vsel %vm743_vm3, %v5137_v19, 0.0 }
 0x601   : > { %v5142_v3 = vpop.eup %3985  ;;  %3995 = vpow2.f32 %v1762_v17  ;;  %v1756_v21 = vmul.f32 1.442695, %v1708_v16  ;;  %v1709_v24 = vsub.f32 %v4983_v27, %v1649_v8  ;;  %1816 = vadd.xlane.f32.xlu1 %v1815_v45 }
 0x602   : > { %v1664_v14 = vpop.xlane.xlu0 %1663  ;;  %v1830_v15 = vsel %vm743_vm3, %v5142_v3, 0.0 }
 0x603   : > { %v5147_v5 = vpop.eup %3987  ;;  %3997 = vpow2.f32 %v1756_v21  ;;  %v1758_v22 = vmul.f32 1.442695, %v1709_v24  ;;  %v1714_v36 = vsub.f32 %v4991_v35, %v1664_v14  ;;  %1831 = vadd.xlane.f32.xlu0 %v1830_v15 }
 0x604   : > { %v1667_v51 = vpop.xlane.xlu1 %1666  ;;  %v1833_v1 = vsel %vm743_vm3, %v5147_v5, 0.0 }
 0x605   : > { %v5152_v37 = vpop.eup %3989  ;;  %3999 = vpow2.f32 %v1758_v22  ;;  %v1768_v27 = vmul.f32 1.442695, %v1714_v36  ;;  %1834 = vadd.xlane.f32.xlu1 %v1833_v1  ;;  %v1715_v18 = vsub.f32 %v4997_v25, %v1667_v51 }
 0x606   : > { %v1658_v39 = vpop.xlane.xlu0 %1657  ;;  %v1824_v29 = vsel %vm743_vm3, %v5152_v37, 0.0 }
 0x607   : > { %v5157_v30 = vpop.eup %3991  ;;  %4001 = vpow2.f32 %v1768_v27  ;;  %v1712_v35 = vsub.f32 %v5001_v41, %v1658_v39  ;;  %1825 = vadd.xlane.f32.xlu0 %v1824_v29  ;;  %v1770_v56 = vmul.f32 1.442695, %v1715_v18 }
 0x608   : > { %v1661_v52 = vpop.xlane.xlu1 %1660  ;;  %v1827_v55 = vsel %vm743_vm3, %v5157_v30, 0.0 }
 0x609   : > { %v5162_v13 = vpop.eup %3993  ;;  %v1764_v33 = vmul.f32 1.442695, %v1712_v35  ;;  %1828 = vadd.xlane.f32.xlu1 %v1827_v55  ;;  %v1713_v38 = vsub.f32 %v5007_v43, %v1661_v52 }
 0x60a   : > { %v1676_v25 = vpop.xlane.xlu0 %1675  ;;  %v1842_v11 = vsel %vm743_vm3, %v5162_v13, 0.0 }
 0x60b   : > { %v5166_v58 = vpop.eup %3995  ;;  %4003 = vpow2.f32 %v1764_v33  ;;  %v1718_v41 = vsub.f32 %v5015_v63, %v1676_v25  ;;  %1843 = vadd.xlane.f32.xlu0 %v1842_v11  ;;  %v1766_v14 = vmul.f32 1.442695, %v1713_v38 }
 0x60c   : > { %v1679_v2 = vpop.xlane.xlu1 %1678  ;;  %v1845_v17 = vsel %vm743_vm3, %v5166_v58, 0.0  ;;  %4005 = vpow2.f32 %v1770_v56 }
 0x60d   : > { %v5172_v16 = vpop.eup %3997  ;;  %v1776_v8 = vmul.f32 1.442695, %v1718_v41  ;;  %1846 = vadd.xlane.f32.xlu1 %v1845_v17  ;;  %v1719_v36 = vsub.f32 %v5023_v4, %v1679_v2 }
 0x60e   : > { %v1670_v45 = vpop.xlane.xlu0 %1669  ;;  %v1836_v21 = vsel %vm743_vm3, %v5172_v16, 0.0 }
 0x60f   : > { %v5176_v24 = vpop.eup %3999  ;;  %4007 = vpow2.f32 %v1776_v8  ;;  %v1716_v43 = vsub.f32 %v5027_v7, %v1670_v45  ;;  %1837 = vadd.xlane.f32.xlu0 %v1836_v21  ;;  %v1778_v52 = vmul.f32 1.442695, %v1719_v36 }
 0x610   : > { %v1673_v63 = vpop.xlane.xlu1 %1672  ;;  %v1839_v15 = vsel %vm743_vm3, %v5176_v24, 0.0  ;;  %4009 = vpow2.f32 %v1766_v14 }
 0x611   : > { %v5181_v22 = vpop.eup %4001  ;;  %1840 = vadd.xlane.f32.xlu1 %v1839_v15  ;;  %v1772_v51 = vmul.f32 1.442695, %v1716_v43  ;;  %v1717_v4 = vsub.f32 %v5033_v61, %v1673_v63 }
 0x612   : > { %v1688_v1 = vpop.xlane.xlu0 %1687  ;;  %v1854_v39 = vsel %vm743_vm3, %v5181_v22, 0.0 }
 0x613   : > { %v1722_v27 = vsub.f32 %v5043_v34, %v1688_v1  ;;  %4011 = vpow2.f32 %v1772_v51  ;;  %v1774_v2 = vmul.f32 1.442695, %v1717_v4 }
 0x614   : > { %v1691_v18 = vpop.xlane.xlu1 %1690 }
 0x615   : > { %v5187_v7 = vpop.eup %4003  ;;  %v1784_v29 = vmul.f32 1.442695, %v1722_v27  ;;  %v1723_v35 = vsub.f32 %v5049_v42, %v1691_v18  ;;  %1855 = vadd.xlane.f32.xlu1 %v1854_v39 }
 0x616   : > { %v1682_v55 = vpop.xlane.xlu0 %1681  ;;  %v5192_v56 = vpop.eup %4005  ;;  %v1848_v25 = vsel %vm743_vm3, %v5187_v7, 0.0 }
 0x617   : > { %4013 = vpow2.f32 %v1784_v29  ;;  %v1720_v33 = vsub.f32 %v5053_v44, %v1682_v55  ;;  %v1786_v38 = vmul.f32 1.442695, %v1723_v35  ;;  %v1857_v44 = vsel %vm743_vm3, %v5192_v56, 0.0 }
 0x618   : > { %v1685_v34 = vpop.xlane.xlu1 %1684  ;;  %4015 = vpow2.f32 %v1778_v52 }
 0x619   : > { %v5196_v11 = vpop.eup %4007  ;;  %v1780_v41 = vmul.f32 1.442695, %v1720_v33  ;;  %1849 = vadd.xlane.f32.xlu1 %v1848_v25  ;;  %v1721_v61 = vsub.f32 %v5059_v46, %v1685_v34 }
 0x61a   : > { %v1866_v42 = vsel %vm743_vm3, %v5196_v11, 0.0  ;;  %v5203_v17 = vpop.eup %4009  ;;  %v5239_v52 = vpop.permute.xlu0 %2271 }
 0x61b   : > { %4017 = vpow2.f32 %v1780_v41  ;;  %1867 = vadd.xlane.f32.xlu0 %v1866_v42  ;;  %v1782_v8 = vmul.f32 1.442695, %v1721_v61  ;;  %v1851_v21 = vsel %vm743_vm3, %v5203_v17, 0.0 }
 0x61c   : > { %4019 = vpow2.f32 %v1786_v38  ;;  %v5241_v55 = vpop.permute.xlu1 %2332 }
 0x61d   : > { %1858 = vadd.xlane.f32.xlu1 %v1857_v44  ;;  %4021 = vpow2.f32 %v1774_v2  ;;  %v5205_v45 = vpop.eup %4011 }
 0x61e   : > { %4023 = vpow2.f32 %v1782_v8  ;;  %v1860_v63 = vsel %vm743_vm3, %v5205_v45, 0.0 }
 0x621   : > { %v5209_v14 = vpop.eup %4013  ;;  %1852 = vadd.xlane.f32.xlu1 %v1851_v21 }
 0x622   : > { %v1878_v46 = vsel %vm743_vm3, %v5209_v14, 0.0  ;;  %v5213_v43 = vpop.eup %4015 }
 0x623   : > { %1879 = vadd.xlane.f32.xlu0 %v1878_v46  ;;  %v1869_v1 = vsel %vm743_vm3, %v5213_v43, 0.0 }
 0x625   : > { %v5217_v15 = vpop.eup %4017  ;;  %1861 = vadd.xlane.f32.xlu1 %v1860_v63 }
 0x626   : > { %v1872_v36 = vsel %vm743_vm3, %v5217_v15, 0.0  ;;  %v5221_v51 = vpop.eup %4019 }
 0x627   : > { %1873 = vadd.xlane.f32.xlu0 %v1872_v36  ;;  %v5225_v27 = vpop.eup %4021  ;;  %v1881_v18 = vsel %vm743_vm3, %v5221_v51, 0.0 }
 0x628   : > { %v1863_v39 = vsel %vm743_vm3, %v5225_v27, 0.0  ;;  %v5231_v29 = vpop.eup %4023 }
 0x629   : > { %1870 = vadd.xlane.f32.xlu1 %v1869_v1  ;;  %v1875_v35 = vsel %vm743_vm3, %v5231_v29, 0.0 }
 0x62b   : > { %1882 = vadd.xlane.f32.xlu0 %v1881_v18 }
 0x62d   : > { %1864 = vadd.xlane.f32.xlu1 %v1863_v39 }
 0x631   : > { %1876 = vadd.xlane.f32.xlu1 %v1875_v35 }
 0x641   : > { %2391 = vrot.lane.b32.xlu0 %v4757_v10, %s4315_s30 }
 0x642   : > { %2393 = vrot.lane.b32.xlu1 %v4765_v12, %s4315_s30 }
 0x64b   : > { %v1796_v4 = vpop.xlane.xlu0 %1795 }
 0x64d   : > { %v1799_v33 = vpop.xlane.xlu1 %1798 }
 0x64e   : > { %4025 = vrcp.f32 %v1799_v33 }
 0x64f   : > { %v1790_v34 = vpop.xlane.xlu0 %1789 }
 0x650   : > { %4027 = vrcp.f32 %v1790_v34 }
 0x651   : > { %4029 = vrcp.f32 %v1796_v4  ;;  %v1793_v25 = vpop.xlane.xlu1 %1792 }
 0x652   : > { %4031 = vrcp.f32 %v1793_v25 }
 0x653   : > { %v1808_v38 = vpop.xlane.xlu0 %1807 }
 0x655   : > { %v1811_v41 = vpop.xlane.xlu1 %1810 }
 0x656   : > { %4033 = vrcp.f32 %v1811_v41 }
 0x657   : > { %v1802_v42 = vpop.xlane.xlu0 %1801 }
 0x658   : > { %4035 = vrcp.f32 %v1802_v42  ;;  %v4026_v10 = vpop.eup %4025 }
 0x659   : > { %4037 = vrcp.f32 %v1808_v38  ;;  %v1805_v12 = vpop.xlane.xlu1 %1804  ;;  %v1919_v8 = vmul.f32 %v4026_v10, %v5085_v54 }
 0x65a   : > { %v4028_v2 = vpop.eup %4027  ;;  %4039 = vrcp.f32 %v1805_v12 }
 0x65b   : > { %v4030_v61 = vpop.eup %4029  ;;  %v1916_v21 = vmul.f32 %v4028_v2, %v5089_v60 }
 0x65c   : > { %v4032_v44 = vpop.eup %4031  ;;  %v1918_v63 = vmul.f32 %v4030_v61, %v5083_v49 }
 0x65d   : > { %v1917_v46 = vmul.f32 %v4032_v44, %v5093_v20 }
 0x65e   : > { %v1949_v1 = vpack.c.bf16 %v1919_v8, %v1918_v63 }
 0x65f   : > { %v1948_v36 = vpack.c.bf16 %v1917_v46, %v1916_v21 }
 0x660   : > { %v4034_v18 = vpop.eup %4033 }
 0x661   : > { %3657 = vmatprep.mubr.msk.bf16.mxu1 %vm743_vm3, %v1948_v36  ;;  %v1923_v54 = vmul.f32 %v4034_v18, %v5101_v9 }
 0x662   : > { %v4036_v39 = vpop.eup %4035  ;;  %3658 = vmatmul.mubr.msk.bf16.vlgmr.msra.gmra.mrb[16].mxu1 %vm743_vm3, %v1949_v1 }
 0x663   : > { %v4038_v35 = vpop.eup %4037  ;;  %3670 = vmatpush3.bf16.msra.mxu1 %v4855_v48  ;;  %v1920_v60 = vmul.f32 %v4036_v39, %v5105_v23 }
 0x664   : > { %v4040_v4 = vpop.eup %4039  ;;  %3671 = vmatprep.subr.bf16.mxu1 %v5019_v40  ;;  %v1922_v20 = vmul.f32 %v4038_v35, %v5097_v0 }
 0x665   : > { %v1921_v49 = vmul.f32 %v4040_v4, %v5109_v62 }
 0x666   : > { %v1951_v34 = vpack.c.bf16 %v1923_v54, %v1922_v20 }
 0x667   : > { %3672 = vmatpush3.bf16.msra.mxu1 %v5019_v40  ;;  %v1950_v33 = vpack.c.bf16 %v1921_v49, %v1920_v60 }
 0x668   : > { %3685 = vmatprep.subr.bf16.mxu1 %v5039_v32 }
 0x669   : > { %3665 = vmatprep.mubr.msk.bf16.mxu0 %vm743_vm3, %v1950_v33 }
 0x66a   : > { %3666 = vmatmul.mubr.msk.bf16.vlgmr.msra.gmra.mrb[24].mxu0 %vm743_vm3, %v1951_v34 }
 0x66b   : > { %3678 = vmatpush3.bf16.msra.mxu0 %v4862_v50 }
 0x66c   : > { %3679 = vmatprep.subr.bf16.mxu0 %v5063_v53 }
 0x66f   : > { %3680 = vmatpush3.bf16.msra.mxu0 %v5063_v53 }
 0x670   : > { %3693 = vmatprep.subr.bf16.mxu0 %v5069_v59 }
 0x688   : > { %v1820_v48 = vpop.xlane.xlu0 %1819 }
 0x68a   : > { %v1823_v0 = vpop.xlane.xlu1 %1822 }
 0x68b   : > { %4041 = vrcp.f32 %v1823_v0 }
 0x68c   : > { %v1814_v40 = vpop.xlane.xlu0 %1813 }
 0x68d   : > { %4043 = vrcp.f32 %v1814_v40 }
 0x68e   : > { %4045 = vrcp.f32 %v1820_v48  ;;  %v1817_v9 = vpop.xlane.xlu1 %1816 }
 0x68f   : > { %4047 = vrcp.f32 %v1817_v9 }
 0x690   : > { %v1832_v23 = vpop.xlane.xlu0 %1831 }
 0x692   : > { %v1835_v62 = vpop.xlane.xlu1 %1834 }
 0x693   : > { %4049 = vrcp.f32 %v1835_v62 }
 0x694   : > { %v1826_v25 = vpop.xlane.xlu0 %1825 }
 0x695   : > { %4051 = vrcp.f32 %v1826_v25  ;;  %v4042_v50 = vpop.eup %4041 }
 0x696   : > { %4053 = vrcp.f32 %v1832_v23  ;;  %v1829_v38 = vpop.xlane.xlu1 %1828  ;;  %v1927_v12 = vmul.f32 %v4042_v50, %v5127_v31 }
 0x697   : > { %v4044_v41 = vpop.eup %4043  ;;  %4055 = vrcp.f32 %v1829_v38 }
 0x698   : > { %v4046_v53 = vpop.eup %4045  ;;  %v1844_v42 = vpop.xlane.xlu0 %1843  ;;  %v1924_v61 = vmul.f32 %v4044_v41, %v5132_v6 }
 0x699   : > { %v4048_v10 = vpop.eup %4047  ;;  %v1926_v8 = vmul.f32 %v4046_v53, %v5122_v28 }
 0x69a   : > { %v1847_v2 = vpop.xlane.xlu1 %1846  ;;  %v1925_v44 = vmul.f32 %v4048_v10, %v5137_v19 }
 0x69b   : > { %4057 = vrcp.f32 %v1847_v2  ;;  %v1953_v63 = vpack.c.bf16 %v1927_v12, %v1926_v8 }
 0x69c   : > { %v1838_v21 = vpop.xlane.xlu0 %1837  ;;  %v1952_v46 = vpack.c.bf16 %v1925_v44, %v1924_v61 }
 0x69d   : > { %4059 = vrcp.f32 %v1838_v21  ;;  %v4050_v36 = vpop.eup %4049 }
 0x69e   : > { %4061 = vrcp.f32 %v1844_v42  ;;  %3673 = vmatprep.mubr.msk.bf16.mxu1 %vm743_vm3, %v1952_v46  ;;  %v1841_v1 = vpop.xlane.xlu1 %1840  ;;  %v1931_v28 = vmul.f32 %v4050_v36, %v5147_v5 }
 0x69f   : > { %v4052_v18 = vpop.eup %4051  ;;  %4063 = vrcp.f32 %v1841_v1  ;;  %3674 = vmatmul.mubr.msk.bf16.vlgmr.msra.gmra.mrb[20].mxu1 %vm743_vm3, %v1953_v63 }
 0x6a0   : > { %v4054_v31 = vpop.eup %4053  ;;  %3686 = vmatpush3.bf16.msra.mxu1 %v5039_v32  ;;  %v1928_v39 = vmul.f32 %v4052_v18, %v5152_v37 }
 0x6a1   : > { %v4056_v6 = vpop.eup %4055  ;;  %3687 = vmatprep.subr.bf16.mxu1 %v5067_v57  ;;  %v1930_v4 = vmul.f32 %v4054_v31, %v5142_v3 }
 0x6a2   : > { %v1856_v19 = vpop.xlane.xlu1 %1855  ;;  %v1929_v35 = vmul.f32 %v4056_v6, %v5157_v30 }
 0x6a3   : > { %v1955_v60 = vpack.c.bf16 %v1931_v28, %v1930_v4 }
 0x6a4   : > { %3688 = vmatpush3.bf16.msra.mxu1 %v5067_v57  ;;  %v1954_v54 = vpack.c.bf16 %v1929_v35, %v1928_v39 }
 0x6a5   : > { %3701 = vmatprep.subr.bf16.mxu1 %v4858_v26  ;;  %v4058_v49 = vpop.eup %4057 }
 0x6a6   : > { %3681 = vmatprep.mubr.msk.bf16.mxu0 %vm743_vm3, %v1954_v54  ;;  %v1850_v32 = vpop.xlane.xlu1 %1849  ;;  %v1935_v30 = vmul.f32 %v4058_v49, %v5166_v58 }
 0x6a7   : > { %v4060_v5 = vpop.eup %4059  ;;  %3682 = vmatmul.mubr.msk.bf16.vlgmr.msra.gmra.mrb[28].mxu0 %vm743_vm3, %v1955_v60 }
 0x6a8   : > { %v4062_v20 = vpop.eup %4061  ;;  %3694 = vmatpush3.bf16.msra.mxu0 %v5069_v59  ;;  %v1932_v3 = vmul.f32 %v4060_v5, %v5172_v16  ;;  %v1868_v48 = vpop.xlane.xlu0 %1867 }
 0x6a9   : > { %v4064_v37 = vpop.eup %4063  ;;  %3695 = vmatprep.subr.bf16.mxu0 %v5239_v52  ;;  %v1934_v34 = vmul.f32 %v4062_v20, %v5162_v13 }
 0x6aa   : > { %v1859_v57 = vpop.xlane.xlu1 %1858  ;;  %v1933_v33 = vmul.f32 %v4064_v37, %v5176_v24 }
 0x6ab   : > { %4065 = vrcp.f32 %v1859_v57  ;;  %v1957_v40 = vpack.c.bf16 %v1935_v30, %v1934_v34  ;;  %v3937_v34 = vld [vmem:[%s4584_s12] sm:$0xff]  }
 0x6ac   : > { %3696 = vmatpush3.bf16.msra.mxu0 %v5239_v52  ;;  %v1956_v0 = vpack.c.bf16 %v1933_v33, %v1932_v3  ;;  %4067 = vrcp.f32 %v1850_v32 }
 0x6ad   : > { %4069 = vrcp.f32 %v1856_v19 }
 0x6ae   : > { %3689 = vmatprep.mubr.msk.bf16.mxu1 %vm743_vm3, %v1956_v0  ;;  %v1853_v59 = vpop.xlane.xlu1 %1852 }
 0x6af   : > { %4071 = vrcp.f32 %v1853_v59  ;;  %3690 = vmatmul.mubr.msk.bf16.vlgmr.msra.gmra.mrb[24].mxu1 %vm743_vm3, %v1957_v40 }
 0x6b0   : > { %3702 = vmatpush3.bf16.msra.mxu1 %v4858_v26  ;;  %v1880_v58 = vpop.xlane.xlu0 %1879 }
 0x6b1   : > { %3703 = vmatprep.subr.bf16.mxu1 %v5241_v55 }
 0x6b2   : > { %v1862_v13 = vpop.xlane.xlu1 %1861 }
 0x6b4   : > { %3704 = vmatpush3.bf16.msra.mxu1 %v5241_v55  ;;  %v1874_v16 = vpop.xlane.xlu0 %1873 }
 0x6b5   : > { %v4066_v24 = vpop.eup %4065  ;;  %3717 = vmatprep.subr.bf16.mxu1 %v3937_v34 }
 0x6b6   : > { %v1871_v52 = vpop.xlane.xlu1 %1870  ;;  %v4068_v9 = vpop.eup %4067  ;;  %v1939_v50 = vmul.f32 %v4066_v24, %v5192_v56 }
 0x6b7   : > { %v4070_v23 = vpop.eup %4069  ;;  %4073 = vrcp.f32 %v1871_v52  ;;  %v1936_v26 = vmul.f32 %v4068_v9, %v5187_v7 }
 0x6b8   : > { %v1883_v62 = vpop.xlane.xlu0 %1882  ;;  %4075 = vrcp.f32 %v1862_v13  ;;  %v1938_v53 = vmul.f32 %v4070_v23, %v5181_v22 }
 0x6b9   : > { %v4072_v25 = vpop.eup %4071  ;;  %4077 = vrcp.f32 %v1868_v48 }
 0x6ba   : > { %v1865_v38 = vpop.xlane.xlu1 %1864  ;;  %v1937_v41 = vmul.f32 %v4072_v25, %v5203_v17  ;;  %v1959_v10 = vpack.c.bf16 %v1939_v50, %v1938_v53  ;;  %v3938_v50 = vld [vmem:[%s4584_s12 + $0x8] sm:$0xff]  }
 0x6bb   : > { %4079 = vrcp.f32 %v1865_v38 }
 0x6bc   : > { %4081 = vrcp.f32 %v1883_v62  ;;  %v2392_v55 = vpop.permute.xlu0 %2391  ;;  %v1958_v42 = vpack.c.bf16 %v1937_v41, %v1936_v26 }
 0x6bd   : > { %4083 = vrcp.f32 %v1874_v16  ;;  %3709 = vmatprep.subr.bf16.mxu0 %v2392_v55 }
 0x6be   : > { %4085 = vrcp.f32 %v1880_v58  ;;  %3697 = vmatprep.mubr.msk.bf16.mxu0 %vm743_vm3, %v1958_v42  ;;  %v1877_v56 = vpop.xlane.xlu1 %1876 }
 0x6bf   : > { %4087 = vrcp.f32 %v1877_v56  ;;  %3698 = vmatmul.mubr.msk.bf16.vlgmr.msra.gmra.mrb[32].mxu0 %vm743_vm3, %v1959_v10 }
 0x6c0   : > { %3710 = vmatpush3.bf16.msra.mxu0 %v2392_v55 }
 0x6c1   : > { %v4074_v7 = vpop.eup %4073 }
 0x6c2   : > { %v2394_v12 = vpop.permute.xlu1 %2393  ;;  %v4076_v17 = vpop.eup %4075  ;;  %v1943_v61 = vmul.f32 %v4074_v7, %v5213_v43 }
 0x6c3   : > { %3711 = vmatprep.subr.bf16.mxu0 %v2394_v12  ;;  %v4078_v22 = vpop.eup %4077  ;;  %v1940_v8 = vmul.f32 %v4076_v17, %v5205_v45 }
 0x6c4   : > { %3712 = vmatpush3.bf16.msra.mxu0 %v2394_v12  ;;  %v1942_v63 = vmul.f32 %v4078_v22, %v5196_v11 }
 0x6c5   : > { %v4080_v2 = vpop.eup %4079 }
 0x6c6   : > { %v4082_v44 = vpop.eup %4081  ;;  %v1941_v21 = vmul.f32 %v4080_v2, %v5225_v27  ;;  %v1961_v6 = vpack.c.bf16 %v1943_v61, %v1942_v63 }
 0x6c7   : > { %v4084_v46 = vpop.eup %4083  ;;  %v1947_v31 = vmul.f32 %v4082_v44, %v5221_v51 }
 0x6c8   : > { %v4086_v36 = vpop.eup %4085  ;;  %v1960_v1 = vpack.c.bf16 %v1941_v21, %v1940_v8  ;;  %v1944_v28 = vmul.f32 %v4084_v46, %v5217_v15 }
 0x6c9   : > { %v4088_v18 = vpop.eup %4087  ;;  %v1946_v19 = vmul.f32 %v4086_v36, %v5209_v14 }
 0x6ca   : > { %3705 = vmatprep.mubr.msk.bf16.mxu1 %vm743_vm3, %v1960_v1  ;;  %v1945_v43 = vmul.f32 %v4088_v18, %v5231_v29 }
 0x6cb   : > { %3706 = vmatmul.mubr.msk.bf16.vlgmr.msra.gmra.mrb[28].mxu1 %vm743_vm3, %v1961_v6  ;;  %v1963_v27 = vpack.c.bf16 %v1947_v31, %v1946_v19 }
 0x6cc   : > { %v1962_v45 = vpack.c.bf16 %v1945_v43, %v1944_v28  ;;  %3718 = vmatpush3.bf16.msra.mxu1 %v3937_v34 }
 0x6cd   : > { %3719 = vmatprep.subr.bf16.mxu1 %v3938_v50 }
 0x6ce   : > { %3713 = vmatprep.mubr.msk.bf16.mxu0 %vm743_vm3, %v1962_v45 }
 0x6cf   : > { %3714 = vmatmul.mubr.msk.bf16.vlgmr.msra.gmra.mrb[36].mxu0 %vm743_vm3, %v1963_v27 }
 0x6d0   : > { %3720 = vmatpush3.bf16.msra.mxu1 %v3938_v50 }
 0x735   : > { %v5309_v11 = vpop.f32.mrb[16].mxu1 }
 0x736   : > { %v5311_v51 = vpop.f32.mrb[17].mxu1 }
 0x737   : > { %v5313_v39 = vpop.f32.mrb[18].mxu1 }
 0x738   : > { %v5315_v35 = vpop.f32.mrb[19].mxu1 }
 0x73d   : > { %v5317_v15 = vpop.f32.mrb[24].mxu0 }
 0x73e   : > { %v5319_v29 = vpop.f32.mrb[25].mxu0 }
 0x73f   : > { %v5321_v14 = vpop.f32.mrb[26].mxu0 }
 0x740   : > { %v5323_v4 = vpop.f32.mrb[27].mxu0 }
 0x772   : > { %v3675_v54 = vpop.f32.mrb[20].mxu1 }
 0x773   : > { %v2132_v60 = vpop.f32.mrb[21].mxu1 }
 0x774   : > { %v3676_v49 = vpop.f32.mrb[22].mxu1 }
 0x775   : > { %v3875_v32 = vpack.i.bf16 %v3676_v49, %v3675_v54  ;;  %v2135_v5 = vpop.f32.mrb[23].mxu1 }
 0x776   : > { %v3880_v20 = vpack.i.bf16 %v2135_v5, %v2132_v60 }
 0x777   : > { %3876 = vrot.lane.b32.xlu1 %v3875_v32, %s4316_s26 }
 0x778   : > { %3881 = vrot.lane.b32.xlu0 %v3880_v20, %s4316_s26 }
 0x77a   : > { %v3683_v37 = vpop.f32.mrb[28].mxu0 }
 0x77b   : > { %v2193_v30 = vpop.f32.mrb[29].mxu0 }
 0x77c   : > { %v3684_v57 = vpop.f32.mrb[30].mxu0 }
 0x77d   : > { %v3885_v3 = vpack.i.bf16 %v3684_v57, %v3683_v37  ;;  %v2196_v33 = vpop.f32.mrb[31].mxu0 }
 0x77e   : > { %v3890_v48 = vpack.i.bf16 %v2196_v33, %v2193_v30 }
 0x77f   : > { %3886 = vrot.lane.b32.xlu1 %v3885_v3, %s4316_s26 }
 0x780   : > { %3891 = vrot.lane.b32.xlu0 %v3890_v48, %s4316_s26 }
 0x782   : > { %v3691_v0 = vpop.f32.mrb[24].mxu1 }
 0x783   : > { %v2254_v40 = vpop.f32.mrb[25].mxu1 }
 0x784   : > { %v3692_v59 = vpop.f32.mrb[26].mxu1 }
 0x785   : > { %v3895_v58 = vpack.i.bf16 %v3692_v59, %v3691_v0  ;;  %v2257_v13 = vpop.f32.mrb[27].mxu1 }
 0x786   : > { %v3900_v16 = vpack.i.bf16 %v2257_v13, %v2254_v40 }
 0x787   : > { %3896 = vrot.lane.b32.xlu1 %v3895_v58, %s4317_s16 }
 0x788   : > { %3901 = vrot.lane.b32.xlu0 %v3900_v16, %s4317_s16 }
 0x792   : > { %v3699_v24 = vpop.f32.mrb[32].mxu0 }
 0x793   : > { %v2315_v52 = vpop.f32.mrb[33].mxu0 }
 0x794   : > { %v3700_v9 = vpop.f32.mrb[34].mxu0 }
 0x795   : > { %v3920_v23 = vpack.i.bf16 %v3700_v9, %v3699_v24  ;;  %v2318_v62 = vpop.f32.mrb[35].mxu0 }
 0x796   : > { %v3915_v25 = vpack.i.bf16 %v2318_v62, %v2315_v52 }
 0x79e   : > { %v3707_v38 = vpop.f32.mrb[28].mxu1 }
 0x79f   : > { %v2376_v26 = vpop.f32.mrb[29].mxu1 }
 0x7a0   : > { %v3708_v41 = vpop.f32.mrb[30].mxu1 }
 0x7a1   : > { %v3905_v53 = vpack.i.bf16 %v3708_v41, %v3707_v38  ;;  %v2379_v55 = vpop.f32.mrb[31].mxu1 }
 0x7a2   : > { %v3910_v42 = vpack.i.bf16 %v2379_v55, %v2376_v26  ;;  %v3715_v10 = vpop.f32.mrb[36].mxu0 }
 0x7a3   : > { %3906 = vrot.lane.b32.xlu1 %v3905_v53, %s4318_s18  ;;  %v2437_v56 = vpop.f32.mrb[37].mxu0 }
 0x7a4   : > { %3911 = vrot.lane.b32.xlu0 %v3910_v42, %s4318_s18  ;;  %v3716_v7 = vpop.f32.mrb[38].mxu0 }
 0x7a5   : > { %v3930_v12 = vpack.i.bf16 %v3716_v7, %v3715_v10  ;;  %v2440_v17 = vpop.f32.mrb[39].mxu0 }
 0x7a6   : > { %v3925_v22 = vpack.i.bf16 %v2440_v17, %v2437_v56 }
 0x7a7   : > { %3921 = vrot.lane.b32.xlu1 %v3920_v23, %s4317_s16 }
 0x7a8   : > { %3916 = vrot.lane.b32.xlu0 %v3915_v25, %s4317_s16 }
 0x7ab   : > { %3931 = vrot.lane.b32.xlu1 %v3930_v12, %s4318_s18 }
 0x7ac   : > { %3926 = vrot.lane.b32.xlu0 %v3925_v22, %s4318_s18 }
 0x7e9   : > { %v3877_v2 = vpop.permute.xlu1 %3876 }
 0x7ea   : > { %v3882_v61 = vpop.permute.xlu0 %3881  ;;  %v3879_v46 = vunpack.i.h.bf16 %v3877_v2  ;;  %v3878_v63 = vunpack.i.l.bf16 %v3877_v2 }
 0x7eb   : > { %v3884_v36 = vunpack.i.h.bf16 %v3882_v61  ;;  %v3883_v18 = vunpack.i.l.bf16 %v3882_v61  ;;  %v2584_v61 = vsub.s32 3, %v4700_v47 }
 0x7ec   : > { %v2551_v19 = vsel %vm1010_vm4, %v5313_v39, %v3879_v46  ;;  %v2550_v45 = vsel %vm1010_vm4, %v5309_v11, %v3878_v63 }
 0x7ed   : > { %v2549_v27 = vsel %vm1010_vm4, %v5315_v35, %v3884_v36  ;;  %v2548_v60 = vsel %vm1010_vm4, %v5311_v51, %v3883_v18 }
 0x7f1   : > { %v3887_v44 = vpop.permute.xlu1 %3886 }
 0x7f2   : > { %v3892_v8 = vpop.permute.xlu0 %3891  ;;  %v3889_v49 = vunpack.i.h.bf16 %v3887_v44  ;;  %v3888_v34 = vunpack.i.l.bf16 %v3887_v44  ;;  %v5366_v44 = vld [vmem:[%s485_s5] sm:$0xff] }
 0x7f3   : > { %v3894_v59 = vunpack.i.h.bf16 %v3892_v8  ;;  %v3893_v58 = vunpack.i.l.bf16 %v3892_v8  ;;  %v2585_v8 = vrot.slane %v5366_v44, %v2584_v61 }
 0x7f4   : > { %v2555_v62 = vsel %vm1010_vm4, %v5321_v14, %v3889_v49  ;;  %v2554_v25 = vsel %vm1010_vm4, %v5317_v15, %v3888_v34  ;;  %v4126_v34 = vld [vmem:[#allocation2 + $0x20] sm:$0xff] }
 0x7f5   : > { %v2553_v38 = vsel %vm1010_vm4, %v5323_v4, %v3894_v59  ;;  %v2552_v26 = vsel %vm1010_vm4, %v5319_v29, %v3893_v58  ;;  %v4128_v59 = vld [vmem:[#allocation2 + $0x38] sm:$0xff] }
 0x7f9   : > { %v3897_v21 = vpop.permute.xlu1 %3896 }
 0x7fa   : > { %v3902_v1 = vpop.permute.xlu0 %3901  ;;  %v3899_v31 = vunpack.i.h.bf16 %v3897_v21  ;;  %v3898_v6 = vunpack.i.l.bf16 %v3897_v21 }
 0x7fb   : > { %v3904_v28 = vunpack.i.h.bf16 %v3902_v1  ;;  %v3903_v43 = vunpack.i.l.bf16 %v3902_v1 }
 0x7fc   : > { %v2559_v37 = vsel %vm2556_vm6, %v2550_v45, %v3898_v6  ;;  %v2560_v30 = vsel %vm2556_vm6, %v2551_v19, %v3899_v31  ;;  %v4122_v31 = vld [vmem:[#allocation2] sm:$0xff] }
 0x7fd   : > { %v2558_v11 = vsel %vm2556_vm6, %v2549_v27, %v3904_v28  ;;  %v2557_v3 = vsel %vm2556_vm6, %v2548_v60, %v3903_v43  ;;  %v4123_v43 = vld [vmem:[#allocation2 + $0x10] sm:$0xff]  ;;  %v4124_v27 = vld [vmem:[#allocation2 + $0x8] sm:$0xff] }
 0x815   : > { %v3907_v54 = vpop.permute.xlu1 %3906 }
 0x816   : > { %v3909_v32 = vunpack.i.h.bf16 %v3907_v54  ;;  %v3908_v5 = vunpack.i.l.bf16 %v3907_v54  ;;  %v3912_v20 = vpop.permute.xlu0 %3911 }
 0x817   : > { %v3914_v39 = vunpack.i.h.bf16 %v3912_v20  ;;  %v3913_v57 = vunpack.i.l.bf16 %v3912_v20  ;;  %v4125_v20 = vld [vmem:[#allocation2 + $0x18] sm:$0xff] }
 0x818   : > { %v2568_v35 = vsel %vm2565_vm7, %v2559_v37, %v3908_v5  ;;  %v2569_v33 = vsel %vm2565_vm7, %v2560_v30, %v3909_v32 }
 0x819   : > { %v2575_v51 = vpack.c.bf16 %v2569_v33, %v2568_v35  ;;  %v2567_v48 = vsel %vm2565_vm7, %v2558_v11, %v3914_v39  ;;  %v2566_v0 = vsel %vm2565_vm7, %v2557_v3, %v3913_v57  ;;  %v3922_v40 = vpop.permute.xlu1 %3921 }
 0x81a   : > { %v2574_v13 = vpack.c.bf16 %v2567_v48, %v2566_v0  ;;  %v3917_v16 = vpop.permute.xlu0 %3916  ;;  %v3924_v24 = vunpack.i.h.bf16 %v3922_v40  ;;  %v3923_v52 = vunpack.i.l.bf16 %v3922_v40  ;;  %v4127_v48 = vld [vmem:[#allocation2 + $0x28] sm:$0xff] }
 0x81b   : > { %v3919_v9 = vunpack.i.h.bf16 %v3917_v16  ;;  %v3918_v23 = vunpack.i.l.bf16 %v3917_v16  ;;  %v4129_v16 = vld [vmem:[#allocation2 + $0x30] sm:$0xff] }
 0x81c   : > { %3721 = vmatprep.mubr.msk.bf16.mxu1 %vm743_vm3, %v2574_v13  ;;  %v2563_v42 = vsel %vm2556_vm6, %v2554_v25, %v3923_v52  ;;  %v2564_v14 = vsel %vm2556_vm6, %v2555_v62, %v3924_v24 }
 0x81d   : > { %v3932_v50 = vpop.permute.xlu1 %3931  ;;  %3722 = vmatmul.mubr.msk.bf16.vlgmr.msra.gmra.mrb[32].mxu1 %vm743_vm3, %v2575_v51  ;;  %v2562_v15 = vsel %vm2556_vm6, %v2553_v38, %v3919_v9  ;;  %v2561_v7 = vsel %vm2556_vm6, %v2552_v26, %v3918_v23 }
 0x81e   : > { %v3934_v41 = vunpack.i.h.bf16 %v3932_v50  ;;  %v3933_v53 = vunpack.i.l.bf16 %v3932_v50  ;;  %v3927_v55 = vpop.permute.xlu0 %3926 }
 0x81f   : > { %v3929_v10 = vunpack.i.h.bf16 %v3927_v55  ;;  %v3928_v56 = vunpack.i.l.bf16 %v3927_v55 }
 0x820   : > { %v2572_v12 = vsel %vm2565_vm7, %v2563_v42, %v3933_v53  ;;  %v2573_v4 = vsel %vm2565_vm7, %v2564_v14, %v3934_v41 }
 0x821   : > { %v2577_v17 = vpack.c.bf16 %v2573_v4, %v2572_v12  ;;  %v2571_v29 = vsel %vm2565_vm7, %v2562_v15, %v3929_v10  ;;  %v2570_v22 = vsel %vm2565_vm7, %v2561_v7, %v3928_v56 }
 0x822   : > { %v2576_v2 = vpack.c.bf16 %v2571_v29, %v2570_v22 }
 0x824   : > { %3725 = vmatprep.mubr.msk.bf16.mxu1 %vm743_vm3, %v2576_v2 }
 0x825   : > { %3726 = vmatmul.mubr.msk.bf16.gmra.mrb[36].mxu1 %vm743_vm3, %v2577_v17 }
 0x8f0   : > { %v3723_v21 = vpop.f32.mrb[32].mxu1 }
 0x8f1   : > { %v2644_v46 = vpop.f32.mrb[33].mxu1  ;;  %v2653_v63 = vadd.f32 %v3723_v21, %v2585_v8 }
 0x8f2   : > { %v2645_v36 = vadd.f32 %v2644_v46, %v2585_v8  ;;  %v3724_v1 = vpop.f32.mrb[34].mxu1 }
 0x8f3   : > { %v2647_v18 = vpop.f32.mrb[35].mxu1  ;;  %v5371_v19 = vadd.f32 %v4123_v43, %v2653_v63  ;;  %v2656_v45 = vadd.f32 %v3724_v1, %v2585_v8 }
 0x8f4   : > { %v5369_v6 = vadd.f32 %v4122_v31, %v2645_v36  ;;  %v2648_v28 = vadd.f32 %v2647_v18, %v2585_v8 }
 0x8f5   : > { %v5379_v37 = vadd.f32 %v4125_v20, %v2656_v45  ;;  %v2689_v57 = vsel %vm743_vm3, %v5371_v19, 0.0 }
 0x8f6   : > { %v5373_v54 = vadd.f32 %v4124_v27, %v2648_v28  ;;  %v2683_v60 = vsel %vm743_vm3, %v5369_v6, 0.0 }
 0x8f7   : > { %2684 = vadd.xlane.f32.xlu0 %v2683_v60  ;;  %v2692_v40 = vsel %vm743_vm3, %v5379_v37, 0.0 }
 0x8f8   : > { %v3727_v49 = vpop.f32.mrb[36].mxu1  ;;  %v2686_v32 = vsel %vm743_vm3, %v5373_v54, 0.0 }
 0x8f9   : > { %v2660_v5 = vpop.f32.mrb[37].mxu1  ;;  %2687 = vadd.xlane.f32.xlu1 %v2686_v32  ;;  %v2669_v33 = vadd.f32 %v3727_v49, %v2585_v8 }
 0x8fa   : > { %v2661_v30 = vadd.f32 %v2660_v5, %v2585_v8  ;;  %v3728_v39 = vpop.f32.mrb[38].mxu1 }
 0x8fb   : > { %v2663_v11 = vpop.f32.mrb[39].mxu1  ;;  %2690 = vadd.xlane.f32.xlu0 %v2689_v57  ;;  %v2672_v3 = vadd.f32 %v3728_v39, %v2585_v8  ;;  %v5393_v24 = vadd.f32 %v4129_v16, %v2669_v33  ;;  %v3939_v57 = vld [vmem:[%s494_s20] sm:$0xff]  }
 0x8fc   : > { %v2664_v35 = vadd.f32 %v2663_v11, %v2585_v8  ;;  %v5383_v51 = vadd.f32 %v4126_v34, %v2661_v30  ;;  %3729 = vmatprep.subr.bf16.mxu0 %v3939_v57  ;;  %v3940_v11 = vld [vmem:[%s494_s20 + $0x8] sm:$0xff]  }
 0x8fd   : > { %v5389_v58 = vadd.f32 %v4128_v59, %v2672_v3  ;;  %v2701_v23 = vsel %vm743_vm3, %v5393_v24, 0.0  ;;  %3730 = vmatpush3.bf16.msra.mxu0 %v3939_v57 }
 0x8fe   : > { %v5385_v0 = vadd.f32 %v4127_v48, %v2664_v35  ;;  %v2695_v52 = vsel %vm743_vm3, %v5383_v51, 0.0  ;;  %3731 = vmatprep.subr.bf16.mxu0 %v3940_v11 }
 0x8ff   : > { %2693 = vadd.xlane.f32.xlu0 %v2692_v40  ;;  %v2704_v9 = vsel %vm743_vm3, %v5389_v58, 0.0 }
 0x900   : > { %v2698_v13 = vsel %vm743_vm3, %v5385_v0, 0.0 }
 0x901   : > { %2699 = vadd.xlane.f32.xlu1 %v2698_v13  ;;  %3732 = vmatpush3.bf16.msra.mxu0 %v3940_v11 }
 0x903   : > { %2696 = vadd.xlane.f32.xlu0 %v2695_v52 }
 0x905   : > { %2705 = vadd.xlane.f32.xlu1 %v2704_v9 }
 0x907   : > { %2702 = vadd.xlane.f32.xlu0 %v2701_v23  ;;  %v2789_v23 = vsub.s32 4, %v4700_v47 }
 0x984   : > { %v2685_v62 = vpop.xlane.xlu0 %2684 }
 0x985   : > { %v2707_v25 = vmul.f32 0.03125, %v2685_v62 }
 0x986   : > { %v2688_v50 = vpop.xlane.xlu1 %2687 }
 0x987   : > { %v5402_v38 = vsub.f32 %v5369_v6, %v2707_v25  ;;  %v2708_v26 = vmul.f32 0.03125, %v2688_v50 }
 0x988   : > { %v2691_v41 = vpop.xlane.xlu0 %2690 }
 0x989   : > { %v5405_v53 = vsub.f32 %v5373_v54, %v2708_v26  ;;  %v2709_v55 = vmul.f32 0.03125, %v2691_v41  ;;  %v2723_v42 = vmul.f32 %v5402_v38, %v5402_v38 }
 0x98b   : > { %v5410_v14 = vsub.f32 %v5371_v19, %v2709_v55  ;;  %v2731_v10 = vsel %vm743_vm3, %v2723_v42, 0.0  ;;  %v2724_v56 = vmul.f32 %v5405_v53, %v5405_v53  ;;  %v2790_v55 = vrot.slane %v5366_v44, %v2789_v23 }
 0x98c   : > { %2732 = vadd.xlane.f32.xlu0 %v2731_v10  ;;  %v2694_v15 = vpop.xlane.xlu0 %2693  ;;  %v2801_v42 = vsub.s32 5, %v4700_v47 }
 0x98d   : > { %v2710_v7 = vmul.f32 0.03125, %v2694_v15  ;;  %v2734_v12 = vsel %vm743_vm3, %v2724_v56, 0.0  ;;  %v2725_v4 = vmul.f32 %v5410_v14, %v5410_v14 }
 0x98e   : > { %2735 = vadd.xlane.f32.xlu1 %v2734_v12  ;;  %v2700_v17 = vpop.xlane.xlu1 %2699 }
 0x98f   : > { %v5419_v29 = vsub.f32 %v5379_v37, %v2710_v7  ;;  %v2712_v22 = vmul.f32 0.03125, %v2700_v17  ;;  %v2737_v2 = vsel %vm743_vm3, %v2725_v4, 0.0 }
 0x990   : > { %2738 = vadd.xlane.f32.xlu0 %v2737_v2  ;;  %v2697_v61 = vpop.xlane.xlu0 %2696 }
 0x991   : > { %v5423_v8 = vsub.f32 %v5385_v0, %v2712_v22  ;;  %v2711_v21 = vmul.f32 0.03125, %v2697_v61  ;;  %v2726_v46 = vmul.f32 %v5419_v29, %v5419_v29 }
 0x992   : > { %v2706_v63 = vpop.xlane.xlu1 %2705 }
 0x993   : > { %v5428_v36 = vsub.f32 %v5383_v51, %v2711_v21  ;;  %v2714_v1 = vmul.f32 0.03125, %v2706_v63  ;;  %v2740_v18 = vsel %vm743_vm3, %v2726_v46, 0.0  ;;  %v2728_v31 = vmul.f32 %v5423_v8, %v5423_v8 }
 0x994   : > { %2741 = vadd.xlane.f32.xlu1 %v2740_v18  ;;  %v2703_v28 = vpop.xlane.xlu0 %2702  ;;  %v2802_v46 = vrot.slane %v5366_v44, %v2801_v42 }
 0x995   : > { %v5434_v43 = vsub.f32 %v5389_v58, %v2714_v1  ;;  %v2713_v45 = vmul.f32 0.03125, %v2703_v28  ;;  %v2727_v27 = vmul.f32 %v5428_v36, %v5428_v36  ;;  %v2746_v49 = vsel %vm743_vm3, %v2728_v31, 0.0 }
 0x997   : > { %v5439_v60 = vsub.f32 %v5393_v24, %v2713_v45  ;;  %v2743_v32 = vsel %vm743_vm3, %v2727_v27, 0.0  ;;  %v2730_v5 = vmul.f32 %v5434_v43, %v5434_v43 }
 0x998   : > { %2747 = vadd.xlane.f32.xlu1 %v2746_v49  ;;  %2744 = vadd.xlane.f32.xlu0 %v2743_v32 }
 0x999   : > { %v2729_v20 = vmul.f32 %v5439_v60, %v5439_v60  ;;  %v2752_v30 = vsel %vm743_vm3, %v2730_v5, 0.0 }
 0x99b   : > { %v2749_v39 = vsel %vm743_vm3, %v2729_v20, 0.0 }
 0x99c   : > { %2753 = vadd.xlane.f32.xlu1 %v2752_v30  ;;  %2750 = vadd.xlane.f32.xlu0 %v2749_v39 }
 0xa19   : > { %v2733_v3 = vpop.xlane.xlu0 %2732 }
 0xa1a   : > { %v2755_v35 = vmul.f32 0.03125, %v2733_v3 }
 0xa1b   : > { %v2736_v33 = vpop.xlane.xlu1 %2735 }
 0xa1c   : > { %v2763_v34 = vadd.f32 1e-05, %v2755_v35  ;;  %v2756_v48 = vmul.f32 0.03125, %v2736_v33 }
 0xa1d   : > { %v2739_v40 = vpop.xlane.xlu0 %2738 }
 0xa1e   : > { %4089 = vrsqrt.f32 %v2763_v34  ;;  %v2764_v59 = vadd.f32 1e-05, %v2756_v48  ;;  %v2757_v13 = vmul.f32 0.03125, %v2739_v40 }
 0xa20   : > { %4091 = vrsqrt.f32 %v2764_v59  ;;  %v2765_v16 = vadd.f32 1e-05, %v2757_v13 }
 0xa21   : > { %v2742_v52 = vpop.xlane.xlu1 %2741 }
 0xa22   : > { %4093 = vrsqrt.f32 %v2765_v16  ;;  %v2758_v9 = vmul.f32 0.03125, %v2742_v52 }
 0xa24   : > { %v2766_v62 = vadd.f32 1e-05, %v2758_v9 }
 0xa25   : > { %v2748_v25 = vpop.xlane.xlu1 %2747  ;;  %v2745_v50 = vpop.xlane.xlu0 %2744 }
 0xa26   : > { %4095 = vrsqrt.f32 %v2766_v62  ;;  %v2760_v26 = vmul.f32 0.03125, %v2748_v25  ;;  %v2759_v41 = vmul.f32 0.03125, %v2745_v50  ;;  %v3942_v62 = vld [vmem:[%s4589_s15 + $0x8] sm:$0xff]   ;;  %v3944_v25 = vld [vmem:[%s4589_s15 + $0x18] sm:$0xff]   ;;  %v2821_v50 = vsub.s32 6, %v4700_v47 }
 0xa28   : > { %v4090_v10 = vpop.eup %4089  ;;  %v2768_v56 = vadd.f32 1e-05, %v2760_v26  ;;  %v2767_v15 = vadd.f32 1e-05, %v2759_v41  ;;  %v2822_v26 = vrot.slane %v5366_v44, %v2821_v50 }
 0xa29   : > { %v2779_v7 = vmul.f32 %v4090_v10, %v5402_v38  ;;  %v2754_v12 = vpop.xlane.xlu1 %2753  ;;  %v2751_v4 = vpop.xlane.xlu0 %2750 }
 0xa2a   : > { %v4092_v17 = vpop.eup %4091  ;;  %4097 = vrsqrt.f32 %v2768_v56  ;;  %v2762_v22 = vmul.f32 0.03125, %v2754_v12  ;;  %v2761_v2 = vmul.f32 0.03125, %v2751_v4 }
 0xa2b   : > { %v2780_v61 = vmul.f32 %v4092_v17, %v5405_v53  ;;  %4099 = vrsqrt.f32 %v2767_v15  ;;  %v2791_v21 = vmul.f32 %v2790_v55, %v2779_v7 }
 0xa2c   : > { %v4094_v63 = vpop.eup %4093  ;;  %v2770_v1 = vadd.f32 1e-05, %v2762_v22  ;;  %v2769_v18 = vadd.f32 1e-05, %v2761_v2 }
 0xa2d   : > { %v2781_v31 = vmul.f32 %v4094_v63, %v5410_v14  ;;  %v2792_v28 = vmul.f32 %v2790_v55, %v2780_v61  ;;  %v2803_v38 = vadd.f32 %v2802_v46, %v2791_v21 }
 0xa2e   : > { %4101 = vrsqrt.f32 %v2770_v1 }
 0xa2f   : > { %4103 = vrsqrt.f32 %v2769_v18  ;;  %v2804_v45 = vadd.f32 %v2802_v46, %v2792_v28  ;;  %v2793_v49 = vmul.f32 %v2790_v55, %v2781_v31 }
 0xa30   : > { %v4096_v27 = vpop.eup %4095 }
 0xa31   : > { %v2782_v32 = vmul.f32 %v4096_v27, %v5419_v29  ;;  %v2811_v5 = vpack.c.bf16 %v2804_v45, %v2803_v38  ;;  %v2805_v57 = vadd.f32 %v2802_v46, %v2793_v49 }
 0xa33   : > { %v2794_v53 = vmul.f32 %v2790_v55, %v2782_v32  ;;  %3733 = vmatprep.mubr.msk.bf16.mxu0 %vm743_vm3, %v2811_v5 }
 0xa34   : > { %v4098_v20 = vpop.eup %4097 }
 0xa35   : > { %v4100_v30 = vpop.eup %4099  ;;  %v2784_v39 = vmul.f32 %v4098_v20, %v5423_v8  ;;  %v2806_v11 = vadd.f32 %v2802_v46, %v2794_v53 }
 0xa36   : > { %v2783_v14 = vmul.f32 %v4100_v30, %v5428_v36 }
 0xa37   : > { %v2812_v3 = vpack.c.bf16 %v2806_v11, %v2805_v57  ;;  %v2796_v35 = vmul.f32 %v2790_v55, %v2784_v39 }
 0xa38   : > { %v4102_v33 = vpop.eup %4101  ;;  %v2795_v34 = vmul.f32 %v2790_v55, %v2783_v14 }
 0xa39   : > { %v4104_v48 = vpop.eup %4103  ;;  %v2786_v29 = vmul.f32 %v4102_v33, %v5434_v43  ;;  %3734 = vmatmul.mubr.msk.bf16.vlgmr.msra.gmra.mrb[40].mxu0 %vm743_vm3, %v2812_v3  ;;  %v2808_v40 = vadd.f32 %v2802_v46, %v2796_v35  ;;  %v3941_v43 = vld [vmem:[%s4589_s15] sm:$0xff]  }
 0xa3a   : > { %v2785_v59 = vmul.f32 %v4104_v48, %v5439_v60  ;;  %v2807_v8 = vadd.f32 %v2802_v46, %v2795_v34  ;;  %3741 = vmatprep.subr.bf16.mxu1 %v3941_v43  ;;  %v3943_v60 = vld [vmem:[%s4589_s15 + $0x10] sm:$0xff]  }
 0xa3b   : > { %v2798_v13 = vmul.f32 %v2790_v55, %v2786_v29  ;;  %3742 = vmatpush3.bf16.msra.mxu1 %v3941_v43 }
 0xa3c   : > { %v2813_v16 = vpack.c.bf16 %v2808_v40, %v2807_v8  ;;  %v2797_v36 = vmul.f32 %v2790_v55, %v2785_v59  ;;  %3743 = vmatprep.subr.bf16.mxu1 %v3942_v62 }
 0xa3d   : > { %v2810_v52 = vadd.f32 %v2802_v46, %v2798_v13 }
 0xa3e   : > { %3737 = vmatprep.mubr.msk.bf16.mxu0 %vm743_vm3, %v2813_v16  ;;  %v2809_v9 = vadd.f32 %v2802_v46, %v2797_v36 }
 0xa3f   : > { %3744 = vmatpush3.bf16.msra.mxu1 %v3942_v62 }
 0xa40   : > { %v2814_v23 = vpack.c.bf16 %v2810_v52, %v2809_v9  ;;  %3745 = vmatprep.subr.bf16.mxu1 %v3943_v60 }
 0xa42   : > { %3738 = vmatmul.mubr.msk.bf16.gmra.mrb[44].mxu0 %vm743_vm3, %v2814_v23 }
 0xa43   : > { %3746 = vmatpush3.bf16.msra.mxu1 %v3943_v60 }
 0xa44   : > { %3747 = vmatprep.subr.bf16.mxu1 %v3944_v25 }
 0xa47   : > { %3748 = vmatpush3.bf16.msra.mxu1 %v3944_v25 }
 0xb0c   : > { %v3735_v41 = vpop.f32.mrb[40].mxu0 }
 0xb0d   : > { %v5475_v55 = vadd.f32 %v3735_v41, %v2822_v26  ;;  %v2881_v42 = vpop.f32.mrb[41].mxu0 }
 0xb0e   : > { %v5477_v10 = vadd.f32 %v2881_v42, %v2822_v26  ;;  %v3736_v56 = vpop.f32.mrb[42].mxu0 }
 0xb0f   : > { %v2914_v15 = vmul.f32 %v5475_v55, %v5475_v55  ;;  %v5481_v7 = vadd.f32 %v3736_v56, %v2822_v26  ;;  %v2884_v12 = vpop.f32.mrb[43].mxu0 }
 0xb10   : > { %v2912_v4 = vmul.f32 %v5477_v10, %v5477_v10  ;;  %v5485_v17 = vadd.f32 %v2884_v12, %v2822_v26 }
 0xb11   : > { %v2922_v22 = vmul.f32 %v2914_v15, %v5475_v55  ;;  %v2915_v2 = vmul.f32 %v5481_v7, %v5481_v7 }
 0xb12   : > { %v2920_v61 = vmul.f32 %v2912_v4, %v5477_v10  ;;  %v2913_v21 = vmul.f32 %v5485_v17, %v5485_v17 }
 0xb13   : > { %v2930_v46 = vmul.f32 0.044715, %v2922_v22  ;;  %v2923_v63 = vmul.f32 %v2915_v2, %v5481_v7 }
 0xb14   : > { %v2928_v1 = vmul.f32 0.044715, %v2920_v61  ;;  %v2921_v18 = vmul.f32 %v2913_v21, %v5485_v17 }
 0xb15   : > { %v2938_v31 = vadd.f32 %v2930_v46, %v5475_v55  ;;  %v2931_v28 = vmul.f32 0.044715, %v2923_v63  ;;  %v3739_v38 = vpop.f32.mrb[44].mxu0 }
 0xb16   : > { %v2936_v45 = vadd.f32 %v2928_v1, %v5477_v10  ;;  %v2929_v27 = vmul.f32 0.044715, %v2921_v18  ;;  %v5497_v49 = vadd.f32 %v3739_v38, %v2822_v26  ;;  %v2897_v32 = vpop.f32.mrb[45].mxu0 }
 0xb17   : > { %v2946_v5 = vmul.f32 0.7978846, %v2938_v31  ;;  %v2939_v53 = vadd.f32 %v2931_v28, %v5481_v7  ;;  %v5500_v20 = vadd.f32 %v2897_v32, %v2822_v26  ;;  %v3740_v30 = vpop.f32.mrb[46].mxu0 }
 0xb18   : > { %v2944_v39 = vmul.f32 0.7978846, %v2936_v45  ;;  %v2937_v57 = vadd.f32 %v2929_v27, %v5485_v17  ;;  %v2918_v11 = vmul.f32 %v5497_v49, %v5497_v49  ;;  %v5505_v14 = vadd.f32 %v3740_v30, %v2822_v26  ;;  %v2900_v3 = vpop.f32.mrb[47].mxu0 }
 0xb19   : > { %4105 = vtanh.f32 %v2946_v5  ;;  %v2947_v35 = vmul.f32 0.7978846, %v2939_v53  ;;  %v2916_v33 = vmul.f32 %v5500_v20, %v5500_v20  ;;  %v5509_v34 = vadd.f32 %v2900_v3, %v2822_v26 }
 0xb1a   : > { %4107 = vtanh.f32 %v2944_v39  ;;  %v2945_v48 = vmul.f32 0.7978846, %v2937_v57  ;;  %v2926_v29 = vmul.f32 %v2918_v11, %v5497_v49  ;;  %v2919_v40 = vmul.f32 %v5505_v14, %v5505_v14 }
 0xb1b   : > { %4109 = vtanh.f32 %v2947_v35  ;;  %v2924_v59 = vmul.f32 %v2916_v33, %v5500_v20  ;;  %v2917_v8 = vmul.f32 %v5509_v34, %v5509_v34 }
 0xb1c   : > { %4111 = vtanh.f32 %v2945_v48  ;;  %v2934_v13 = vmul.f32 0.044715, %v2926_v29  ;;  %v2927_v16 = vmul.f32 %v2919_v40, %v5505_v14 }
 0xb1d   : > { %v2932_v36 = vmul.f32 0.044715, %v2924_v59  ;;  %v2925_v52 = vmul.f32 %v2917_v8, %v5509_v34 }
 0xb1e   : > { %v2942_v9 = vadd.f32 %v2934_v13, %v5497_v49  ;;  %v2935_v23 = vmul.f32 0.044715, %v2927_v16  ;;  %v2998_v13 = vsub.s32 7, %v4700_v47 }
 0xb1f   : > { %v2940_v43 = vadd.f32 %v2932_v36, %v5500_v20  ;;  %v2933_v62 = vmul.f32 0.044715, %v2925_v52 }
 0xb20   : > { %v2950_v60 = vmul.f32 0.7978846, %v2942_v9  ;;  %v2943_v25 = vadd.f32 %v2935_v23, %v5505_v14  ;;  %v2999_v16 = vrot.slane %v5366_v44, %v2998_v13 }
 0xb21   : > { %v2948_v50 = vmul.f32 0.7978846, %v2940_v43  ;;  %v2941_v26 = vadd.f32 %v2933_v62, %v5509_v34 }
 0xb22   : > { %4113 = vtanh.f32 %v2950_v60  ;;  %v2951_v41 = vmul.f32 0.7978846, %v2943_v25 }
 0xb23   : > { %v4106_v42 = vpop.eup %4105  ;;  %4115 = vtanh.f32 %v2948_v50  ;;  %v2949_v56 = vmul.f32 0.7978846, %v2941_v26 }
 0xb24   : > { %v4108_v15 = vpop.eup %4107  ;;  %v2962_v12 = vadd.f32 1.0, %v4106_v42  ;;  %4117 = vtanh.f32 %v2951_v41 }
 0xb25   : > { %v4110_v4 = vpop.eup %4109  ;;  %v2960_v22 = vadd.f32 1.0, %v4108_v15  ;;  %4119 = vtanh.f32 %v2949_v56 }
 0xb26   : > { %v4112_v2 = vpop.eup %4111  ;;  %v2970_v61 = vmul.f32 0.5, %v2962_v12  ;;  %v2963_v21 = vadd.f32 1.0, %v4110_v4 }
 0xb27   : > { %v2968_v46 = vmul.f32 0.5, %v2960_v22  ;;  %v2961_v63 = vadd.f32 1.0, %v4112_v2 }
 0xb28   : > { %v2971_v1 = vmul.f32 0.5, %v2963_v21  ;;  %v2978_v31 = vmul.f32 %v2970_v61, %v5475_v55 }
 0xb29   : > { %v2969_v18 = vmul.f32 0.5, %v2961_v63  ;;  %v2976_v38 = vmul.f32 %v2968_v46, %v5477_v10 }
 0xb2a   : > { %v2979_v28 = vmul.f32 %v2971_v1, %v5481_v7  ;;  %v3454_v1 = vld [vmem:[%s5616_s11] ss:$0 sm:$0xff] (!%p3453_p1) }
 0xb2b   : > { %v2977_v45 = vmul.f32 %v2969_v18, %v5485_v17 }
 0xb2c   : > { %v4114_v27 = vpop.eup %4113  ;;  %v2985_v32 = vpack.c.bf16 %v2979_v28, %v2978_v31 }
 0xb2d   : > { %v4116_v5 = vpop.eup %4115  ;;  %v2966_v53 = vadd.f32 1.0, %v4114_v27  ;;  %v2984_v30 = vpack.c.bf16 %v2977_v45, %v2976_v38 }
 0xb2e   : > { %v4118_v39 = vpop.eup %4117  ;;  %v2964_v57 = vadd.f32 1.0, %v4116_v5 }
 0xb2f   : > { %v4120_v11 = vpop.eup %4119  ;;  %v2974_v3 = vmul.f32 0.5, %v2966_v53  ;;  %v2967_v35 = vadd.f32 1.0, %v4118_v39  ;;  %3749 = vmatprep.mubr.msk.bf16.mxu1 %vm3024_vm8, %v2984_v30 }
 0xb30   : > { %v2972_v55 = vmul.f32 0.5, %v2964_v57  ;;  %v2965_v33 = vadd.f32 1.0, %v4120_v11  ;;  %3750 = vmatmul.mubr.msk.bf16.vlgmr.msra.gmra.mrb[40].mxu1 %vm3024_vm8, %v2985_v32 }
 0xb31   : > { %v2975_v10 = vmul.f32 0.5, %v2967_v35  ;;  %v2982_v17 = vmul.f32 %v2974_v3, %v5497_v49 }
 0xb32   : > { %v2973_v7 = vmul.f32 0.5, %v2965_v33  ;;  %v2980_v29 = vmul.f32 %v2972_v55, %v5500_v20 }
 0xb33   : > { %v2983_v48 = vmul.f32 %v2975_v10, %v5505_v14 }
 0xb34   : > { %v2981_v40 = vmul.f32 %v2973_v7, %v5509_v34 }
 0xb35   : > { %v2987_v59 = vpack.c.bf16 %v2983_v48, %v2982_v17 }
 0xb36   : > { %v2986_v8 = vpack.c.bf16 %v2981_v40, %v2980_v29 }
 0xb38   : > { %3753 = vmatprep.mubr.msk.bf16.mxu1 %vm3024_vm8, %v2986_v8 }
 0xb39   : > { %3754 = vmatmul.mubr.msk.bf16.gmra.mrb[44].mxu1 %vm3024_vm8, %v2987_v59 }
 0xc03   : > { %v3751_v36 = vpop.f32.mrb[40].mxu1 }
 0xc04   : > { %v3080_v52 = vadd.f32 %v3751_v36, %v2999_v16  ;;  %v3071_v9 = vpop.f32.mrb[41].mxu1 }
 0xc05   : > { %v3072_v49 = vadd.f32 %v3071_v9, %v2999_v16  ;;  %v3752_v23 = vpop.f32.mrb[42].mxu1 }
 0xc06   : > { %v3104_v14 = vadd.f32 %v3080_v52, %v5371_v19  ;;  %v3083_v20 = vadd.f32 %v3752_v23, %v2999_v16  ;;  %v3074_v43 = vpop.f32.mrb[43].mxu1 }
 0xc07   : > { %v3102_v34 = vadd.f32 %v3072_v49, %v5369_v6  ;;  %v3075_v62 = vadd.f32 %v3074_v43, %v2999_v16 }
 0xc08   : > { %3112 = vst.msk [vmem:[#allocation2 + $0x10] sm:$0xff] %vm743_vm3, %v3104_v14  ;;  %v3105_v60 = vadd.f32 %v3083_v20, %v5379_v37 }
 0xc09   : > { %3110 = vst.msk [vmem:[#allocation2] sm:$0xff] %vm743_vm3, %v3102_v34  ;;  %v3103_v47 = vadd.f32 %v3075_v62, %v5373_v54 }
 0xc0a   : > { %3113 = vst.msk [vmem:[#allocation2 + $0x18] sm:$0xff] %vm743_vm3, %v3105_v60 }
 0xc0b   : > { %3111 = vst.msk [vmem:[#allocation2 + $0x8] sm:$0xff] %vm743_vm3, %v3103_v47 }
 0xc0c   : > { %v3755_v44 = vpop.f32.mrb[44].mxu1 }
 0xc0d   : > { %v3096_v25 = vadd.f32 %v3755_v44, %v2999_v16  ;;  %v3087_v19 = vpop.f32.mrb[45].mxu1 }
 0xc0e   : > { %v3088_v50 = vadd.f32 %v3087_v19, %v2999_v16  ;;  %v3756_v26 = vpop.f32.mrb[46].mxu1  ;;  %3121 = sbr.rel (%p3453_p1) target bundleno = 3322 (0xcfa), region = 88 }
 0xc0f   : > { %v3108_v6 = vadd.f32 %v3096_v25, %v5393_v24  ;;  %v3099_v41 = vadd.f32 %v3756_v26, %v2999_v16  ;;  %v3090_v42 = vpop.f32.mrb[47].mxu1  ;;  %v4319_v24 = vmov (!%p3453_p1), 0.0  }
 0xc10   : > { %v3106_v56 = vadd.f32 %v3088_v50, %v5383_v51  ;;  %v3091_v37 = vadd.f32 %v3090_v42, %v2999_v16  ;;  %v4130_v51 = vld [vmem:[%s5615_s10] sm:$0xff] (!%p3453_p1)   ;;  %3757 = vmatprep.subr.bf16.mxu0 (!%p3453_p1), %v4319_v24  ;;  %3761 = vmatprep.mubr.msk.bf16.mxu0 (!%p3453_p1), %vm4320_vm9, %v4319_v24 }
 0xc11   : > { %3116 = vst.msk [vmem:[#allocation2 + $0x30] sm:$0xff] %vm743_vm3, %v3108_v6  ;;  %v3109_v54 = vadd.f32 %v3099_v41, %v5389_v58  ;;  %3758 = vmatpush3.bf16.msra.mxu0 (!%p3453_p1), %v4130_v51  ;;  %v4131_v58 = vld [vmem:[%s5615_s10 + $0x8] sm:$0xff] (!%p3453_p1)  }
 0xc12   : > { %3114 = vst.msk [vmem:[#allocation2 + $0x20] sm:$0xff] %vm743_vm3, %v3106_v56  ;;  %v3107_v15 = vadd.f32 %v3091_v37, %v5385_v0  ;;  %v3122_v0 = vld [vmem:[#allocation2] sm:$0x1] (!%p3453_p1)  ;;  %3759 = vmatprep.subr.bf16.mxu0 (!%p3453_p1), %v4319_v24 }
 0xc13   : > { %3117 = vst.msk [vmem:[#allocation2 + $0x38] sm:$0xff] %vm743_vm3, %v3109_v54  ;;  %v3124_v4 = vpack.c.bf16 (!%p3453_p1), %v3122_v0, %v3122_v0 }
 0xc14   : > { %3115 = vst.msk [vmem:[#allocation2 + $0x28] sm:$0xff] %vm743_vm3, %v3107_v15 }
 0xc15   : > { %v3139_v2 = vunpack.c.l.b16 %v3124_v4  ;;  %3760 = vmatpush3.bf16.msra.mxu0 %v4131_v58 }
 0xc19   : > { %v3123_v12 = vld [vmem:[#allocation2 + $0x20] sm:$0x1] }
 0xc1a   : > { %v3125_v22 = vpack.c.bf16 %v3123_v12, %v3123_v12 }
 0xc1c   : > { %v3140_v61 = vunpack.c.l.b16 %v3125_v22 }
 0xc1e   : > { %v3141_v21 = vrot.slane %v3140_v61, 7 }
 0xc20   : > { %v3143_v46 = vsel %vm3142_vm10, %v3141_v21, %v3139_v2 }
 0xc21   : > { %v3144_v63 = vpack.c.b16 %v3143_v46, %v3143_v46 }
 0xc23   : > { %3762 = vmatmul.mubr.msk.bf16.vlgmr.msra.gmra.mrb[0].mxu0 %vm743_vm3, %v3144_v63 }
 0xcf6   : > { %v3194_v18 = vpop.f32.mrb[0].mxu0 }
 0xcf7   : > { %v3195_v31 = vadd.f32 %v3454_v1, %v3194_v18  ;;  %v3763_v28 = vpop.f32.mrb[1].mxu0 }
 0xcf8   : > { %v3197_v38 = vpop.f32.mrb[2].mxu0 }
 0xcf9   : > { %3200 = vst [vmem:[#allocation9] sm:$0x3] %v3195_v31  ;;  %v3764_v45 = vpop.f32.mrb[3].mxu0 }
 0xcfa PF: > { %p3807_p6 = scmp.eq.s32.totalorder %s4477_s29, 1  ;;  %s4321_s20 = smov [#allocation9]  }
 0xcfb   : > { %s3210_s28 = sshll.u32 %s4321_s20, 4  ;;  %s3211_s28 = int_to_ptr.vmem [resolvable:$true] %s3210_s28 }
 0xcfc   : > { %s4220_s17 = scalar_lea.vmem %s3211_s28, 32  ;;  %p4227_p12 = scmp.lt.s32.totalorder %s3211_s28, %s3211_s28 }
 0xcfd   : > { %p4221_p4 = scmp.ne.s32.totalorder %s3211_s28, %s4220_s17  ;;  %p4228_p10 = scmp.lt.s32.totalorder %s4220_s17, %s4220_s17 }
 0xcff   : > { %p4222_p7 = pnand %p4221_p4, %p3807_p6  ;;  %p4229_p0 = por %p4228_p10, %p4227_p12 }
 0xd01   : > { %p4223_p9 = pneg %p4222_p7 }
 0xd03   : > { %p4230_p8 = pnand %p4229_p0, %p4223_p9 }
 0xd05   : > { %4233 = shalt.err (!%p4230_p8)
}
 0xd06   : > { %s5644_s25 = sld [smem:[#allocation20_spill]] }
 0xd0c   : > { %s5645_s13 = smov %s5644_s25  ;;  %s4234_s19 = scalar_lea.hbm %s5644_s25, 32 }
 0xd0d   : > { %p4235_p13 = scmp.ne.s32.totalorder %s5645_s13, %s4234_s19  ;;  %p4240_p3 = scmp.lt.u32.totalorder %s4234_s19, %s5645_s13 }
 0xd0f   : > { %p4236_p2 = pnand %p4235_p13, %p3807_p6 }
 0xd11   : > { %p4237_p5 = pneg %p4236_p2 }
 0xd13   : > { %p4242_p11 = pnand %p4240_p3, %p4237_p5 }
 0xd15   : > { %4245 = shalt.err (!%p4242_p11)
}
 0xd16   : > { %3790 = dma.vmem_to_hbm [thread:$0]  (%p3807_p6), %s3211_s28, 32, %s5645_s13, [#allocation5]  }
 0xd17   : > { %4279 = dma.done.wait (%p3807_p6), [#allocation5], 32  }
 0xd18   : > { %4281 = vsyncadd (%p3807_p6), [#allocation5], 4294967264 }
 0xd19 PF: > { %s5646_s5 = sld [smem:[#allocation15_spill]]  ;;  %s5647_s27 = sld [smem:[#allocation13_spill]] }
 0xd1a   : > { %s5648_s23 = sld [smem:[#allocation17_spill]]  ;;  %s5649_s24 = sld [smem:[#allocation14_spill]] }
 0xd1b   : > { %s5650_s25 = sld [smem:[#allocation16_spill]]  ;;  %s5651_s21 = smov %s4288_s22 }
 0xd1f   : > { %s27_s26 = sadd.s32 1, %s5646_s5   ;;  %s5652_s22 = smov %s5647_s27 }
 0xd20   : > { %p24_p1 = scmp.ge.s32.totalorder %s27_s26, 4  }
 0xd22   :  { %26 = sbr.rel (!%p24_p1) target bundleno = 10 (0xa), region = 145 }
 0xd29   :  { %3223 = vsyncpa [#allocation4], 1 }
 0xd2a   :  { %3225 = vsyncpa [#allocation4 + $0x1], 1 }
 0xd2b   :  { %3226 = vsyncpa [#allocation7], 1 }
 0xd2c   :  { %3228 = vsyncpa [#allocation7 + $0x1], 1 }
 0xd2d   :  { %3229 = vsyncpa [#allocation5], 1 }
 0xd2e   :  { %3231 = vsyncpa [#allocation5 + $0x1], 1 }

</bundles_post_ra>
